<compile_context>
chip_gen: v6e
topology: v6e:2x2x1
jax: 0.10.0
libtpu: 0.0.40
codegen_flags: <defaults>
</compile_context>

<pallas_src>
import math
from functools import partial

import jax
import jax.numpy as jnp
from jax import lax
from jax.experimental import pallas as pl
from jax.experimental.pallas import tpu as pltpu


def _informed_attn_kernel(xs_ref, wcat_ref, akt_ref, wsoft_ref, out_ref,
                          *, S, K, V, H, R, Bblk):
    """One program handles a (Bblk, S, E) batch tile, all heads.

    wcat_ref : (E, H*(3K+V))  fused projections, per-head column layout
               [ q(K) | k(K) | v(V, * w_o[h]) | pos_q(K) ], q/pos_q * 1/sqrt(V)
    akt_ref  : (K, 2R+1)      relative-key table, pre-transposed
    wsoft_ref: (S, 1)         informed sequence weights (already softmaxed)
    out_ref  : (Bblk, V)
    """
    wcat = wcat_ref[...]
    akt = akt_ref[...]
    wsoft = wsoft_ref[...]                     # (S, 1)

    # Relative-bucket ids rel[i, j] = clip(j - i, -R, R) + R, shared by all
    # (b, h); masks hoisted out of the loops.
    row = lax.broadcasted_iota(jnp.int32, (S, S), 0)
    col = lax.broadcasted_iota(jnp.int32, (S, S), 1)
    rel = jnp.clip(col - row, -R, R) + R
    masks = [rel == r for r in range(2 * R + 1)]

    Ch = 3 * K + V
    rows = []
    for b in range(Bblk):                      # static, small batch tile
        xb = xs_ref[b]                         # (S, E)
        # One lane-dense fused projection matmul for this batch row.
        proj = jnp.dot(xb, wcat, preferred_element_type=jnp.float32)  # (S, H*Ch)

        acc = jnp.zeros((1, V), jnp.float32)
        for h in range(H):                     # heads collapsed into program
            c0 = h * Ch
            q = proj[:, c0:c0 + K]                       # (S, K)  (pre-scaled)
            k = proj[:, c0 + K:c0 + 2 * K]               # (S, K)
            v = proj[:, c0 + 2 * K:c0 + 2 * K + V]       # (S, V)  (* w_o[h])
            pq = proj[:, c0 + 2 * K + V:c0 + 3 * K + V]  # (S, K)  (pre-scaled)

            # Content logits (MXU).
            qk = jnp.dot(q, k.T, preferred_element_type=jnp.float32)  # (S, S)

            # Relative logits: bucket logits on the MXU, skew via banded selects.
            m = jnp.dot(pq, akt, preferred_element_type=jnp.float32)  # (S, 2R+1)
            q_rel = jnp.zeros((S, S), jnp.float32)
            for r in range(2 * R + 1):
                q_rel = q_rel + jnp.where(masks[r], m[:, r:r + 1], 0.0)

            # Softmax (scale already folded into q / pq).
            e = qk + q_rel
            e = e - jnp.max(e, axis=-1, keepdims=True)
            p = jnp.exp(e)
            l = jnp.sum(p, axis=-1, keepdims=True)                    # (S, 1)

            # Pool before values: u = w_soft / l, pooled = u^T @ p, out = pooled @ v.
            u = wsoft * pl.reciprocal(l, approx=True)                 # (S, 1)
            pooled = jnp.sum(p * u, axis=0, keepdims=True)            # (1, S)
            acc = acc + jnp.dot(pooled, v,
                                preferred_element_type=jnp.float32)   # (1, V)

        rows.append(acc)

    # Single dense store of the whole output block.
    out_ref[...] = jnp.concatenate(rows, axis=0)


def informed_predictive_attention(xs, params, relative_cutoff):
    w_q, w_k, w_v, w_o = params["w_q"], params["w_k"], params["w_v"], params["w_o"]
    a_q, a_k, a_w = params["a_q"], params["a_k"], params["a_w"]
    # params["a_v"] exists in the module but is unused in forward().

    B, S, E = xs.shape
    H, _, K = w_q.shape
    V = w_v.shape[-1]
    R = relative_cutoff
    scale = 1.0 / math.sqrt(V)

    # Fold scale into w_q / a_q and w_o[h] into w_v[h] (once, on the weights).
    wq_s = w_q * scale
    aq_s = a_q * scale
    wv_s = w_v * w_o[:, None, None]

    # Fused per-head projection: (H, E, 3K+V) -> (E, H*(3K+V)).
    Ch = 3 * K + V
    wcat = jnp.concatenate([wq_s, w_k, wv_s, aq_s], axis=-1)      # (H, E, Ch)
    wcat = jnp.transpose(wcat, (1, 0, 2)).reshape(E, H * Ch)      # (E, H*Ch)

    # Tiny relative-key table, pre-transposed (no (S,S,K) tensor anywhere).
    akt = a_k.T                                                   # (K, 2R+1)

    # Informed sequence weights (softmaxed), as a column vector.
    pos_vec = jnp.clip(jnp.flip(jnp.arange(S)), 0, R)
    wsoft = jax.nn.softmax(a_w[pos_vec])[:, None]                 # (S, 1)

    Bblk = B if B <= 8 else 8
    assert B % Bblk == 0, "batch must be divisible by the batch tile"

    kernel = partial(_informed_attn_kernel, S=S, K=K, V=V, H=H, R=R, Bblk=Bblk)

    out = pl.pallas_call(
        kernel,
        out_shape=jax.ShapeDtypeStruct((B, V), jnp.float32),
        grid=(B // Bblk,),
        in_specs=[
            pl.BlockSpec((Bblk, S, E), lambda i: (i, 0, 0)),      # xs tile
            pl.BlockSpec((E, H * Ch), lambda i: (0, 0)),          # fused weights
            pl.BlockSpec((K, 2 * R + 1), lambda i: (0, 0)),       # a_k^T
            pl.BlockSpec((S, 1), lambda i: (0, 0)),               # w_soft
        ],
        out_specs=pl.BlockSpec((Bblk, V), lambda i: (i, 0)),
        compiler_params=pltpu.CompilerParams(
            dimension_semantics=("parallel",)),
    )(xs, wcat, akt, wsoft)

    return out                                                    # (B, V)


# ----------------------- pure-JAX reference (for checking) ------------------
def _ref_forward(xs, params, R):
    w_q, w_k, w_v, w_o = params["w_q"], params["w_k"], params["w_v"], params["w_o"]
    a_q, a_k, a_w = params["a_q"], params["a_k"], params["a_w"]
    B, S, E = xs.shape
    V = w_v.shape[-1]

    queries = jnp.einsum('bse,heq->bhsq', xs, w_q)
    keys = jnp.einsum('bse,hek->bhsk', xs, w_k)
    values = jnp.einsum('bse,hev->bhsv', xs, w_v)
    q_k = jnp.einsum('bhiq,bhjq->bhij', queries, keys)

    pos_q = jnp.einsum('bse,heq->bhsq', xs, a_q)
    pos_vec = jnp.clip(jnp.arange(-S + 1, S), -R, R) + R
    rel_emb = a_k[pos_vec]                                   # (2S-1, K)
    q_rel = jnp.einsum('bhiq,rq->bhir', pos_q, rel_emb)      # (B,H,S,2S-1)

    # _skew_matrix, exactly as in the PyTorch code
    m = jnp.pad(q_rel, ((0, 0), (0, 0), (0, 0), (0, 1)))
    m = m.reshape(B, q_rel.shape[1], -1)
    m = jnp.pad(m, ((0, 0), (0, 0), (0, S - 1)))
    m = m.reshape(B, q_rel.shape[1], S + 1, 2 * S - 1)
    q_rel = m[:, :, :S, m.shape[3] - S:]

    e = (q_k + q_rel) / math.sqrt(V)
    alphas = jax.nn.softmax(e, axis=3)
    qkv = jnp.einsum('bhij,bhjv->bhiv', alphas, values)
    z = jnp.einsum('bhsv,h->bsv', qkv, w_o)

    pos = jnp.clip(jnp.flip(jnp.arange(S)), 0, R)
    w = jax.nn.softmax(a_w[pos])
    return jnp.einsum('bsv,s->bv', z, w)


# ----------------------------------- main ------------------------------------
if __name__ == "__main__":
    # Small shapes consistent with the module's forward.
    B, S, E = 2, 8, 32
    H, K, V = 4, 16, 16
    R = 8  # relative_cutoff

    def _kaiming_uniform(key, shape, fan_in):
        bound = 1.0 / math.sqrt(fan_in)
        return jax.random.uniform(key, shape, jnp.float32, -bound, bound)

    root = jax.random.PRNGKey(0)
    keys = jax.random.split(root, 8)

    params = {
        "w_q": _kaiming_uniform(keys[0], (H, E, K), E * K),
        "w_k": _kaiming_uniform(keys[1], (H, E, K), E * K),
        "w_v": _kaiming_uniform(keys[2], (H, E, V), E * V),
        "w_o": jnp.ones((H,), jnp.float32),
        "a_q": _kaiming_uniform(keys[3], (H, E, K), E * K),
        "a_k": _kaiming_uniform(keys[4], (2 * R + 1, K), K),
        "a_v": _kaiming_uniform(keys[5], (2 * R + 1, V), V),  # unused in forward
        "a_w": jnp.ones((R + 1,), jnp.float32),
    }

    xs = jax.random.normal(keys[6], (B, S, E), jnp.float32)

    out = informed_predictive_attention(xs, params, R)
    out = jax.block_until_ready(out)

    ref = jax.block_until_ready(_ref_forward(xs, params, R))

    assert out.shape == (B, V), out.shape
    assert bool(jnp.all(jnp.isfinite(out)))
    assert bool(jnp.allclose(out, ref, atol=2e-2, rtol=2e-2)), (
        float(jnp.max(jnp.abs(out - ref))))

    print("KERNEL_OK")
</pallas_src>

<mosaic_0001>
module attributes {stable_mosaic.version = 11 : i64} {
  func.func @_informed_attn_kernel(%arg0: i32, %arg1: memref<2x8x32xf32, #tpu.memory_space<vmem>>, %arg2: memref<32x256xf32, #tpu.memory_space<vmem>>, %arg3: memref<16x17xf32, #tpu.memory_space<vmem>>, %arg4: memref<8x1xf32, #tpu.memory_space<vmem>>, %arg5: memref<2x16xf32, #tpu.memory_space<vmem>>) attributes {dimension_semantics = [#tpu.dimension_semantics<parallel>], iteration_bounds = array<i64: 1>, scalar_prefetch = 0 : i64, scratch_operands = 0 : i64, tpu.core_type = #tpu.core_type<tc>, window_params = [{transform_indices = @transform_0, window_bounds = array<i64: 2, 8, 32>}, {pipeline_mode = #tpu.pipeline_mode<synchronous>, transform_indices = @transform_1, window_bounds = array<i64: 32, 256>}, {pipeline_mode = #tpu.pipeline_mode<synchronous>, transform_indices = @transform_2, window_bounds = array<i64: 16, 17>}, {pipeline_mode = #tpu.pipeline_mode<synchronous>, transform_indices = @transform_3, window_bounds = array<i64: 8, 1>}, {transform_indices = @transform_4, window_bounds = array<i64: 2, 16>}]} {
    %c0 = arith.constant 0 : index
    %c0_0 = arith.constant 0 : index
    %0 = vector.load %arg2[%c0, %c0_0] : memref<32x256xf32, #tpu.memory_space<vmem>>, vector<32x256xf32>
    %c0_1 = arith.constant 0 : index
    %c0_2 = arith.constant 0 : index
    %1 = vector.load %arg3[%c0_1, %c0_2] : memref<16x17xf32, #tpu.memory_space<vmem>>, vector<16x17xf32>
    %c0_3 = arith.constant 0 : index
    %c0_4 = arith.constant 0 : index
    %2 = vector.load %arg4[%c0_3, %c0_4] : memref<8x1xf32, #tpu.memory_space<vmem>>, vector<8x1xf32>
    %3 = tpu.iota {dimensions = array<i32: 0>} : vector<8x8xi32>
    %4 = tpu.iota {dimensions = array<i32: 1>} : vector<8x8xi32>
    %5 = arith.subi %4, %3 : vector<8x8xi32>
    %c-8_i32 = arith.constant -8 : i32
    %c8_i32 = arith.constant 8 : i32
    %6 = vector.broadcast %c-8_i32 : i32 to vector<8x8xi32>
    %7 = arith.maxsi %6, %5 : vector<8x8xi32>
    %8 = vector.broadcast %c8_i32 : i32 to vector<8x8xi32>
    %9 = arith.minsi %8, %7 : vector<8x8xi32>
    %c8_i32_5 = arith.constant 8 : i32
    %10 = vector.broadcast %c8_i32_5 : i32 to vector<8x8xi32>
    %11 = arith.addi %9, %10 : vector<8x8xi32>
    %c0_i32 = arith.constant 0 : i32
    %12 = vector.broadcast %c0_i32 : i32 to vector<8x8xi32>
    %13 = arith.cmpi eq, %11, %12 : vector<8x8xi32>
    %c1_i32 = arith.constant 1 : i32
    %14 = vector.broadcast %c1_i32 : i32 to vector<8x8xi32>
    %15 = arith.cmpi eq, %11, %14 : vector<8x8xi32>
    %c2_i32 = arith.constant 2 : i32
    %16 = vector.broadcast %c2_i32 : i32 to vector<8x8xi32>
    %17 = arith.cmpi eq, %11, %16 : vector<8x8xi32>
    %c3_i32 = arith.constant 3 : i32
    %18 = vector.broadcast %c3_i32 : i32 to vector<8x8xi32>
    %19 = arith.cmpi eq, %11, %18 : vector<8x8xi32>
    %c4_i32 = arith.constant 4 : i32
    %20 = vector.broadcast %c4_i32 : i32 to vector<8x8xi32>
    %21 = arith.cmpi eq, %11, %20 : vector<8x8xi32>
    %c5_i32 = arith.constant 5 : i32
    %22 = vector.broadcast %c5_i32 : i32 to vector<8x8xi32>
    %23 = arith.cmpi eq, %11, %22 : vector<8x8xi32>
    %c6_i32 = arith.constant 6 : i32
    %24 = vector.broadcast %c6_i32 : i32 to vector<8x8xi32>
    %25 = arith.cmpi eq, %11, %24 : vector<8x8xi32>
    %c7_i32 = arith.constant 7 : i32
    %26 = vector.broadcast %c7_i32 : i32 to vector<8x8xi32>
    %27 = arith.cmpi eq, %11, %26 : vector<8x8xi32>
    %c8_i32_6 = arith.constant 8 : i32
    %28 = vector.broadcast %c8_i32_6 : i32 to vector<8x8xi32>
    %29 = arith.cmpi eq, %11, %28 : vector<8x8xi32>
    %c9_i32 = arith.constant 9 : i32
    %30 = vector.broadcast %c9_i32 : i32 to vector<8x8xi32>
    %31 = arith.cmpi eq, %11, %30 : vector<8x8xi32>
    %c10_i32 = arith.constant 10 : i32
    %32 = vector.broadcast %c10_i32 : i32 to vector<8x8xi32>
    %33 = arith.cmpi eq, %11, %32 : vector<8x8xi32>
    %c11_i32 = arith.constant 11 : i32
    %34 = vector.broadcast %c11_i32 : i32 to vector<8x8xi32>
    %35 = arith.cmpi eq, %11, %34 : vector<8x8xi32>
    %c12_i32 = arith.constant 12 : i32
    %36 = vector.broadcast %c12_i32 : i32 to vector<8x8xi32>
    %37 = arith.cmpi eq, %11, %36 : vector<8x8xi32>
    %c13_i32 = arith.constant 13 : i32
    %38 = vector.broadcast %c13_i32 : i32 to vector<8x8xi32>
    %39 = arith.cmpi eq, %11, %38 : vector<8x8xi32>
    %c14_i32 = arith.constant 14 : i32
    %40 = vector.broadcast %c14_i32 : i32 to vector<8x8xi32>
    %41 = arith.cmpi eq, %11, %40 : vector<8x8xi32>
    %c15_i32 = arith.constant 15 : i32
    %42 = vector.broadcast %c15_i32 : i32 to vector<8x8xi32>
    %43 = arith.cmpi eq, %11, %42 : vector<8x8xi32>
    %c16_i32 = arith.constant 16 : i32
    %44 = vector.broadcast %c16_i32 : i32 to vector<8x8xi32>
    %45 = arith.cmpi eq, %11, %44 : vector<8x8xi32>
    %c0_7 = arith.constant 0 : index
    %c0_8 = arith.constant 0 : index
    %c0_9 = arith.constant 0 : index
    %46 = vector.load %arg1[%c0_7, %c0_8, %c0_9] : memref<2x8x32xf32, #tpu.memory_space<vmem>>, vector<1x8x32xf32>
    %47 = vector.shape_cast %46 : vector<1x8x32xf32> to vector<8x32xf32>
    %cst = arith.constant dense<0.000000e+00> : vector<8x256xf32>
    %48 = tpu.matmul %47, %0, %cst {dimension_numbers = #tpu.dot_dimension_numbers<[1], [0], [0], [1], [0, 0, 1, 1], [], []>} : vector<8x32xf32>, vector<32x256xf32>, vector<8x256xf32> -> vector<8x256xf32>
    %cst_10 = arith.constant 0.000000e+00 : f32
    %49 = vector.broadcast %cst_10 : f32 to vector<1x16xf32>
    %50 = vector.extract_strided_slice %48 {offsets = [0, 0], sizes = [8, 16], strides = [1, 1]} : vector<8x256xf32> to vector<8x16xf32>
    %51 = vector.extract_strided_slice %48 {offsets = [0, 16], sizes = [8, 16], strides = [1, 1]} : vector<8x256xf32> to vector<8x16xf32>
    %52 = vector.extract_strided_slice %48 {offsets = [0, 32], sizes = [8, 16], strides = [1, 1]} : vector<8x256xf32> to vector<8x16xf32>
    %53 = vector.extract_strided_slice %48 {offsets = [0, 48], sizes = [8, 16], strides = [1, 1]} : vector<8x256xf32> to vector<8x16xf32>
    %54 = tpu.transpose %51, [1, 0] : vector<8x16xf32> -> vector<16x8xf32>
    %cst_11 = arith.constant dense<0.000000e+00> : vector<8x8xf32>
    %55 = tpu.matmul %50, %54, %cst_11 {dimension_numbers = #tpu.dot_dimension_numbers<[1], [0], [0], [1], [0, 0, 1, 1], [], []>} : vector<8x16xf32>, vector<16x8xf32>, vector<8x8xf32> -> vector<8x8xf32>
    %cst_12 = arith.constant dense<0.000000e+00> : vector<8x17xf32>
    %56 = tpu.matmul %53, %1, %cst_12 {dimension_numbers = #tpu.dot_dimension_numbers<[1], [0], [0], [1], [0, 0, 1, 1], [], []>} : vector<8x16xf32>, vector<16x17xf32>, vector<8x17xf32> -> vector<8x17xf32>
    %cst_13 = arith.constant 0.000000e+00 : f32
    %57 = vector.broadcast %cst_13 : f32 to vector<8x8xf32>
    %58 = vector.extract_strided_slice %56 {offsets = [0, 0], sizes = [8, 1], strides = [1, 1]} : vector<8x17xf32> to vector<8x1xf32>
    %cst_14 = arith.constant 0.000000e+00 : f32
    %59 = vector.shape_cast %58 : vector<8x1xf32> to vector<8x1xf32>
    %60 = vector.broadcast %59 : vector<8x1xf32> to vector<8x8xf32>
    %61 = vector.broadcast %cst_14 : f32 to vector<8x8xf32>
    %62 = arith.select %13, %60, %61 : vector<8x8xi1>, vector<8x8xf32>
    %63 = arith.addf %57, %62 : vector<8x8xf32>
    %64 = vector.extract_strided_slice %56 {offsets = [0, 1], sizes = [8, 1], strides = [1, 1]} : vector<8x17xf32> to vector<8x1xf32>
    %cst_15 = arith.constant 0.000000e+00 : f32
    %65 = vector.shape_cast %64 : vector<8x1xf32> to vector<8x1xf32>
    %66 = vector.broadcast %65 : vector<8x1xf32> to vector<8x8xf32>
    %67 = vector.broadcast %cst_15 : f32 to vector<8x8xf32>
    %68 = arith.select %15, %66, %67 : vector<8x8xi1>, vector<8x8xf32>
    %69 = arith.addf %63, %68 : vector<8x8xf32>
    %70 = vector.extract_strided_slice %56 {offsets = [0, 2], sizes = [8, 1], strides = [1, 1]} : vector<8x17xf32> to vector<8x1xf32>
    %cst_16 = arith.constant 0.000000e+00 : f32
    %71 = vector.shape_cast %70 : vector<8x1xf32> to vector<8x1xf32>
    %72 = vector.broadcast %71 : vector<8x1xf32> to vector<8x8xf32>
    %73 = vector.broadcast %cst_16 : f32 to vector<8x8xf32>
    %74 = arith.select %17, %72, %73 : vector<8x8xi1>, vector<8x8xf32>
    %75 = arith.addf %69, %74 : vector<8x8xf32>
    %76 = vector.extract_strided_slice %56 {offsets = [0, 3], sizes = [8, 1], strides = [1, 1]} : vector<8x17xf32> to vector<8x1xf32>
    %cst_17 = arith.constant 0.000000e+00 : f32
    %77 = vector.shape_cast %76 : vector<8x1xf32> to vector<8x1xf32>
    %78 = vector.broadcast %77 : vector<8x1xf32> to vector<8x8xf32>
    %79 = vector.broadcast %cst_17 : f32 to vector<8x8xf32>
    %80 = arith.select %19, %78, %79 : vector<8x8xi1>, vector<8x8xf32>
    %81 = arith.addf %75, %80 : vector<8x8xf32>
    %82 = vector.extract_strided_slice %56 {offsets = [0, 4], sizes = [8, 1], strides = [1, 1]} : vector<8x17xf32> to vector<8x1xf32>
    %cst_18 = arith.constant 0.000000e+00 : f32
    %83 = vector.shape_cast %82 : vector<8x1xf32> to vector<8x1xf32>
    %84 = vector.broadcast %83 : vector<8x1xf32> to vector<8x8xf32>
    %85 = vector.broadcast %cst_18 : f32 to vector<8x8xf32>
    %86 = arith.select %21, %84, %85 : vector<8x8xi1>, vector<8x8xf32>
    %87 = arith.addf %81, %86 : vector<8x8xf32>
    %88 = vector.extract_strided_slice %56 {offsets = [0, 5], sizes = [8, 1], strides = [1, 1]} : vector<8x17xf32> to vector<8x1xf32>
    %cst_19 = arith.constant 0.000000e+00 : f32
    %89 = vector.shape_cast %88 : vector<8x1xf32> to vector<8x1xf32>
    %90 = vector.broadcast %89 : vector<8x1xf32> to vector<8x8xf32>
    %91 = vector.broadcast %cst_19 : f32 to vector<8x8xf32>
    %92 = arith.select %23, %90, %91 : vector<8x8xi1>, vector<8x8xf32>
    %93 = arith.addf %87, %92 : vector<8x8xf32>
    %94 = vector.extract_strided_slice %56 {offsets = [0, 6], sizes = [8, 1], strides = [1, 1]} : vector<8x17xf32> to vector<8x1xf32>
    %cst_20 = arith.constant 0.000000e+00 : f32
    %95 = vector.shape_cast %94 : vector<8x1xf32> to vector<8x1xf32>
    %96 = vector.broadcast %95 : vector<8x1xf32> to vector<8x8xf32>
    %97 = vector.broadcast %cst_20 : f32 to vector<8x8xf32>
    %98 = arith.select %25, %96, %97 : vector<8x8xi1>, vector<8x8xf32>
    %99 = arith.addf %93, %98 : vector<8x8xf32>
    %100 = vector.extract_strided_slice %56 {offsets = [0, 7], sizes = [8, 1], strides = [1, 1]} : vector<8x17xf32> to vector<8x1xf32>
    %cst_21 = arith.constant 0.000000e+00 : f32
    %101 = vector.shape_cast %100 : vector<8x1xf32> to vector<8x1xf32>
    %102 = vector.broadcast %101 : vector<8x1xf32> to vector<8x8xf32>
    %103 = vector.broadcast %cst_21 : f32 to vector<8x8xf32>
    %104 = arith.select %27, %102, %103 : vector<8x8xi1>, vector<8x8xf32>
    %105 = arith.addf %99, %104 : vector<8x8xf32>
    %106 = vector.extract_strided_slice %56 {offsets = [0, 8], sizes = [8, 1], strides = [1, 1]} : vector<8x17xf32> to vector<8x1xf32>
    %cst_22 = arith.constant 0.000000e+00 : f32
    %107 = vector.shape_cast %106 : vector<8x1xf32> to vector<8x1xf32>
    %108 = vector.broadcast %107 : vector<8x1xf32> to vector<8x8xf32>
    %109 = vector.broadcast %cst_22 : f32 to vector<8x8xf32>
    %110 = arith.select %29, %108, %109 : vector<8x8xi1>, vector<8x8xf32>
    %111 = arith.addf %105, %110 : vector<8x8xf32>
    %112 = vector.extract_strided_slice %56 {offsets = [0, 9], sizes = [8, 1], strides = [1, 1]} : vector<8x17xf32> to vector<8x1xf32>
    %cst_23 = arith.constant 0.000000e+00 : f32
    %113 = vector.shape_cast %112 : vector<8x1xf32> to vector<8x1xf32>
    %114 = vector.broadcast %113 : vector<8x1xf32> to vector<8x8xf32>
    %115 = vector.broadcast %cst_23 : f32 to vector<8x8xf32>
    %116 = arith.select %31, %114, %115 : vector<8x8xi1>, vector<8x8xf32>
    %117 = arith.addf %111, %116 : vector<8x8xf32>
    %118 = vector.extract_strided_slice %56 {offsets = [0, 10], sizes = [8, 1], strides = [1, 1]} : vector<8x17xf32> to vector<8x1xf32>
    %cst_24 = arith.constant 0.000000e+00 : f32
    %119 = vector.shape_cast %118 : vector<8x1xf32> to vector<8x1xf32>
    %120 = vector.broadcast %119 : vector<8x1xf32> to vector<8x8xf32>
    %121 = vector.broadcast %cst_24 : f32 to vector<8x8xf32>
    %122 = arith.select %33, %120, %121 : vector<8x8xi1>, vector<8x8xf32>
    %123 = arith.addf %117, %122 : vector<8x8xf32>
    %124 = vector.extract_strided_slice %56 {offsets = [0, 11], sizes = [8, 1], strides = [1, 1]} : vector<8x17xf32> to vector<8x1xf32>
    %cst_25 = arith.constant 0.000000e+00 : f32
    %125 = vector.shape_cast %124 : vector<8x1xf32> to vector<8x1xf32>
    %126 = vector.broadcast %125 : vector<8x1xf32> to vector<8x8xf32>
    %127 = vector.broadcast %cst_25 : f32 to vector<8x8xf32>
    %128 = arith.select %35, %126, %127 : vector<8x8xi1>, vector<8x8xf32>
    %129 = arith.addf %123, %128 : vector<8x8xf32>
    %130 = vector.extract_strided_slice %56 {offsets = [0, 12], sizes = [8, 1], strides = [1, 1]} : vector<8x17xf32> to vector<8x1xf32>
    %cst_26 = arith.constant 0.000000e+00 : f32
    %131 = vector.shape_cast %130 : vector<8x1xf32> to vector<8x1xf32>
    %132 = vector.broadcast %131 : vector<8x1xf32> to vector<8x8xf32>
    %133 = vector.broadcast %cst_26 : f32 to vector<8x8xf32>
    %134 = arith.select %37, %132, %133 : vector<8x8xi1>, vector<8x8xf32>
    %135 = arith.addf %129, %134 : vector<8x8xf32>
    %136 = vector.extract_strided_slice %56 {offsets = [0, 13], sizes = [8, 1], strides = [1, 1]} : vector<8x17xf32> to vector<8x1xf32>
    %cst_27 = arith.constant 0.000000e+00 : f32
    %137 = vector.shape_cast %136 : vector<8x1xf32> to vector<8x1xf32>
    %138 = vector.broadcast %137 : vector<8x1xf32> to vector<8x8xf32>
    %139 = vector.broadcast %cst_27 : f32 to vector<8x8xf32>
    %140 = arith.select %39, %138, %139 : vector<8x8xi1>, vector<8x8xf32>
    %141 = arith.addf %135, %140 : vector<8x8xf32>
    %142 = vector.extract_strided_slice %56 {offsets = [0, 14], sizes = [8, 1], strides = [1, 1]} : vector<8x17xf32> to vector<8x1xf32>
    %cst_28 = arith.constant 0.000000e+00 : f32
    %143 = vector.shape_cast %142 : vector<8x1xf32> to vector<8x1xf32>
    %144 = vector.broadcast %143 : vector<8x1xf32> to vector<8x8xf32>
    %145 = vector.broadcast %cst_28 : f32 to vector<8x8xf32>
    %146 = arith.select %41, %144, %145 : vector<8x8xi1>, vector<8x8xf32>
    %147 = arith.addf %141, %146 : vector<8x8xf32>
    %148 = vector.extract_strided_slice %56 {offsets = [0, 15], sizes = [8, 1], strides = [1, 1]} : vector<8x17xf32> to vector<8x1xf32>
    %cst_29 = arith.constant 0.000000e+00 : f32
    %149 = vector.shape_cast %148 : vector<8x1xf32> to vector<8x1xf32>
    %150 = vector.broadcast %149 : vector<8x1xf32> to vector<8x8xf32>
    %151 = vector.broadcast %cst_29 : f32 to vector<8x8xf32>
    %152 = arith.select %43, %150, %151 : vector<8x8xi1>, vector<8x8xf32>
    %153 = arith.addf %147, %152 : vector<8x8xf32>
    %154 = vector.extract_strided_slice %56 {offsets = [0, 16], sizes = [8, 1], strides = [1, 1]} : vector<8x17xf32> to vector<8x1xf32>
    %cst_30 = arith.constant 0.000000e+00 : f32
    %155 = vector.shape_cast %154 : vector<8x1xf32> to vector<8x1xf32>
    %156 = vector.broadcast %155 : vector<8x1xf32> to vector<8x8xf32>
    %157 = vector.broadcast %cst_30 : f32 to vector<8x8xf32>
    %158 = arith.select %45, %156, %157 : vector<8x8xi1>, vector<8x8xf32>
    %159 = arith.addf %153, %158 : vector<8x8xf32>
    %160 = arith.addf %55, %159 : vector<8x8xf32>
    %cst_31 = arith.constant dense<0xFF800000> : vector<8xf32>
    %161 = vector.multi_reduction <maximumf>, %160, %cst_31 [1] : vector<8x8xf32> to vector<8xf32>
    %162 = vector.shape_cast %161 : vector<8xf32> to vector<8x1xf32>
    %163 = vector.broadcast %162 : vector<8x1xf32> to vector<8x8xf32>
    %164 = arith.subf %160, %163 : vector<8x8xf32>
    %165 = math.exp %164 : vector<8x8xf32>
    %cst_32 = arith.constant dense<0.000000e+00> : vector<8xf32>
    %166 = vector.multi_reduction <add>, %165, %cst_32 [1] : vector<8x8xf32> to vector<8xf32>
    %167 = vector.shape_cast %166 : vector<8xf32> to vector<8x1xf32>
    %168 = tpu.reciprocal %167 {approx = true} : vector<8x1xf32> -> vector<8x1xf32>
    %169 = arith.mulf %2, %168 : vector<8x1xf32>
    %170 = vector.broadcast %169 : vector<8x1xf32> to vector<8x8xf32>
    %171 = arith.mulf %165, %170 : vector<8x8xf32>
    %cst_33 = arith.constant dense<0.000000e+00> : vector<8xf32>
    %172 = vector.multi_reduction <add>, %171, %cst_33 [0] : vector<8x8xf32> to vector<8xf32>
    %173 = vector.shape_cast %172 : vector<8xf32> to vector<1x8xf32>
    %cst_34 = arith.constant dense<0.000000e+00> : vector<1x16xf32>
    %174 = tpu.matmul %173, %52, %cst_34 {dimension_numbers = #tpu.dot_dimension_numbers<[1], [0], [0], [1], [0, 0, 1, 1], [], []>} : vector<1x8xf32>, vector<8x16xf32>, vector<1x16xf32> -> vector<1x16xf32>
    %175 = arith.addf %49, %174 : vector<1x16xf32>
    %176 = vector.extract_strided_slice %48 {offsets = [0, 64], sizes = [8, 16], strides = [1, 1]} : vector<8x256xf32> to vector<8x16xf32>
    %177 = vector.extract_strided_slice %48 {offsets = [0, 80], sizes = [8, 16], strides = [1, 1]} : vector<8x256xf32> to vector<8x16xf32>
    %178 = vector.extract_strided_slice %48 {offsets = [0, 96], sizes = [8, 16], strides = [1, 1]} : vector<8x256xf32> to vector<8x16xf32>
    %179 = vector.extract_strided_slice %48 {offsets = [0, 112], sizes = [8, 16], strides = [1, 1]} : vector<8x256xf32> to vector<8x16xf32>
    %180 = tpu.transpose %177, [1, 0] : vector<8x16xf32> -> vector<16x8xf32>
    %cst_35 = arith.constant dense<0.000000e+00> : vector<8x8xf32>
    %181 = tpu.matmul %176, %180, %cst_35 {dimension_numbers = #tpu.dot_dimension_numbers<[1], [0], [0], [1], [0, 0, 1, 1], [], []>} : vector<8x16xf32>, vector<16x8xf32>, vector<8x8xf32> -> vector<8x8xf32>
    %cst_36 = arith.constant dense<0.000000e+00> : vector<8x17xf32>
    %182 = tpu.matmul %179, %1, %cst_36 {dimension_numbers = #tpu.dot_dimension_numbers<[1], [0], [0], [1], [0, 0, 1, 1], [], []>} : vector<8x16xf32>, vector<16x17xf32>, vector<8x17xf32> -> vector<8x17xf32>
    %cst_37 = arith.constant 0.000000e+00 : f32
    %183 = vector.broadcast %cst_37 : f32 to vector<8x8xf32>
    %184 = vector.extract_strided_slice %182 {offsets = [0, 0], sizes = [8, 1], strides = [1, 1]} : vector<8x17xf32> to vector<8x1xf32>
    %cst_38 = arith.constant 0.000000e+00 : f32
    %185 = vector.shape_cast %184 : vector<8x1xf32> to vector<8x1xf32>
    %186 = vector.broadcast %185 : vector<8x1xf32> to vector<8x8xf32>
    %187 = vector.broadcast %cst_38 : f32 to vector<8x8xf32>
    %188 = arith.select %13, %186, %187 : vector<8x8xi1>, vector<8x8xf32>
    %189 = arith.addf %183, %188 : vector<8x8xf32>
    %190 = vector.extract_strided_slice %182 {offsets = [0, 1], sizes = [8, 1], strides = [1, 1]} : vector<8x17xf32> to vector<8x1xf32>
    %cst_39 = arith.constant 0.000000e+00 : f32
    %191 = vector.shape_cast %190 : vector<8x1xf32> to vector<8x1xf32>
    %192 = vector.broadcast %191 : vector<8x1xf32> to vector<8x8xf32>
    %193 = vector.broadcast %cst_39 : f32 to vector<8x8xf32>
    %194 = arith.select %15, %192, %193 : vector<8x8xi1>, vector<8x8xf32>
    %195 = arith.addf %189, %194 : vector<8x8xf32>
    %196 = vector.extract_strided_slice %182 {offsets = [0, 2], sizes = [8, 1], strides = [1, 1]} : vector<8x17xf32> to vector<8x1xf32>
    %cst_40 = arith.constant 0.000000e+00 : f32
    %197 = vector.shape_cast %196 : vector<8x1xf32> to vector<8x1xf32>
    %198 = vector.broadcast %197 : vector<8x1xf32> to vector<8x8xf32>
    %199 = vector.broadcast %cst_40 : f32 to vector<8x8xf32>
    %200 = arith.select %17, %198, %199 : vector<8x8xi1>, vector<8x8xf32>
    %201 = arith.addf %195, %200 : vector<8x8xf32>
    %202 = vector.extract_strided_slice %182 {offsets = [0, 3], sizes = [8, 1], strides = [1, 1]} : vector<8x17xf32> to vector<8x1xf32>
    %cst_41 = arith.constant 0.000000e+00 : f32
    %203 = vector.shape_cast %202 : vector<8x1xf32> to vector<8x1xf32>
    %204 = vector.broadcast %203 : vector<8x1xf32> to vector<8x8xf32>
    %205 = vector.broadcast %cst_41 : f32 to vector<8x8xf32>
    %206 = arith.select %19, %204, %205 : vector<8x8xi1>, vector<8x8xf32>
    %207 = arith.addf %201, %206 : vector<8x8xf32>
    %208 = vector.extract_strided_slice %182 {offsets = [0, 4], sizes = [8, 1], strides = [1, 1]} : vector<8x17xf32> to vector<8x1xf32>
    %cst_42 = arith.constant 0.000000e+00 : f32
    %209 = vector.shape_cast %208 : vector<8x1xf32> to vector<8x1xf32>
    %210 = vector.broadcast %209 : vector<8x1xf32> to vector<8x8xf32>
    %211 = vector.broadcast %cst_42 : f32 to vector<8x8xf32>
    %212 = arith.select %21, %210, %211 : vector<8x8xi1>, vector<8x8xf32>
    %213 = arith.addf %207, %212 : vector<8x8xf32>
    %214 = vector.extract_strided_slice %182 {offsets = [0, 5], sizes = [8, 1], strides = [1, 1]} : vector<8x17xf32> to vector<8x1xf32>
    %cst_43 = arith.constant 0.000000e+00 : f32
    %215 = vector.shape_cast %214 : vector<8x1xf32> to vector<8x1xf32>
    %216 = vector.broadcast %215 : vector<8x1xf32> to vector<8x8xf32>
    %217 = vector.broadcast %cst_43 : f32 to vector<8x8xf32>
    %218 = arith.select %23, %216, %217 : vector<8x8xi1>, vector<8x8xf32>
    %219 = arith.addf %213, %218 : vector<8x8xf32>
    %220 = vector.extract_strided_slice %182 {offsets = [0, 6], sizes = [8, 1], strides = [1, 1]} : vector<8x17xf32> to vector<8x1xf32>
    %cst_44 = arith.constant 0.000000e+00 : f32
    %221 = vector.shape_cast %220 : vector<8x1xf32> to vector<8x1xf32>
    %222 = vector.broadcast %221 : vector<8x1xf32> to vector<8x8xf32>
    %223 = vector.broadcast %cst_44 : f32 to vector<8x8xf32>
    %224 = arith.select %25, %222, %223 : vector<8x8xi1>, vector<8x8xf32>
    %225 = arith.addf %219, %224 : vector<8x8xf32>
    %226 = vector.extract_strided_slice %182 {offsets = [0, 7], sizes = [8, 1], strides = [1, 1]} : vector<8x17xf32> to vector<8x1xf32>
    %cst_45 = arith.constant 0.000000e+00 : f32
    %227 = vector.shape_cast %226 : vector<8x1xf32> to vector<8x1xf32>
    %228 = vector.broadcast %227 : vector<8x1xf32> to vector<8x8xf32>
    %229 = vector.broadcast %cst_45 : f32 to vector<8x8xf32>
    %230 = arith.select %27, %228, %229 : vector<8x8xi1>, vector<8x8xf32>
    %231 = arith.addf %225, %230 : vector<8x8xf32>
    %232 = vector.extract_strided_slice %182 {offsets = [0, 8], sizes = [8, 1], strides = [1, 1]} : vector<8x17xf32> to vector<8x1xf32>
    %cst_46 = arith.constant 0.000000e+00 : f32
    %233 = vector.shape_cast %232 : vector<8x1xf32> to vector<8x1xf32>
    %234 = vector.broadcast %233 : vector<8x1xf32> to vector<8x8xf32>
    %235 = vector.broadcast %cst_46 : f32 to vector<8x8xf32>
    %236 = arith.select %29, %234, %235 : vector<8x8xi1>, vector<8x8xf32>
    %237 = arith.addf %231, %236 : vector<8x8xf32>
    %238 = vector.extract_strided_slice %182 {offsets = [0, 9], sizes = [8, 1], strides = [1, 1]} : vector<8x17xf32> to vector<8x1xf32>
    %cst_47 = arith.constant 0.000000e+00 : f32
    %239 = vector.shape_cast %238 : vector<8x1xf32> to vector<8x1xf32>
    %240 = vector.broadcast %239 : vector<8x1xf32> to vector<8x8xf32>
    %241 = vector.broadcast %cst_47 : f32 to vector<8x8xf32>
    %242 = arith.select %31, %240, %241 : vector<8x8xi1>, vector<8x8xf32>
    %243 = arith.addf %237, %242 : vector<8x8xf32>
    %244 = vector.extract_strided_slice %182 {offsets = [0, 10], sizes = [8, 1], strides = [1, 1]} : vector<8x17xf32> to vector<8x1xf32>
    %cst_48 = arith.constant 0.000000e+00 : f32
    %245 = vector.shape_cast %244 : vector<8x1xf32> to vector<8x1xf32>
    %246 = vector.broadcast %245 : vector<8x1xf32> to vector<8x8xf32>
    %247 = vector.broadcast %cst_48 : f32 to vector<8x8xf32>
    %248 = arith.select %33, %246, %247 : vector<8x8xi1>, vector<8x8xf32>
    %249 = arith.addf %243, %248 : vector<8x8xf32>
    %250 = vector.extract_strided_slice %182 {offsets = [0, 11], sizes = [8, 1], strides = [1, 1]} : vector<8x17xf32> to vector<8x1xf32>
    %cst_49 = arith.constant 0.000000e+00 : f32
    %251 = vector.shape_cast %250 : vector<8x1xf32> to vector<8x1xf32>
    %252 = vector.broadcast %251 : vector<8x1xf32> to vector<8x8xf32>
    %253 = vector.broadcast %cst_49 : f32 to vector<8x8xf32>
    %254 = arith.select %35, %252, %253 : vector<8x8xi1>, vector<8x8xf32>
    %255 = arith.addf %249, %254 : vector<8x8xf32>
    %256 = vector.extract_strided_slice %182 {offsets = [0, 12], sizes = [8, 1], strides = [1, 1]} : vector<8x17xf32> to vector<8x1xf32>
    %cst_50 = arith.constant 0.000000e+00 : f32
    %257 = vector.shape_cast %256 : vector<8x1xf32> to vector<8x1xf32>
    %258 = vector.broadcast %257 : vector<8x1xf32> to vector<8x8xf32>
    %259 = vector.broadcast %cst_50 : f32 to vector<8x8xf32>
    %260 = arith.select %37, %258, %259 : vector<8x8xi1>, vector<8x8xf32>
    %261 = arith.addf %255, %260 : vector<8x8xf32>
    %262 = vector.extract_strided_slice %182 {offsets = [0, 13], sizes = [8, 1], strides = [1, 1]} : vector<8x17xf32> to vector<8x1xf32>
    %cst_51 = arith.constant 0.000000e+00 : f32
    %263 = vector.shape_cast %262 : vector<8x1xf32> to vector<8x1xf32>
    %264 = vector.broadcast %263 : vector<8x1xf32> to vector<8x8xf32>
    %265 = vector.broadcast %cst_51 : f32 to vector<8x8xf32>
    %266 = arith.select %39, %264, %265 : vector<8x8xi1>, vector<8x8xf32>
    %267 = arith.addf %261, %266 : vector<8x8xf32>
    %268 = vector.extract_strided_slice %182 {offsets = [0, 14], sizes = [8, 1], strides = [1, 1]} : vector<8x17xf32> to vector<8x1xf32>
    %cst_52 = arith.constant 0.000000e+00 : f32
    %269 = vector.shape_cast %268 : vector<8x1xf32> to vector<8x1xf32>
    %270 = vector.broadcast %269 : vector<8x1xf32> to vector<8x8xf32>
    %271 = vector.broadcast %cst_52 : f32 to vector<8x8xf32>
    %272 = arith.select %41, %270, %271 : vector<8x8xi1>, vector<8x8xf32>
    %273 = arith.addf %267, %272 : vector<8x8xf32>
    %274 = vector.extract_strided_slice %182 {offsets = [0, 15], sizes = [8, 1], strides = [1, 1]} : vector<8x17xf32> to vector<8x1xf32>
    %cst_53 = arith.constant 0.000000e+00 : f32
    %275 = vector.shape_cast %274 : vector<8x1xf32> to vector<8x1xf32>
    %276 = vector.broadcast %275 : vector<8x1xf32> to vector<8x8xf32>
    %277 = vector.broadcast %cst_53 : f32 to vector<8x8xf32>
    %278 = arith.select %43, %276, %277 : vector<8x8xi1>, vector<8x8xf32>
    %279 = arith.addf %273, %278 : vector<8x8xf32>
    %280 = vector.extract_strided_slice %182 {offsets = [0, 16], sizes = [8, 1], strides = [1, 1]} : vector<8x17xf32> to vector<8x1xf32>
    %cst_54 = arith.constant 0.000000e+00 : f32
    %281 = vector.shape_cast %280 : vector<8x1xf32> to vector<8x1xf32>
    %282 = vector.broadcast %281 : vector<8x1xf32> to vector<8x8xf32>
    %283 = vector.broadcast %cst_54 : f32 to vector<8x8xf32>
    %284 = arith.select %45, %282, %283 : vector<8x8xi1>, vector<8x8xf32>
    %285 = arith.addf %279, %284 : vector<8x8xf32>
    %286 = arith.addf %181, %285 : vector<8x8xf32>
    %cst_55 = arith.constant dense<0xFF800000> : vector<8xf32>
    %287 = vector.multi_reduction <maximumf>, %286, %cst_55 [1] : vector<8x8xf32> to vector<8xf32>
    %288 = vector.shape_cast %287 : vector<8xf32> to vector<8x1xf32>
    %289 = vector.broadcast %288 : vector<8x1xf32> to vector<8x8xf32>
    %290 = arith.subf %286, %289 : vector<8x8xf32>
    %291 = math.exp %290 : vector<8x8xf32>
    %cst_56 = arith.constant dense<0.000000e+00> : vector<8xf32>
    %292 = vector.multi_reduction <add>, %291, %cst_56 [1] : vector<8x8xf32> to vector<8xf32>
    %293 = vector.shape_cast %292 : vector<8xf32> to vector<8x1xf32>
    %294 = tpu.reciprocal %293 {approx = true} : vector<8x1xf32> -> vector<8x1xf32>
    %295 = arith.mulf %2, %294 : vector<8x1xf32>
    %296 = vector.broadcast %295 : vector<8x1xf32> to vector<8x8xf32>
    %297 = arith.mulf %291, %296 : vector<8x8xf32>
    %cst_57 = arith.constant dense<0.000000e+00> : vector<8xf32>
    %298 = vector.multi_reduction <add>, %297, %cst_57 [0] : vector<8x8xf32> to vector<8xf32>
    %299 = vector.shape_cast %298 : vector<8xf32> to vector<1x8xf32>
    %cst_58 = arith.constant dense<0.000000e+00> : vector<1x16xf32>
    %300 = tpu.matmul %299, %178, %cst_58 {dimension_numbers = #tpu.dot_dimension_numbers<[1], [0], [0], [1], [0, 0, 1, 1], [], []>} : vector<1x8xf32>, vector<8x16xf32>, vector<1x16xf32> -> vector<1x16xf32>
    %301 = arith.addf %175, %300 : vector<1x16xf32>
    %302 = vector.extract_strided_slice %48 {offsets = [0, 128], sizes = [8, 16], strides = [1, 1]} : vector<8x256xf32> to vector<8x16xf32>
    %303 = vector.extract_strided_slice %48 {offsets = [0, 144], sizes = [8, 16], strides = [1, 1]} : vector<8x256xf32> to vector<8x16xf32>
    %304 = vector.extract_strided_slice %48 {offsets = [0, 160], sizes = [8, 16], strides = [1, 1]} : vector<8x256xf32> to vector<8x16xf32>
    %305 = vector.extract_strided_slice %48 {offsets = [0, 176], sizes = [8, 16], strides = [1, 1]} : vector<8x256xf32> to vector<8x16xf32>
    %306 = tpu.transpose %303, [1, 0] : vector<8x16xf32> -> vector<16x8xf32>
    %cst_59 = arith.constant dense<0.000000e+00> : vector<8x8xf32>
    %307 = tpu.matmul %302, %306, %cst_59 {dimension_numbers = #tpu.dot_dimension_numbers<[1], [0], [0], [1], [0, 0, 1, 1], [], []>} : vector<8x16xf32>, vector<16x8xf32>, vector<8x8xf32> -> vector<8x8xf32>
    %cst_60 = arith.constant dense<0.000000e+00> : vector<8x17xf32>
    %308 = tpu.matmul %305, %1, %cst_60 {dimension_numbers = #tpu.dot_dimension_numbers<[1], [0], [0], [1], [0, 0, 1, 1], [], []>} : vector<8x16xf32>, vector<16x17xf32>, vector<8x17xf32> -> vector<8x17xf32>
    %cst_61 = arith.constant 0.000000e+00 : f32
    %309 = vector.broadcast %cst_61 : f32 to vector<8x8xf32>
    %310 = vector.extract_strided_slice %308 {offsets = [0, 0], sizes = [8, 1], strides = [1, 1]} : vector<8x17xf32> to vector<8x1xf32>
    %cst_62 = arith.constant 0.000000e+00 : f32
    %311 = vector.shape_cast %310 : vector<8x1xf32> to vector<8x1xf32>
    %312 = vector.broadcast %311 : vector<8x1xf32> to vector<8x8xf32>
    %313 = vector.broadcast %cst_62 : f32 to vector<8x8xf32>
    %314 = arith.select %13, %312, %313 : vector<8x8xi1>, vector<8x8xf32>
    %315 = arith.addf %309, %314 : vector<8x8xf32>
    %316 = vector.extract_strided_slice %308 {offsets = [0, 1], sizes = [8, 1], strides = [1, 1]} : vector<8x17xf32> to vector<8x1xf32>
    %cst_63 = arith.constant 0.000000e+00 : f32
    %317 = vector.shape_cast %316 : vector<8x1xf32> to vector<8x1xf32>
    %318 = vector.broadcast %317 : vector<8x1xf32> to vector<8x8xf32>
    %319 = vector.broadcast %cst_63 : f32 to vector<8x8xf32>
    %320 = arith.select %15, %318, %319 : vector<8x8xi1>, vector<8x8xf32>
    %321 = arith.addf %315, %320 : vector<8x8xf32>
    %322 = vector.extract_strided_slice %308 {offsets = [0, 2], sizes = [8, 1], strides = [1, 1]} : vector<8x17xf32> to vector<8x1xf32>
    %cst_64 = arith.constant 0.000000e+00 : f32
    %323 = vector.shape_cast %322 : vector<8x1xf32> to vector<8x1xf32>
    %324 = vector.broadcast %323 : vector<8x1xf32> to vector<8x8xf32>
    %325 = vector.broadcast %cst_64 : f32 to vector<8x8xf32>
    %326 = arith.select %17, %324, %325 : vector<8x8xi1>, vector<8x8xf32>
    %327 = arith.addf %321, %326 : vector<8x8xf32>
    %328 = vector.extract_strided_slice %308 {offsets = [0, 3], sizes = [8, 1], strides = [1, 1]} : vector<8x17xf32> to vector<8x1xf32>
    %cst_65 = arith.constant 0.000000e+00 : f32
    %329 = vector.shape_cast %328 : vector<8x1xf32> to vector<8x1xf32>
    %330 = vector.broadcast %329 : vector<8x1xf32> to vector<8x8xf32>
    %331 = vector.broadcast %cst_65 : f32 to vector<8x8xf32>
    %332 = arith.select %19, %330, %331 : vector<8x8xi1>, vector<8x8xf32>
    %333 = arith.addf %327, %332 : vector<8x8xf32>
    %334 = vector.extract_strided_slice %308 {offsets = [0, 4], sizes = [8, 1], strides = [1, 1]} : vector<8x17xf32> to vector<8x1xf32>
    %cst_66 = arith.constant 0.000000e+00 : f32
    %335 = vector.shape_cast %334 : vector<8x1xf32> to vector<8x1xf32>
    %336 = vector.broadcast %335 : vector<8x1xf32> to vector<8x8xf32>
    %337 = vector.broadcast %cst_66 : f32 to vector<8x8xf32>
    %338 = arith.select %21, %336, %337 : vector<8x8xi1>, vector<8x8xf32>
    %339 = arith.addf %333, %338 : vector<8x8xf32>
    %340 = vector.extract_strided_slice %308 {offsets = [0, 5], sizes = [8, 1], strides = [1, 1]} : vector<8x17xf32> to vector<8x1xf32>
    %cst_67 = arith.constant 0.000000e+00 : f32
    %341 = vector.shape_cast %340 : vector<8x1xf32> to vector<8x1xf32>
    %342 = vector.broadcast %341 : vector<8x1xf32> to vector<8x8xf32>
    %343 = vector.broadcast %cst_67 : f32 to vector<8x8xf32>
    %344 = arith.select %23, %342, %343 : vector<8x8xi1>, vector<8x8xf32>
    %345 = arith.addf %339, %344 : vector<8x8xf32>
    %346 = vector.extract_strided_slice %308 {offsets = [0, 6], sizes = [8, 1], strides = [1, 1]} : vector<8x17xf32> to vector<8x1xf32>
    %cst_68 = arith.constant 0.000000e+00 : f32
    %347 = vector.shape_cast %346 : vector<8x1xf32> to vector<8x1xf32>
    %348 = vector.broadcast %347 : vector<8x1xf32> to vector<8x8xf32>
    %349 = vector.broadcast %cst_68 : f32 to vector<8x8xf32>
    %350 = arith.select %25, %348, %349 : vector<8x8xi1>, vector<8x8xf32>
    %351 = arith.addf %345, %350 : vector<8x8xf32>
    %352 = vector.extract_strided_slice %308 {offsets = [0, 7], sizes = [8, 1], strides = [1, 1]} : vector<8x17xf32> to vector<8x1xf32>
    %cst_69 = arith.constant 0.000000e+00 : f32
    %353 = vector.shape_cast %352 : vector<8x1xf32> to vector<8x1xf32>
    %354 = vector.broadcast %353 : vector<8x1xf32> to vector<8x8xf32>
    %355 = vector.broadcast %cst_69 : f32 to vector<8x8xf32>
    %356 = arith.select %27, %354, %355 : vector<8x8xi1>, vector<8x8xf32>
    %357 = arith.addf %351, %356 : vector<8x8xf32>
    %358 = vector.extract_strided_slice %308 {offsets = [0, 8], sizes = [8, 1], strides = [1, 1]} : vector<8x17xf32> to vector<8x1xf32>
    %cst_70 = arith.constant 0.000000e+00 : f32
    %359 = vector.shape_cast %358 : vector<8x1xf32> to vector<8x1xf32>
    %360 = vector.broadcast %359 : vector<8x1xf32> to vector<8x8xf32>
    %361 = vector.broadcast %cst_70 : f32 to vector<8x8xf32>
    %362 = arith.select %29, %360, %361 : vector<8x8xi1>, vector<8x8xf32>
    %363 = arith.addf %357, %362 : vector<8x8xf32>
    %364 = vector.extract_strided_slice %308 {offsets = [0, 9], sizes = [8, 1], strides = [1, 1]} : vector<8x17xf32> to vector<8x1xf32>
    %cst_71 = arith.constant 0.000000e+00 : f32
    %365 = vector.shape_cast %364 : vector<8x1xf32> to vector<8x1xf32>
    %366 = vector.broadcast %365 : vector<8x1xf32> to vector<8x8xf32>
    %367 = vector.broadcast %cst_71 : f32 to vector<8x8xf32>
    %368 = arith.select %31, %366, %367 : vector<8x8xi1>, vector<8x8xf32>
    %369 = arith.addf %363, %368 : vector<8x8xf32>
    %370 = vector.extract_strided_slice %308 {offsets = [0, 10], sizes = [8, 1], strides = [1, 1]} : vector<8x17xf32> to vector<8x1xf32>
    %cst_72 = arith.constant 0.000000e+00 : f32
    %371 = vector.shape_cast %370 : vector<8x1xf32> to vector<8x1xf32>
    %372 = vector.broadcast %371 : vector<8x1xf32> to vector<8x8xf32>
    %373 = vector.broadcast %cst_72 : f32 to vector<8x8xf32>
    %374 = arith.select %33, %372, %373 : vector<8x8xi1>, vector<8x8xf32>
    %375 = arith.addf %369, %374 : vector<8x8xf32>
    %376 = vector.extract_strided_slice %308 {offsets = [0, 11], sizes = [8, 1], strides = [1, 1]} : vector<8x17xf32> to vector<8x1xf32>
    %cst_73 = arith.constant 0.000000e+00 : f32
    %377 = vector.shape_cast %376 : vector<8x1xf32> to vector<8x1xf32>
    %378 = vector.broadcast %377 : vector<8x1xf32> to vector<8x8xf32>
    %379 = vector.broadcast %cst_73 : f32 to vector<8x8xf32>
    %380 = arith.select %35, %378, %379 : vector<8x8xi1>, vector<8x8xf32>
    %381 = arith.addf %375, %380 : vector<8x8xf32>
    %382 = vector.extract_strided_slice %308 {offsets = [0, 12], sizes = [8, 1], strides = [1, 1]} : vector<8x17xf32> to vector<8x1xf32>
    %cst_74 = arith.constant 0.000000e+00 : f32
    %383 = vector.shape_cast %382 : vector<8x1xf32> to vector<8x1xf32>
    %384 = vector.broadcast %383 : vector<8x1xf32> to vector<8x8xf32>
    %385 = vector.broadcast %cst_74 : f32 to vector<8x8xf32>
    %386 = arith.select %37, %384, %385 : vector<8x8xi1>, vector<8x8xf32>
    %387 = arith.addf %381, %386 : vector<8x8xf32>
    %388 = vector.extract_strided_slice %308 {offsets = [0, 13], sizes = [8, 1], strides = [1, 1]} : vector<8x17xf32> to vector<8x1xf32>
    %cst_75 = arith.constant 0.000000e+00 : f32
    %389 = vector.shape_cast %388 : vector<8x1xf32> to vector<8x1xf32>
    %390 = vector.broadcast %389 : vector<8x1xf32> to vector<8x8xf32>
    %391 = vector.broadcast %cst_75 : f32 to vector<8x8xf32>
    %392 = arith.select %39, %390, %391 : vector<8x8xi1>, vector<8x8xf32>
    %393 = arith.addf %387, %392 : vector<8x8xf32>
    %394 = vector.extract_strided_slice %308 {offsets = [0, 14], sizes = [8, 1], strides = [1, 1]} : vector<8x17xf32> to vector<8x1xf32>
    %cst_76 = arith.constant 0.000000e+00 : f32
    %395 = vector.shape_cast %394 : vector<8x1xf32> to vector<8x1xf32>
    %396 = vector.broadcast %395 : vector<8x1xf32> to vector<8x8xf32>
    %397 = vector.broadcast %cst_76 : f32 to vector<8x8xf32>
    %398 = arith.select %41, %396, %397 : vector<8x8xi1>, vector<8x8xf32>
    %399 = arith.addf %393, %398 : vector<8x8xf32>
    %400 = vector.extract_strided_slice %308 {offsets = [0, 15], sizes = [8, 1], strides = [1, 1]} : vector<8x17xf32> to vector<8x1xf32>
    %cst_77 = arith.constant 0.000000e+00 : f32
    %401 = vector.shape_cast %400 : vector<8x1xf32> to vector<8x1xf32>
    %402 = vector.broadcast %401 : vector<8x1xf32> to vector<8x8xf32>
    %403 = vector.broadcast %cst_77 : f32 to vector<8x8xf32>
    %404 = arith.select %43, %402, %403 : vector<8x8xi1>, vector<8x8xf32>
    %405 = arith.addf %399, %404 : vector<8x8xf32>
    %406 = vector.extract_strided_slice %308 {offsets = [0, 16], sizes = [8, 1], strides = [1, 1]} : vector<8x17xf32> to vector<8x1xf32>
    %cst_78 = arith.constant 0.000000e+00 : f32
    %407 = vector.shape_cast %406 : vector<8x1xf32> to vector<8x1xf32>
    %408 = vector.broadcast %407 : vector<8x1xf32> to vector<8x8xf32>
    %409 = vector.broadcast %cst_78 : f32 to vector<8x8xf32>
    %410 = arith.select %45, %408, %409 : vector<8x8xi1>, vector<8x8xf32>
    %411 = arith.addf %405, %410 : vector<8x8xf32>
    %412 = arith.addf %307, %411 : vector<8x8xf32>
    %cst_79 = arith.constant dense<0xFF800000> : vector<8xf32>
    %413 = vector.multi_reduction <maximumf>, %412, %cst_79 [1] : vector<8x8xf32> to vector<8xf32>
    %414 = vector.shape_cast %413 : vector<8xf32> to vector<8x1xf32>
    %415 = vector.broadcast %414 : vector<8x1xf32> to vector<8x8xf32>
    %416 = arith.subf %412, %415 : vector<8x8xf32>
    %417 = math.exp %416 : vector<8x8xf32>
    %cst_80 = arith.constant dense<0.000000e+00> : vector<8xf32>
    %418 = vector.multi_reduction <add>, %417, %cst_80 [1] : vector<8x8xf32> to vector<8xf32>
    %419 = vector.shape_cast %418 : vector<8xf32> to vector<8x1xf32>
    %420 = tpu.reciprocal %419 {approx = true} : vector<8x1xf32> -> vector<8x1xf32>
    %421 = arith.mulf %2, %420 : vector<8x1xf32>
    %422 = vector.broadcast %421 : vector<8x1xf32> to vector<8x8xf32>
    %423 = arith.mulf %417, %422 : vector<8x8xf32>
    %cst_81 = arith.constant dense<0.000000e+00> : vector<8xf32>
    %424 = vector.multi_reduction <add>, %423, %cst_81 [0] : vector<8x8xf32> to vector<8xf32>
    %425 = vector.shape_cast %424 : vector<8xf32> to vector<1x8xf32>
    %cst_82 = arith.constant dense<0.000000e+00> : vector<1x16xf32>
    %426 = tpu.matmul %425, %304, %cst_82 {dimension_numbers = #tpu.dot_dimension_numbers<[1], [0], [0], [1], [0, 0, 1, 1], [], []>} : vector<1x8xf32>, vector<8x16xf32>, vector<1x16xf32> -> vector<1x16xf32>
    %427 = arith.addf %301, %426 : vector<1x16xf32>
    %428 = vector.extract_strided_slice %48 {offsets = [0, 192], sizes = [8, 16], strides = [1, 1]} : vector<8x256xf32> to vector<8x16xf32>
    %429 = vector.extract_strided_slice %48 {offsets = [0, 208], sizes = [8, 16], strides = [1, 1]} : vector<8x256xf32> to vector<8x16xf32>
    %430 = vector.extract_strided_slice %48 {offsets = [0, 224], sizes = [8, 16], strides = [1, 1]} : vector<8x256xf32> to vector<8x16xf32>
    %431 = vector.extract_strided_slice %48 {offsets = [0, 240], sizes = [8, 16], strides = [1, 1]} : vector<8x256xf32> to vector<8x16xf32>
    %432 = tpu.transpose %429, [1, 0] : vector<8x16xf32> -> vector<16x8xf32>
    %cst_83 = arith.constant dense<0.000000e+00> : vector<8x8xf32>
    %433 = tpu.matmul %428, %432, %cst_83 {dimension_numbers = #tpu.dot_dimension_numbers<[1], [0], [0], [1], [0, 0, 1, 1], [], []>} : vector<8x16xf32>, vector<16x8xf32>, vector<8x8xf32> -> vector<8x8xf32>
    %cst_84 = arith.constant dense<0.000000e+00> : vector<8x17xf32>
    %434 = tpu.matmul %431, %1, %cst_84 {dimension_numbers = #tpu.dot_dimension_numbers<[1], [0], [0], [1], [0, 0, 1, 1], [], []>} : vector<8x16xf32>, vector<16x17xf32>, vector<8x17xf32> -> vector<8x17xf32>
    %cst_85 = arith.constant 0.000000e+00 : f32
    %435 = vector.broadcast %cst_85 : f32 to vector<8x8xf32>
    %436 = vector.extract_strided_slice %434 {offsets = [0, 0], sizes = [8, 1], strides = [1, 1]} : vector<8x17xf32> to vector<8x1xf32>
    %cst_86 = arith.constant 0.000000e+00 : f32
    %437 = vector.shape_cast %436 : vector<8x1xf32> to vector<8x1xf32>
    %438 = vector.broadcast %437 : vector<8x1xf32> to vector<8x8xf32>
    %439 = vector.broadcast %cst_86 : f32 to vector<8x8xf32>
    %440 = arith.select %13, %438, %439 : vector<8x8xi1>, vector<8x8xf32>
    %441 = arith.addf %435, %440 : vector<8x8xf32>
    %442 = vector.extract_strided_slice %434 {offsets = [0, 1], sizes = [8, 1], strides = [1, 1]} : vector<8x17xf32> to vector<8x1xf32>
    %cst_87 = arith.constant 0.000000e+00 : f32
    %443 = vector.shape_cast %442 : vector<8x1xf32> to vector<8x1xf32>
    %444 = vector.broadcast %443 : vector<8x1xf32> to vector<8x8xf32>
    %445 = vector.broadcast %cst_87 : f32 to vector<8x8xf32>
    %446 = arith.select %15, %444, %445 : vector<8x8xi1>, vector<8x8xf32>
    %447 = arith.addf %441, %446 : vector<8x8xf32>
    %448 = vector.extract_strided_slice %434 {offsets = [0, 2], sizes = [8, 1], strides = [1, 1]} : vector<8x17xf32> to vector<8x1xf32>
    %cst_88 = arith.constant 0.000000e+00 : f32
    %449 = vector.shape_cast %448 : vector<8x1xf32> to vector<8x1xf32>
    %450 = vector.broadcast %449 : vector<8x1xf32> to vector<8x8xf32>
    %451 = vector.broadcast %cst_88 : f32 to vector<8x8xf32>
    %452 = arith.select %17, %450, %451 : vector<8x8xi1>, vector<8x8xf32>
    %453 = arith.addf %447, %452 : vector<8x8xf32>
    %454 = vector.extract_strided_slice %434 {offsets = [0, 3], sizes = [8, 1], strides = [1, 1]} : vector<8x17xf32> to vector<8x1xf32>
    %cst_89 = arith.constant 0.000000e+00 : f32
    %455 = vector.shape_cast %454 : vector<8x1xf32> to vector<8x1xf32>
    %456 = vector.broadcast %455 : vector<8x1xf32> to vector<8x8xf32>
    %457 = vector.broadcast %cst_89 : f32 to vector<8x8xf32>
    %458 = arith.select %19, %456, %457 : vector<8x8xi1>, vector<8x8xf32>
    %459 = arith.addf %453, %458 : vector<8x8xf32>
    %460 = vector.extract_strided_slice %434 {offsets = [0, 4], sizes = [8, 1], strides = [1, 1]} : vector<8x17xf32> to vector<8x1xf32>
    %cst_90 = arith.constant 0.000000e+00 : f32
    %461 = vector.shape_cast %460 : vector<8x1xf32> to vector<8x1xf32>
    %462 = vector.broadcast %461 : vector<8x1xf32> to vector<8x8xf32>
    %463 = vector.broadcast %cst_90 : f32 to vector<8x8xf32>
    %464 = arith.select %21, %462, %463 : vector<8x8xi1>, vector<8x8xf32>
    %465 = arith.addf %459, %464 : vector<8x8xf32>
    %466 = vector.extract_strided_slice %434 {offsets = [0, 5], sizes = [8, 1], strides = [1, 1]} : vector<8x17xf32> to vector<8x1xf32>
    %cst_91 = arith.constant 0.000000e+00 : f32
    %467 = vector.shape_cast %466 : vector<8x1xf32> to vector<8x1xf32>
    %468 = vector.broadcast %467 : vector<8x1xf32> to vector<8x8xf32>
    %469 = vector.broadcast %cst_91 : f32 to vector<8x8xf32>
    %470 = arith.select %23, %468, %469 : vector<8x8xi1>, vector<8x8xf32>
    %471 = arith.addf %465, %470 : vector<8x8xf32>
    %472 = vector.extract_strided_slice %434 {offsets = [0, 6], sizes = [8, 1], strides = [1, 1]} : vector<8x17xf32> to vector<8x1xf32>
    %cst_92 = arith.constant 0.000000e+00 : f32
    %473 = vector.shape_cast %472 : vector<8x1xf32> to vector<8x1xf32>
    %474 = vector.broadcast %473 : vector<8x1xf32> to vector<8x8xf32>
    %475 = vector.broadcast %cst_92 : f32 to vector<8x8xf32>
    %476 = arith.select %25, %474, %475 : vector<8x8xi1>, vector<8x8xf32>
    %477 = arith.addf %471, %476 : vector<8x8xf32>
    %478 = vector.extract_strided_slice %434 {offsets = [0, 7], sizes = [8, 1], strides = [1, 1]} : vector<8x17xf32> to vector<8x1xf32>
    %cst_93 = arith.constant 0.000000e+00 : f32
    %479 = vector.shape_cast %478 : vector<8x1xf32> to vector<8x1xf32>
    %480 = vector.broadcast %479 : vector<8x1xf32> to vector<8x8xf32>
    %481 = vector.broadcast %cst_93 : f32 to vector<8x8xf32>
    %482 = arith.select %27, %480, %481 : vector<8x8xi1>, vector<8x8xf32>
    %483 = arith.addf %477, %482 : vector<8x8xf32>
    %484 = vector.extract_strided_slice %434 {offsets = [0, 8], sizes = [8, 1], strides = [1, 1]} : vector<8x17xf32> to vector<8x1xf32>
    %cst_94 = arith.constant 0.000000e+00 : f32
    %485 = vector.shape_cast %484 : vector<8x1xf32> to vector<8x1xf32>
    %486 = vector.broadcast %485 : vector<8x1xf32> to vector<8x8xf32>
    %487 = vector.broadcast %cst_94 : f32 to vector<8x8xf32>
    %488 = arith.select %29, %486, %487 : vector<8x8xi1>, vector<8x8xf32>
    %489 = arith.addf %483, %488 : vector<8x8xf32>
    %490 = vector.extract_strided_slice %434 {offsets = [0, 9], sizes = [8, 1], strides = [1, 1]} : vector<8x17xf32> to vector<8x1xf32>
    %cst_95 = arith.constant 0.000000e+00 : f32
    %491 = vector.shape_cast %490 : vector<8x1xf32> to vector<8x1xf32>
    %492 = vector.broadcast %491 : vector<8x1xf32> to vector<8x8xf32>
    %493 = vector.broadcast %cst_95 : f32 to vector<8x8xf32>
    %494 = arith.select %31, %492, %493 : vector<8x8xi1>, vector<8x8xf32>
    %495 = arith.addf %489, %494 : vector<8x8xf32>
    %496 = vector.extract_strided_slice %434 {offsets = [0, 10], sizes = [8, 1], strides = [1, 1]} : vector<8x17xf32> to vector<8x1xf32>
    %cst_96 = arith.constant 0.000000e+00 : f32
    %497 = vector.shape_cast %496 : vector<8x1xf32> to vector<8x1xf32>
    %498 = vector.broadcast %497 : vector<8x1xf32> to vector<8x8xf32>
    %499 = vector.broadcast %cst_96 : f32 to vector<8x8xf32>
    %500 = arith.select %33, %498, %499 : vector<8x8xi1>, vector<8x8xf32>
    %501 = arith.addf %495, %500 : vector<8x8xf32>
    %502 = vector.extract_strided_slice %434 {offsets = [0, 11], sizes = [8, 1], strides = [1, 1]} : vector<8x17xf32> to vector<8x1xf32>
    %cst_97 = arith.constant 0.000000e+00 : f32
    %503 = vector.shape_cast %502 : vector<8x1xf32> to vector<8x1xf32>
    %504 = vector.broadcast %503 : vector<8x1xf32> to vector<8x8xf32>
    %505 = vector.broadcast %cst_97 : f32 to vector<8x8xf32>
    %506 = arith.select %35, %504, %505 : vector<8x8xi1>, vector<8x8xf32>
    %507 = arith.addf %501, %506 : vector<8x8xf32>
    %508 = vector.extract_strided_slice %434 {offsets = [0, 12], sizes = [8, 1], strides = [1, 1]} : vector<8x17xf32> to vector<8x1xf32>
    %cst_98 = arith.constant 0.000000e+00 : f32
    %509 = vector.shape_cast %508 : vector<8x1xf32> to vector<8x1xf32>
    %510 = vector.broadcast %509 : vector<8x1xf32> to vector<8x8xf32>
    %511 = vector.broadcast %cst_98 : f32 to vector<8x8xf32>
    %512 = arith.select %37, %510, %511 : vector<8x8xi1>, vector<8x8xf32>
    %513 = arith.addf %507, %512 : vector<8x8xf32>
    %514 = vector.extract_strided_slice %434 {offsets = [0, 13], sizes = [8, 1], strides = [1, 1]} : vector<8x17xf32> to vector<8x1xf32>
    %cst_99 = arith.constant 0.000000e+00 : f32
    %515 = vector.shape_cast %514 : vector<8x1xf32> to vector<8x1xf32>
    %516 = vector.broadcast %515 : vector<8x1xf32> to vector<8x8xf32>
    %517 = vector.broadcast %cst_99 : f32 to vector<8x8xf32>
    %518 = arith.select %39, %516, %517 : vector<8x8xi1>, vector<8x8xf32>
    %519 = arith.addf %513, %518 : vector<8x8xf32>
    %520 = vector.extract_strided_slice %434 {offsets = [0, 14], sizes = [8, 1], strides = [1, 1]} : vector<8x17xf32> to vector<8x1xf32>
    %cst_100 = arith.constant 0.000000e+00 : f32
    %521 = vector.shape_cast %520 : vector<8x1xf32> to vector<8x1xf32>
    %522 = vector.broadcast %521 : vector<8x1xf32> to vector<8x8xf32>
    %523 = vector.broadcast %cst_100 : f32 to vector<8x8xf32>
    %524 = arith.select %41, %522, %523 : vector<8x8xi1>, vector<8x8xf32>
    %525 = arith.addf %519, %524 : vector<8x8xf32>
    %526 = vector.extract_strided_slice %434 {offsets = [0, 15], sizes = [8, 1], strides = [1, 1]} : vector<8x17xf32> to vector<8x1xf32>
    %cst_101 = arith.constant 0.000000e+00 : f32
    %527 = vector.shape_cast %526 : vector<8x1xf32> to vector<8x1xf32>
    %528 = vector.broadcast %527 : vector<8x1xf32> to vector<8x8xf32>
    %529 = vector.broadcast %cst_101 : f32 to vector<8x8xf32>
    %530 = arith.select %43, %528, %529 : vector<8x8xi1>, vector<8x8xf32>
    %531 = arith.addf %525, %530 : vector<8x8xf32>
    %532 = vector.extract_strided_slice %434 {offsets = [0, 16], sizes = [8, 1], strides = [1, 1]} : vector<8x17xf32> to vector<8x1xf32>
    %cst_102 = arith.constant 0.000000e+00 : f32
    %533 = vector.shape_cast %532 : vector<8x1xf32> to vector<8x1xf32>
    %534 = vector.broadcast %533 : vector<8x1xf32> to vector<8x8xf32>
    %535 = vector.broadcast %cst_102 : f32 to vector<8x8xf32>
    %536 = arith.select %45, %534, %535 : vector<8x8xi1>, vector<8x8xf32>
    %537 = arith.addf %531, %536 : vector<8x8xf32>
    %538 = arith.addf %433, %537 : vector<8x8xf32>
    %cst_103 = arith.constant dense<0xFF800000> : vector<8xf32>
    %539 = vector.multi_reduction <maximumf>, %538, %cst_103 [1] : vector<8x8xf32> to vector<8xf32>
    %540 = vector.shape_cast %539 : vector<8xf32> to vector<8x1xf32>
    %541 = vector.broadcast %540 : vector<8x1xf32> to vector<8x8xf32>
    %542 = arith.subf %538, %541 : vector<8x8xf32>
    %543 = math.exp %542 : vector<8x8xf32>
    %cst_104 = arith.constant dense<0.000000e+00> : vector<8xf32>
    %544 = vector.multi_reduction <add>, %543, %cst_104 [1] : vector<8x8xf32> to vector<8xf32>
    %545 = vector.shape_cast %544 : vector<8xf32> to vector<8x1xf32>
    %546 = tpu.reciprocal %545 {approx = true} : vector<8x1xf32> -> vector<8x1xf32>
    %547 = arith.mulf %2, %546 : vector<8x1xf32>
    %548 = vector.broadcast %547 : vector<8x1xf32> to vector<8x8xf32>
    %549 = arith.mulf %543, %548 : vector<8x8xf32>
    %cst_105 = arith.constant dense<0.000000e+00> : vector<8xf32>
    %550 = vector.multi_reduction <add>, %549, %cst_105 [0] : vector<8x8xf32> to vector<8xf32>
    %551 = vector.shape_cast %550 : vector<8xf32> to vector<1x8xf32>
    %cst_106 = arith.constant dense<0.000000e+00> : vector<1x16xf32>
    %552 = tpu.matmul %551, %430, %cst_106 {dimension_numbers = #tpu.dot_dimension_numbers<[1], [0], [0], [1], [0, 0, 1, 1], [], []>} : vector<1x8xf32>, vector<8x16xf32>, vector<1x16xf32> -> vector<1x16xf32>
    %553 = arith.addf %427, %552 : vector<1x16xf32>
    %c1 = arith.constant 1 : index
    %c0_107 = arith.constant 0 : index
    %c0_108 = arith.constant 0 : index
    %554 = vector.load %arg1[%c1, %c0_107, %c0_108] : memref<2x8x32xf32, #tpu.memory_space<vmem>>, vector<1x8x32xf32>
    %555 = vector.shape_cast %554 : vector<1x8x32xf32> to vector<8x32xf32>
    %cst_109 = arith.constant dense<0.000000e+00> : vector<8x256xf32>
    %556 = tpu.matmul %555, %0, %cst_109 {dimension_numbers = #tpu.dot_dimension_numbers<[1], [0], [0], [1], [0, 0, 1, 1], [], []>} : vector<8x32xf32>, vector<32x256xf32>, vector<8x256xf32> -> vector<8x256xf32>
    %cst_110 = arith.constant 0.000000e+00 : f32
    %557 = vector.broadcast %cst_110 : f32 to vector<1x16xf32>
    %558 = vector.extract_strided_slice %556 {offsets = [0, 0], sizes = [8, 16], strides = [1, 1]} : vector<8x256xf32> to vector<8x16xf32>
    %559 = vector.extract_strided_slice %556 {offsets = [0, 16], sizes = [8, 16], strides = [1, 1]} : vector<8x256xf32> to vector<8x16xf32>
    %560 = vector.extract_strided_slice %556 {offsets = [0, 32], sizes = [8, 16], strides = [1, 1]} : vector<8x256xf32> to vector<8x16xf32>
    %561 = vector.extract_strided_slice %556 {offsets = [0, 48], sizes = [8, 16], strides = [1, 1]} : vector<8x256xf32> to vector<8x16xf32>
    %562 = tpu.transpose %559, [1, 0] : vector<8x16xf32> -> vector<16x8xf32>
    %cst_111 = arith.constant dense<0.000000e+00> : vector<8x8xf32>
    %563 = tpu.matmul %558, %562, %cst_111 {dimension_numbers = #tpu.dot_dimension_numbers<[1], [0], [0], [1], [0, 0, 1, 1], [], []>} : vector<8x16xf32>, vector<16x8xf32>, vector<8x8xf32> -> vector<8x8xf32>
    %cst_112 = arith.constant dense<0.000000e+00> : vector<8x17xf32>
    %564 = tpu.matmul %561, %1, %cst_112 {dimension_numbers = #tpu.dot_dimension_numbers<[1], [0], [0], [1], [0, 0, 1, 1], [], []>} : vector<8x16xf32>, vector<16x17xf32>, vector<8x17xf32> -> vector<8x17xf32>
    %cst_113 = arith.constant 0.000000e+00 : f32
    %565 = vector.broadcast %cst_113 : f32 to vector<8x8xf32>
    %566 = vector.extract_strided_slice %564 {offsets = [0, 0], sizes = [8, 1], strides = [1, 1]} : vector<8x17xf32> to vector<8x1xf32>
    %cst_114 = arith.constant 0.000000e+00 : f32
    %567 = vector.shape_cast %566 : vector<8x1xf32> to vector<8x1xf32>
    %568 = vector.broadcast %567 : vector<8x1xf32> to vector<8x8xf32>
    %569 = vector.broadcast %cst_114 : f32 to vector<8x8xf32>
    %570 = arith.select %13, %568, %569 : vector<8x8xi1>, vector<8x8xf32>
    %571 = arith.addf %565, %570 : vector<8x8xf32>
    %572 = vector.extract_strided_slice %564 {offsets = [0, 1], sizes = [8, 1], strides = [1, 1]} : vector<8x17xf32> to vector<8x1xf32>
    %cst_115 = arith.constant 0.000000e+00 : f32
    %573 = vector.shape_cast %572 : vector<8x1xf32> to vector<8x1xf32>
    %574 = vector.broadcast %573 : vector<8x1xf32> to vector<8x8xf32>
    %575 = vector.broadcast %cst_115 : f32 to vector<8x8xf32>
    %576 = arith.select %15, %574, %575 : vector<8x8xi1>, vector<8x8xf32>
    %577 = arith.addf %571, %576 : vector<8x8xf32>
    %578 = vector.extract_strided_slice %564 {offsets = [0, 2], sizes = [8, 1], strides = [1, 1]} : vector<8x17xf32> to vector<8x1xf32>
    %cst_116 = arith.constant 0.000000e+00 : f32
    %579 = vector.shape_cast %578 : vector<8x1xf32> to vector<8x1xf32>
    %580 = vector.broadcast %579 : vector<8x1xf32> to vector<8x8xf32>
    %581 = vector.broadcast %cst_116 : f32 to vector<8x8xf32>
    %582 = arith.select %17, %580, %581 : vector<8x8xi1>, vector<8x8xf32>
    %583 = arith.addf %577, %582 : vector<8x8xf32>
    %584 = vector.extract_strided_slice %564 {offsets = [0, 3], sizes = [8, 1], strides = [1, 1]} : vector<8x17xf32> to vector<8x1xf32>
    %cst_117 = arith.constant 0.000000e+00 : f32
    %585 = vector.shape_cast %584 : vector<8x1xf32> to vector<8x1xf32>
    %586 = vector.broadcast %585 : vector<8x1xf32> to vector<8x8xf32>
    %587 = vector.broadcast %cst_117 : f32 to vector<8x8xf32>
    %588 = arith.select %19, %586, %587 : vector<8x8xi1>, vector<8x8xf32>
    %589 = arith.addf %583, %588 : vector<8x8xf32>
    %590 = vector.extract_strided_slice %564 {offsets = [0, 4], sizes = [8, 1], strides = [1, 1]} : vector<8x17xf32> to vector<8x1xf32>
    %cst_118 = arith.constant 0.000000e+00 : f32
    %591 = vector.shape_cast %590 : vector<8x1xf32> to vector<8x1xf32>
    %592 = vector.broadcast %591 : vector<8x1xf32> to vector<8x8xf32>
    %593 = vector.broadcast %cst_118 : f32 to vector<8x8xf32>
    %594 = arith.select %21, %592, %593 : vector<8x8xi1>, vector<8x8xf32>
    %595 = arith.addf %589, %594 : vector<8x8xf32>
    %596 = vector.extract_strided_slice %564 {offsets = [0, 5], sizes = [8, 1], strides = [1, 1]} : vector<8x17xf32> to vector<8x1xf32>
    %cst_119 = arith.constant 0.000000e+00 : f32
    %597 = vector.shape_cast %596 : vector<8x1xf32> to vector<8x1xf32>
    %598 = vector.broadcast %597 : vector<8x1xf32> to vector<8x8xf32>
    %599 = vector.broadcast %cst_119 : f32 to vector<8x8xf32>
    %600 = arith.select %23, %598, %599 : vector<8x8xi1>, vector<8x8xf32>
    %601 = arith.addf %595, %600 : vector<8x8xf32>
    %602 = vector.extract_strided_slice %564 {offsets = [0, 6], sizes = [8, 1], strides = [1, 1]} : vector<8x17xf32> to vector<8x1xf32>
    %cst_120 = arith.constant 0.000000e+00 : f32
    %603 = vector.shape_cast %602 : vector<8x1xf32> to vector<8x1xf32>
    %604 = vector.broadcast %603 : vector<8x1xf32> to vector<8x8xf32>
    %605 = vector.broadcast %cst_120 : f32 to vector<8x8xf32>
    %606 = arith.select %25, %604, %605 : vector<8x8xi1>, vector<8x8xf32>
    %607 = arith.addf %601, %606 : vector<8x8xf32>
    %608 = vector.extract_strided_slice %564 {offsets = [0, 7], sizes = [8, 1], strides = [1, 1]} : vector<8x17xf32> to vector<8x1xf32>
    %cst_121 = arith.constant 0.000000e+00 : f32
    %609 = vector.shape_cast %608 : vector<8x1xf32> to vector<8x1xf32>
    %610 = vector.broadcast %609 : vector<8x1xf32> to vector<8x8xf32>
    %611 = vector.broadcast %cst_121 : f32 to vector<8x8xf32>
    %612 = arith.select %27, %610, %611 : vector<8x8xi1>, vector<8x8xf32>
    %613 = arith.addf %607, %612 : vector<8x8xf32>
    %614 = vector.extract_strided_slice %564 {offsets = [0, 8], sizes = [8, 1], strides = [1, 1]} : vector<8x17xf32> to vector<8x1xf32>
    %cst_122 = arith.constant 0.000000e+00 : f32
    %615 = vector.shape_cast %614 : vector<8x1xf32> to vector<8x1xf32>
    %616 = vector.broadcast %615 : vector<8x1xf32> to vector<8x8xf32>
    %617 = vector.broadcast %cst_122 : f32 to vector<8x8xf32>
    %618 = arith.select %29, %616, %617 : vector<8x8xi1>, vector<8x8xf32>
    %619 = arith.addf %613, %618 : vector<8x8xf32>
    %620 = vector.extract_strided_slice %564 {offsets = [0, 9], sizes = [8, 1], strides = [1, 1]} : vector<8x17xf32> to vector<8x1xf32>
    %cst_123 = arith.constant 0.000000e+00 : f32
    %621 = vector.shape_cast %620 : vector<8x1xf32> to vector<8x1xf32>
    %622 = vector.broadcast %621 : vector<8x1xf32> to vector<8x8xf32>
    %623 = vector.broadcast %cst_123 : f32 to vector<8x8xf32>
    %624 = arith.select %31, %622, %623 : vector<8x8xi1>, vector<8x8xf32>
    %625 = arith.addf %619, %624 : vector<8x8xf32>
    %626 = vector.extract_strided_slice %564 {offsets = [0, 10], sizes = [8, 1], strides = [1, 1]} : vector<8x17xf32> to vector<8x1xf32>
    %cst_124 = arith.constant 0.000000e+00 : f32
    %627 = vector.shape_cast %626 : vector<8x1xf32> to vector<8x1xf32>
    %628 = vector.broadcast %627 : vector<8x1xf32> to vector<8x8xf32>
    %629 = vector.broadcast %cst_124 : f32 to vector<8x8xf32>
    %630 = arith.select %33, %628, %629 : vector<8x8xi1>, vector<8x8xf32>
    %631 = arith.addf %625, %630 : vector<8x8xf32>
    %632 = vector.extract_strided_slice %564 {offsets = [0, 11], sizes = [8, 1], strides = [1, 1]} : vector<8x17xf32> to vector<8x1xf32>
    %cst_125 = arith.constant 0.000000e+00 : f32
    %633 = vector.shape_cast %632 : vector<8x1xf32> to vector<8x1xf32>
    %634 = vector.broadcast %633 : vector<8x1xf32> to vector<8x8xf32>
    %635 = vector.broadcast %cst_125 : f32 to vector<8x8xf32>
    %636 = arith.select %35, %634, %635 : vector<8x8xi1>, vector<8x8xf32>
    %637 = arith.addf %631, %636 : vector<8x8xf32>
    %638 = vector.extract_strided_slice %564 {offsets = [0, 12], sizes = [8, 1], strides = [1, 1]} : vector<8x17xf32> to vector<8x1xf32>
    %cst_126 = arith.constant 0.000000e+00 : f32
    %639 = vector.shape_cast %638 : vector<8x1xf32> to vector<8x1xf32>
    %640 = vector.broadcast %639 : vector<8x1xf32> to vector<8x8xf32>
    %641 = vector.broadcast %cst_126 : f32 to vector<8x8xf32>
    %642 = arith.select %37, %640, %641 : vector<8x8xi1>, vector<8x8xf32>
    %643 = arith.addf %637, %642 : vector<8x8xf32>
    %644 = vector.extract_strided_slice %564 {offsets = [0, 13], sizes = [8, 1], strides = [1, 1]} : vector<8x17xf32> to vector<8x1xf32>
    %cst_127 = arith.constant 0.000000e+00 : f32
    %645 = vector.shape_cast %644 : vector<8x1xf32> to vector<8x1xf32>
    %646 = vector.broadcast %645 : vector<8x1xf32> to vector<8x8xf32>
    %647 = vector.broadcast %cst_127 : f32 to vector<8x8xf32>
    %648 = arith.select %39, %646, %647 : vector<8x8xi1>, vector<8x8xf32>
    %649 = arith.addf %643, %648 : vector<8x8xf32>
    %650 = vector.extract_strided_slice %564 {offsets = [0, 14], sizes = [8, 1], strides = [1, 1]} : vector<8x17xf32> to vector<8x1xf32>
    %cst_128 = arith.constant 0.000000e+00 : f32
    %651 = vector.shape_cast %650 : vector<8x1xf32> to vector<8x1xf32>
    %652 = vector.broadcast %651 : vector<8x1xf32> to vector<8x8xf32>
    %653 = vector.broadcast %cst_128 : f32 to vector<8x8xf32>
    %654 = arith.select %41, %652, %653 : vector<8x8xi1>, vector<8x8xf32>
    %655 = arith.addf %649, %654 : vector<8x8xf32>
    %656 = vector.extract_strided_slice %564 {offsets = [0, 15], sizes = [8, 1], strides = [1, 1]} : vector<8x17xf32> to vector<8x1xf32>
    %cst_129 = arith.constant 0.000000e+00 : f32
    %657 = vector.shape_cast %656 : vector<8x1xf32> to vector<8x1xf32>
    %658 = vector.broadcast %657 : vector<8x1xf32> to vector<8x8xf32>
    %659 = vector.broadcast %cst_129 : f32 to vector<8x8xf32>
    %660 = arith.select %43, %658, %659 : vector<8x8xi1>, vector<8x8xf32>
    %661 = arith.addf %655, %660 : vector<8x8xf32>
    %662 = vector.extract_strided_slice %564 {offsets = [0, 16], sizes = [8, 1], strides = [1, 1]} : vector<8x17xf32> to vector<8x1xf32>
    %cst_130 = arith.constant 0.000000e+00 : f32
    %663 = vector.shape_cast %662 : vector<8x1xf32> to vector<8x1xf32>
    %664 = vector.broadcast %663 : vector<8x1xf32> to vector<8x8xf32>
    %665 = vector.broadcast %cst_130 : f32 to vector<8x8xf32>
    %666 = arith.select %45, %664, %665 : vector<8x8xi1>, vector<8x8xf32>
    %667 = arith.addf %661, %666 : vector<8x8xf32>
    %668 = arith.addf %563, %667 : vector<8x8xf32>
    %cst_131 = arith.constant dense<0xFF800000> : vector<8xf32>
    %669 = vector.multi_reduction <maximumf>, %668, %cst_131 [1] : vector<8x8xf32> to vector<8xf32>
    %670 = vector.shape_cast %669 : vector<8xf32> to vector<8x1xf32>
    %671 = vector.broadcast %670 : vector<8x1xf32> to vector<8x8xf32>
    %672 = arith.subf %668, %671 : vector<8x8xf32>
    %673 = math.exp %672 : vector<8x8xf32>
    %cst_132 = arith.constant dense<0.000000e+00> : vector<8xf32>
    %674 = vector.multi_reduction <add>, %673, %cst_132 [1] : vector<8x8xf32> to vector<8xf32>
    %675 = vector.shape_cast %674 : vector<8xf32> to vector<8x1xf32>
    %676 = tpu.reciprocal %675 {approx = true} : vector<8x1xf32> -> vector<8x1xf32>
    %677 = arith.mulf %2, %676 : vector<8x1xf32>
    %678 = vector.broadcast %677 : vector<8x1xf32> to vector<8x8xf32>
    %679 = arith.mulf %673, %678 : vector<8x8xf32>
    %cst_133 = arith.constant dense<0.000000e+00> : vector<8xf32>
    %680 = vector.multi_reduction <add>, %679, %cst_133 [0] : vector<8x8xf32> to vector<8xf32>
    %681 = vector.shape_cast %680 : vector<8xf32> to vector<1x8xf32>
    %cst_134 = arith.constant dense<0.000000e+00> : vector<1x16xf32>
    %682 = tpu.matmul %681, %560, %cst_134 {dimension_numbers = #tpu.dot_dimension_numbers<[1], [0], [0], [1], [0, 0, 1, 1], [], []>} : vector<1x8xf32>, vector<8x16xf32>, vector<1x16xf32> -> vector<1x16xf32>
    %683 = arith.addf %557, %682 : vector<1x16xf32>
    %684 = vector.extract_strided_slice %556 {offsets = [0, 64], sizes = [8, 16], strides = [1, 1]} : vector<8x256xf32> to vector<8x16xf32>
    %685 = vector.extract_strided_slice %556 {offsets = [0, 80], sizes = [8, 16], strides = [1, 1]} : vector<8x256xf32> to vector<8x16xf32>
    %686 = vector.extract_strided_slice %556 {offsets = [0, 96], sizes = [8, 16], strides = [1, 1]} : vector<8x256xf32> to vector<8x16xf32>
    %687 = vector.extract_strided_slice %556 {offsets = [0, 112], sizes = [8, 16], strides = [1, 1]} : vector<8x256xf32> to vector<8x16xf32>
    %688 = tpu.transpose %685, [1, 0] : vector<8x16xf32> -> vector<16x8xf32>
    %cst_135 = arith.constant dense<0.000000e+00> : vector<8x8xf32>
    %689 = tpu.matmul %684, %688, %cst_135 {dimension_numbers = #tpu.dot_dimension_numbers<[1], [0], [0], [1], [0, 0, 1, 1], [], []>} : vector<8x16xf32>, vector<16x8xf32>, vector<8x8xf32> -> vector<8x8xf32>
    %cst_136 = arith.constant dense<0.000000e+00> : vector<8x17xf32>
    %690 = tpu.matmul %687, %1, %cst_136 {dimension_numbers = #tpu.dot_dimension_numbers<[1], [0], [0], [1], [0, 0, 1, 1], [], []>} : vector<8x16xf32>, vector<16x17xf32>, vector<8x17xf32> -> vector<8x17xf32>
    %cst_137 = arith.constant 0.000000e+00 : f32
    %691 = vector.broadcast %cst_137 : f32 to vector<8x8xf32>
    %692 = vector.extract_strided_slice %690 {offsets = [0, 0], sizes = [8, 1], strides = [1, 1]} : vector<8x17xf32> to vector<8x1xf32>
    %cst_138 = arith.constant 0.000000e+00 : f32
    %693 = vector.shape_cast %692 : vector<8x1xf32> to vector<8x1xf32>
    %694 = vector.broadcast %693 : vector<8x1xf32> to vector<8x8xf32>
    %695 = vector.broadcast %cst_138 : f32 to vector<8x8xf32>
    %696 = arith.select %13, %694, %695 : vector<8x8xi1>, vector<8x8xf32>
    %697 = arith.addf %691, %696 : vector<8x8xf32>
    %698 = vector.extract_strided_slice %690 {offsets = [0, 1], sizes = [8, 1], strides = [1, 1]} : vector<8x17xf32> to vector<8x1xf32>
    %cst_139 = arith.constant 0.000000e+00 : f32
    %699 = vector.shape_cast %698 : vector<8x1xf32> to vector<8x1xf32>
    %700 = vector.broadcast %699 : vector<8x1xf32> to vector<8x8xf32>
    %701 = vector.broadcast %cst_139 : f32 to vector<8x8xf32>
    %702 = arith.select %15, %700, %701 : vector<8x8xi1>, vector<8x8xf32>
    %703 = arith.addf %697, %702 : vector<8x8xf32>
    %704 = vector.extract_strided_slice %690 {offsets = [0, 2], sizes = [8, 1], strides = [1, 1]} : vector<8x17xf32> to vector<8x1xf32>
    %cst_140 = arith.constant 0.000000e+00 : f32
    %705 = vector.shape_cast %704 : vector<8x1xf32> to vector<8x1xf32>
    %706 = vector.broadcast %705 : vector<8x1xf32> to vector<8x8xf32>
    %707 = vector.broadcast %cst_140 : f32 to vector<8x8xf32>
    %708 = arith.select %17, %706, %707 : vector<8x8xi1>, vector<8x8xf32>
    %709 = arith.addf %703, %708 : vector<8x8xf32>
    %710 = vector.extract_strided_slice %690 {offsets = [0, 3], sizes = [8, 1], strides = [1, 1]} : vector<8x17xf32> to vector<8x1xf32>
    %cst_141 = arith.constant 0.000000e+00 : f32
    %711 = vector.shape_cast %710 : vector<8x1xf32> to vector<8x1xf32>
    %712 = vector.broadcast %711 : vector<8x1xf32> to vector<8x8xf32>
    %713 = vector.broadcast %cst_141 : f32 to vector<8x8xf32>
    %714 = arith.select %19, %712, %713 : vector<8x8xi1>, vector<8x8xf32>
    %715 = arith.addf %709, %714 : vector<8x8xf32>
    %716 = vector.extract_strided_slice %690 {offsets = [0, 4], sizes = [8, 1], strides = [1, 1]} : vector<8x17xf32> to vector<8x1xf32>
    %cst_142 = arith.constant 0.000000e+00 : f32
    %717 = vector.shape_cast %716 : vector<8x1xf32> to vector<8x1xf32>
    %718 = vector.broadcast %717 : vector<8x1xf32> to vector<8x8xf32>
    %719 = vector.broadcast %cst_142 : f32 to vector<8x8xf32>
    %720 = arith.select %21, %718, %719 : vector<8x8xi1>, vector<8x8xf32>
    %721 = arith.addf %715, %720 : vector<8x8xf32>
    %722 = vector.extract_strided_slice %690 {offsets = [0, 5], sizes = [8, 1], strides = [1, 1]} : vector<8x17xf32> to vector<8x1xf32>
    %cst_143 = arith.constant 0.000000e+00 : f32
    %723 = vector.shape_cast %722 : vector<8x1xf32> to vector<8x1xf32>
    %724 = vector.broadcast %723 : vector<8x1xf32> to vector<8x8xf32>
    %725 = vector.broadcast %cst_143 : f32 to vector<8x8xf32>
    %726 = arith.select %23, %724, %725 : vector<8x8xi1>, vector<8x8xf32>
    %727 = arith.addf %721, %726 : vector<8x8xf32>
    %728 = vector.extract_strided_slice %690 {offsets = [0, 6], sizes = [8, 1], strides = [1, 1]} : vector<8x17xf32> to vector<8x1xf32>
    %cst_144 = arith.constant 0.000000e+00 : f32
    %729 = vector.shape_cast %728 : vector<8x1xf32> to vector<8x1xf32>
    %730 = vector.broadcast %729 : vector<8x1xf32> to vector<8x8xf32>
    %731 = vector.broadcast %cst_144 : f32 to vector<8x8xf32>
    %732 = arith.select %25, %730, %731 : vector<8x8xi1>, vector<8x8xf32>
    %733 = arith.addf %727, %732 : vector<8x8xf32>
    %734 = vector.extract_strided_slice %690 {offsets = [0, 7], sizes = [8, 1], strides = [1, 1]} : vector<8x17xf32> to vector<8x1xf32>
    %cst_145 = arith.constant 0.000000e+00 : f32
    %735 = vector.shape_cast %734 : vector<8x1xf32> to vector<8x1xf32>
    %736 = vector.broadcast %735 : vector<8x1xf32> to vector<8x8xf32>
    %737 = vector.broadcast %cst_145 : f32 to vector<8x8xf32>
    %738 = arith.select %27, %736, %737 : vector<8x8xi1>, vector<8x8xf32>
    %739 = arith.addf %733, %738 : vector<8x8xf32>
    %740 = vector.extract_strided_slice %690 {offsets = [0, 8], sizes = [8, 1], strides = [1, 1]} : vector<8x17xf32> to vector<8x1xf32>
    %cst_146 = arith.constant 0.000000e+00 : f32
    %741 = vector.shape_cast %740 : vector<8x1xf32> to vector<8x1xf32>
    %742 = vector.broadcast %741 : vector<8x1xf32> to vector<8x8xf32>
    %743 = vector.broadcast %cst_146 : f32 to vector<8x8xf32>
    %744 = arith.select %29, %742, %743 : vector<8x8xi1>, vector<8x8xf32>
    %745 = arith.addf %739, %744 : vector<8x8xf32>
    %746 = vector.extract_strided_slice %690 {offsets = [0, 9], sizes = [8, 1], strides = [1, 1]} : vector<8x17xf32> to vector<8x1xf32>
    %cst_147 = arith.constant 0.000000e+00 : f32
    %747 = vector.shape_cast %746 : vector<8x1xf32> to vector<8x1xf32>
    %748 = vector.broadcast %747 : vector<8x1xf32> to vector<8x8xf32>
    %749 = vector.broadcast %cst_147 : f32 to vector<8x8xf32>
    %750 = arith.select %31, %748, %749 : vector<8x8xi1>, vector<8x8xf32>
    %751 = arith.addf %745, %750 : vector<8x8xf32>
    %752 = vector.extract_strided_slice %690 {offsets = [0, 10], sizes = [8, 1], strides = [1, 1]} : vector<8x17xf32> to vector<8x1xf32>
    %cst_148 = arith.constant 0.000000e+00 : f32
    %753 = vector.shape_cast %752 : vector<8x1xf32> to vector<8x1xf32>
    %754 = vector.broadcast %753 : vector<8x1xf32> to vector<8x8xf32>
    %755 = vector.broadcast %cst_148 : f32 to vector<8x8xf32>
    %756 = arith.select %33, %754, %755 : vector<8x8xi1>, vector<8x8xf32>
    %757 = arith.addf %751, %756 : vector<8x8xf32>
    %758 = vector.extract_strided_slice %690 {offsets = [0, 11], sizes = [8, 1], strides = [1, 1]} : vector<8x17xf32> to vector<8x1xf32>
    %cst_149 = arith.constant 0.000000e+00 : f32
    %759 = vector.shape_cast %758 : vector<8x1xf32> to vector<8x1xf32>
    %760 = vector.broadcast %759 : vector<8x1xf32> to vector<8x8xf32>
    %761 = vector.broadcast %cst_149 : f32 to vector<8x8xf32>
    %762 = arith.select %35, %760, %761 : vector<8x8xi1>, vector<8x8xf32>
    %763 = arith.addf %757, %762 : vector<8x8xf32>
    %764 = vector.extract_strided_slice %690 {offsets = [0, 12], sizes = [8, 1], strides = [1, 1]} : vector<8x17xf32> to vector<8x1xf32>
    %cst_150 = arith.constant 0.000000e+00 : f32
    %765 = vector.shape_cast %764 : vector<8x1xf32> to vector<8x1xf32>
    %766 = vector.broadcast %765 : vector<8x1xf32> to vector<8x8xf32>
    %767 = vector.broadcast %cst_150 : f32 to vector<8x8xf32>
    %768 = arith.select %37, %766, %767 : vector<8x8xi1>, vector<8x8xf32>
    %769 = arith.addf %763, %768 : vector<8x8xf32>
    %770 = vector.extract_strided_slice %690 {offsets = [0, 13], sizes = [8, 1], strides = [1, 1]} : vector<8x17xf32> to vector<8x1xf32>
    %cst_151 = arith.constant 0.000000e+00 : f32
    %771 = vector.shape_cast %770 : vector<8x1xf32> to vector<8x1xf32>
    %772 = vector.broadcast %771 : vector<8x1xf32> to vector<8x8xf32>
    %773 = vector.broadcast %cst_151 : f32 to vector<8x8xf32>
    %774 = arith.select %39, %772, %773 : vector<8x8xi1>, vector<8x8xf32>
    %775 = arith.addf %769, %774 : vector<8x8xf32>
    %776 = vector.extract_strided_slice %690 {offsets = [0, 14], sizes = [8, 1], strides = [1, 1]} : vector<8x17xf32> to vector<8x1xf32>
    %cst_152 = arith.constant 0.000000e+00 : f32
    %777 = vector.shape_cast %776 : vector<8x1xf32> to vector<8x1xf32>
    %778 = vector.broadcast %777 : vector<8x1xf32> to vector<8x8xf32>
    %779 = vector.broadcast %cst_152 : f32 to vector<8x8xf32>
    %780 = arith.select %41, %778, %779 : vector<8x8xi1>, vector<8x8xf32>
    %781 = arith.addf %775, %780 : vector<8x8xf32>
    %782 = vector.extract_strided_slice %690 {offsets = [0, 15], sizes = [8, 1], strides = [1, 1]} : vector<8x17xf32> to vector<8x1xf32>
    %cst_153 = arith.constant 0.000000e+00 : f32
    %783 = vector.shape_cast %782 : vector<8x1xf32> to vector<8x1xf32>
    %784 = vector.broadcast %783 : vector<8x1xf32> to vector<8x8xf32>
    %785 = vector.broadcast %cst_153 : f32 to vector<8x8xf32>
    %786 = arith.select %43, %784, %785 : vector<8x8xi1>, vector<8x8xf32>
    %787 = arith.addf %781, %786 : vector<8x8xf32>
    %788 = vector.extract_strided_slice %690 {offsets = [0, 16], sizes = [8, 1], strides = [1, 1]} : vector<8x17xf32> to vector<8x1xf32>
    %cst_154 = arith.constant 0.000000e+00 : f32
    %789 = vector.shape_cast %788 : vector<8x1xf32> to vector<8x1xf32>
    %790 = vector.broadcast %789 : vector<8x1xf32> to vector<8x8xf32>
    %791 = vector.broadcast %cst_154 : f32 to vector<8x8xf32>
    %792 = arith.select %45, %790, %791 : vector<8x8xi1>, vector<8x8xf32>
    %793 = arith.addf %787, %792 : vector<8x8xf32>
    %794 = arith.addf %689, %793 : vector<8x8xf32>
    %cst_155 = arith.constant dense<0xFF800000> : vector<8xf32>
    %795 = vector.multi_reduction <maximumf>, %794, %cst_155 [1] : vector<8x8xf32> to vector<8xf32>
    %796 = vector.shape_cast %795 : vector<8xf32> to vector<8x1xf32>
    %797 = vector.broadcast %796 : vector<8x1xf32> to vector<8x8xf32>
    %798 = arith.subf %794, %797 : vector<8x8xf32>
    %799 = math.exp %798 : vector<8x8xf32>
    %cst_156 = arith.constant dense<0.000000e+00> : vector<8xf32>
    %800 = vector.multi_reduction <add>, %799, %cst_156 [1] : vector<8x8xf32> to vector<8xf32>
    %801 = vector.shape_cast %800 : vector<8xf32> to vector<8x1xf32>
    %802 = tpu.reciprocal %801 {approx = true} : vector<8x1xf32> -> vector<8x1xf32>
    %803 = arith.mulf %2, %802 : vector<8x1xf32>
    %804 = vector.broadcast %803 : vector<8x1xf32> to vector<8x8xf32>
    %805 = arith.mulf %799, %804 : vector<8x8xf32>
    %cst_157 = arith.constant dense<0.000000e+00> : vector<8xf32>
    %806 = vector.multi_reduction <add>, %805, %cst_157 [0] : vector<8x8xf32> to vector<8xf32>
    %807 = vector.shape_cast %806 : vector<8xf32> to vector<1x8xf32>
    %cst_158 = arith.constant dense<0.000000e+00> : vector<1x16xf32>
    %808 = tpu.matmul %807, %686, %cst_158 {dimension_numbers = #tpu.dot_dimension_numbers<[1], [0], [0], [1], [0, 0, 1, 1], [], []>} : vector<1x8xf32>, vector<8x16xf32>, vector<1x16xf32> -> vector<1x16xf32>
    %809 = arith.addf %683, %808 : vector<1x16xf32>
    %810 = vector.extract_strided_slice %556 {offsets = [0, 128], sizes = [8, 16], strides = [1, 1]} : vector<8x256xf32> to vector<8x16xf32>
    %811 = vector.extract_strided_slice %556 {offsets = [0, 144], sizes = [8, 16], strides = [1, 1]} : vector<8x256xf32> to vector<8x16xf32>
    %812 = vector.extract_strided_slice %556 {offsets = [0, 160], sizes = [8, 16], strides = [1, 1]} : vector<8x256xf32> to vector<8x16xf32>
    %813 = vector.extract_strided_slice %556 {offsets = [0, 176], sizes = [8, 16], strides = [1, 1]} : vector<8x256xf32> to vector<8x16xf32>
    %814 = tpu.transpose %811, [1, 0] : vector<8x16xf32> -> vector<16x8xf32>
    %cst_159 = arith.constant dense<0.000000e+00> : vector<8x8xf32>
    %815 = tpu.matmul %810, %814, %cst_159 {dimension_numbers = #tpu.dot_dimension_numbers<[1], [0], [0], [1], [0, 0, 1, 1], [], []>} : vector<8x16xf32>, vector<16x8xf32>, vector<8x8xf32> -> vector<8x8xf32>
    %cst_160 = arith.constant dense<0.000000e+00> : vector<8x17xf32>
    %816 = tpu.matmul %813, %1, %cst_160 {dimension_numbers = #tpu.dot_dimension_numbers<[1], [0], [0], [1], [0, 0, 1, 1], [], []>} : vector<8x16xf32>, vector<16x17xf32>, vector<8x17xf32> -> vector<8x17xf32>
    %cst_161 = arith.constant 0.000000e+00 : f32
    %817 = vector.broadcast %cst_161 : f32 to vector<8x8xf32>
    %818 = vector.extract_strided_slice %816 {offsets = [0, 0], sizes = [8, 1], strides = [1, 1]} : vector<8x17xf32> to vector<8x1xf32>
    %cst_162 = arith.constant 0.000000e+00 : f32
    %819 = vector.shape_cast %818 : vector<8x1xf32> to vector<8x1xf32>
    %820 = vector.broadcast %819 : vector<8x1xf32> to vector<8x8xf32>
    %821 = vector.broadcast %cst_162 : f32 to vector<8x8xf32>
    %822 = arith.select %13, %820, %821 : vector<8x8xi1>, vector<8x8xf32>
    %823 = arith.addf %817, %822 : vector<8x8xf32>
    %824 = vector.extract_strided_slice %816 {offsets = [0, 1], sizes = [8, 1], strides = [1, 1]} : vector<8x17xf32> to vector<8x1xf32>
    %cst_163 = arith.constant 0.000000e+00 : f32
    %825 = vector.shape_cast %824 : vector<8x1xf32> to vector<8x1xf32>
    %826 = vector.broadcast %825 : vector<8x1xf32> to vector<8x8xf32>
    %827 = vector.broadcast %cst_163 : f32 to vector<8x8xf32>
    %828 = arith.select %15, %826, %827 : vector<8x8xi1>, vector<8x8xf32>
    %829 = arith.addf %823, %828 : vector<8x8xf32>
    %830 = vector.extract_strided_slice %816 {offsets = [0, 2], sizes = [8, 1], strides = [1, 1]} : vector<8x17xf32> to vector<8x1xf32>
    %cst_164 = arith.constant 0.000000e+00 : f32
    %831 = vector.shape_cast %830 : vector<8x1xf32> to vector<8x1xf32>
    %832 = vector.broadcast %831 : vector<8x1xf32> to vector<8x8xf32>
    %833 = vector.broadcast %cst_164 : f32 to vector<8x8xf32>
    %834 = arith.select %17, %832, %833 : vector<8x8xi1>, vector<8x8xf32>
    %835 = arith.addf %829, %834 : vector<8x8xf32>
    %836 = vector.extract_strided_slice %816 {offsets = [0, 3], sizes = [8, 1], strides = [1, 1]} : vector<8x17xf32> to vector<8x1xf32>
    %cst_165 = arith.constant 0.000000e+00 : f32
    %837 = vector.shape_cast %836 : vector<8x1xf32> to vector<8x1xf32>
    %838 = vector.broadcast %837 : vector<8x1xf32> to vector<8x8xf32>
    %839 = vector.broadcast %cst_165 : f32 to vector<8x8xf32>
    %840 = arith.select %19, %838, %839 : vector<8x8xi1>, vector<8x8xf32>
    %841 = arith.addf %835, %840 : vector<8x8xf32>
    %842 = vector.extract_strided_slice %816 {offsets = [0, 4], sizes = [8, 1], strides = [1, 1]} : vector<8x17xf32> to vector<8x1xf32>
    %cst_166 = arith.constant 0.000000e+00 : f32
    %843 = vector.shape_cast %842 : vector<8x1xf32> to vector<8x1xf32>
    %844 = vector.broadcast %843 : vector<8x1xf32> to vector<8x8xf32>
    %845 = vector.broadcast %cst_166 : f32 to vector<8x8xf32>
    %846 = arith.select %21, %844, %845 : vector<8x8xi1>, vector<8x8xf32>
    %847 = arith.addf %841, %846 : vector<8x8xf32>
    %848 = vector.extract_strided_slice %816 {offsets = [0, 5], sizes = [8, 1], strides = [1, 1]} : vector<8x17xf32> to vector<8x1xf32>
    %cst_167 = arith.constant 0.000000e+00 : f32
    %849 = vector.shape_cast %848 : vector<8x1xf32> to vector<8x1xf32>
    %850 = vector.broadcast %849 : vector<8x1xf32> to vector<8x8xf32>
    %851 = vector.broadcast %cst_167 : f32 to vector<8x8xf32>
    %852 = arith.select %23, %850, %851 : vector<8x8xi1>, vector<8x8xf32>
    %853 = arith.addf %847, %852 : vector<8x8xf32>
    %854 = vector.extract_strided_slice %816 {offsets = [0, 6], sizes = [8, 1], strides = [1, 1]} : vector<8x17xf32> to vector<8x1xf32>
    %cst_168 = arith.constant 0.000000e+00 : f32
    %855 = vector.shape_cast %854 : vector<8x1xf32> to vector<8x1xf32>
    %856 = vector.broadcast %855 : vector<8x1xf32> to vector<8x8xf32>
    %857 = vector.broadcast %cst_168 : f32 to vector<8x8xf32>
    %858 = arith.select %25, %856, %857 : vector<8x8xi1>, vector<8x8xf32>
    %859 = arith.addf %853, %858 : vector<8x8xf32>
    %860 = vector.extract_strided_slice %816 {offsets = [0, 7], sizes = [8, 1], strides = [1, 1]} : vector<8x17xf32> to vector<8x1xf32>
    %cst_169 = arith.constant 0.000000e+00 : f32
    %861 = vector.shape_cast %860 : vector<8x1xf32> to vector<8x1xf32>
    %862 = vector.broadcast %861 : vector<8x1xf32> to vector<8x8xf32>
    %863 = vector.broadcast %cst_169 : f32 to vector<8x8xf32>
    %864 = arith.select %27, %862, %863 : vector<8x8xi1>, vector<8x8xf32>
    %865 = arith.addf %859, %864 : vector<8x8xf32>
    %866 = vector.extract_strided_slice %816 {offsets = [0, 8], sizes = [8, 1], strides = [1, 1]} : vector<8x17xf32> to vector<8x1xf32>
    %cst_170 = arith.constant 0.000000e+00 : f32
    %867 = vector.shape_cast %866 : vector<8x1xf32> to vector<8x1xf32>
    %868 = vector.broadcast %867 : vector<8x1xf32> to vector<8x8xf32>
    %869 = vector.broadcast %cst_170 : f32 to vector<8x8xf32>
    %870 = arith.select %29, %868, %869 : vector<8x8xi1>, vector<8x8xf32>
    %871 = arith.addf %865, %870 : vector<8x8xf32>
    %872 = vector.extract_strided_slice %816 {offsets = [0, 9], sizes = [8, 1], strides = [1, 1]} : vector<8x17xf32> to vector<8x1xf32>
    %cst_171 = arith.constant 0.000000e+00 : f32
    %873 = vector.shape_cast %872 : vector<8x1xf32> to vector<8x1xf32>
    %874 = vector.broadcast %873 : vector<8x1xf32> to vector<8x8xf32>
    %875 = vector.broadcast %cst_171 : f32 to vector<8x8xf32>
    %876 = arith.select %31, %874, %875 : vector<8x8xi1>, vector<8x8xf32>
    %877 = arith.addf %871, %876 : vector<8x8xf32>
    %878 = vector.extract_strided_slice %816 {offsets = [0, 10], sizes = [8, 1], strides = [1, 1]} : vector<8x17xf32> to vector<8x1xf32>
    %cst_172 = arith.constant 0.000000e+00 : f32
    %879 = vector.shape_cast %878 : vector<8x1xf32> to vector<8x1xf32>
    %880 = vector.broadcast %879 : vector<8x1xf32> to vector<8x8xf32>
    %881 = vector.broadcast %cst_172 : f32 to vector<8x8xf32>
    %882 = arith.select %33, %880, %881 : vector<8x8xi1>, vector<8x8xf32>
    %883 = arith.addf %877, %882 : vector<8x8xf32>
    %884 = vector.extract_strided_slice %816 {offsets = [0, 11], sizes = [8, 1], strides = [1, 1]} : vector<8x17xf32> to vector<8x1xf32>
    %cst_173 = arith.constant 0.000000e+00 : f32
    %885 = vector.shape_cast %884 : vector<8x1xf32> to vector<8x1xf32>
    %886 = vector.broadcast %885 : vector<8x1xf32> to vector<8x8xf32>
    %887 = vector.broadcast %cst_173 : f32 to vector<8x8xf32>
    %888 = arith.select %35, %886, %887 : vector<8x8xi1>, vector<8x8xf32>
    %889 = arith.addf %883, %888 : vector<8x8xf32>
    %890 = vector.extract_strided_slice %816 {offsets = [0, 12], sizes = [8, 1], strides = [1, 1]} : vector<8x17xf32> to vector<8x1xf32>
    %cst_174 = arith.constant 0.000000e+00 : f32
    %891 = vector.shape_cast %890 : vector<8x1xf32> to vector<8x1xf32>
    %892 = vector.broadcast %891 : vector<8x1xf32> to vector<8x8xf32>
    %893 = vector.broadcast %cst_174 : f32 to vector<8x8xf32>
    %894 = arith.select %37, %892, %893 : vector<8x8xi1>, vector<8x8xf32>
    %895 = arith.addf %889, %894 : vector<8x8xf32>
    %896 = vector.extract_strided_slice %816 {offsets = [0, 13], sizes = [8, 1], strides = [1, 1]} : vector<8x17xf32> to vector<8x1xf32>
    %cst_175 = arith.constant 0.000000e+00 : f32
    %897 = vector.shape_cast %896 : vector<8x1xf32> to vector<8x1xf32>
    %898 = vector.broadcast %897 : vector<8x1xf32> to vector<8x8xf32>
    %899 = vector.broadcast %cst_175 : f32 to vector<8x8xf32>
    %900 = arith.select %39, %898, %899 : vector<8x8xi1>, vector<8x8xf32>
    %901 = arith.addf %895, %900 : vector<8x8xf32>
    %902 = vector.extract_strided_slice %816 {offsets = [0, 14], sizes = [8, 1], strides = [1, 1]} : vector<8x17xf32> to vector<8x1xf32>
    %cst_176 = arith.constant 0.000000e+00 : f32
    %903 = vector.shape_cast %902 : vector<8x1xf32> to vector<8x1xf32>
    %904 = vector.broadcast %903 : vector<8x1xf32> to vector<8x8xf32>
    %905 = vector.broadcast %cst_176 : f32 to vector<8x8xf32>
    %906 = arith.select %41, %904, %905 : vector<8x8xi1>, vector<8x8xf32>
    %907 = arith.addf %901, %906 : vector<8x8xf32>
    %908 = vector.extract_strided_slice %816 {offsets = [0, 15], sizes = [8, 1], strides = [1, 1]} : vector<8x17xf32> to vector<8x1xf32>
    %cst_177 = arith.constant 0.000000e+00 : f32
    %909 = vector.shape_cast %908 : vector<8x1xf32> to vector<8x1xf32>
    %910 = vector.broadcast %909 : vector<8x1xf32> to vector<8x8xf32>
    %911 = vector.broadcast %cst_177 : f32 to vector<8x8xf32>
    %912 = arith.select %43, %910, %911 : vector<8x8xi1>, vector<8x8xf32>
    %913 = arith.addf %907, %912 : vector<8x8xf32>
    %914 = vector.extract_strided_slice %816 {offsets = [0, 16], sizes = [8, 1], strides = [1, 1]} : vector<8x17xf32> to vector<8x1xf32>
    %cst_178 = arith.constant 0.000000e+00 : f32
    %915 = vector.shape_cast %914 : vector<8x1xf32> to vector<8x1xf32>
    %916 = vector.broadcast %915 : vector<8x1xf32> to vector<8x8xf32>
    %917 = vector.broadcast %cst_178 : f32 to vector<8x8xf32>
    %918 = arith.select %45, %916, %917 : vector<8x8xi1>, vector<8x8xf32>
    %919 = arith.addf %913, %918 : vector<8x8xf32>
    %920 = arith.addf %815, %919 : vector<8x8xf32>
    %cst_179 = arith.constant dense<0xFF800000> : vector<8xf32>
    %921 = vector.multi_reduction <maximumf>, %920, %cst_179 [1] : vector<8x8xf32> to vector<8xf32>
    %922 = vector.shape_cast %921 : vector<8xf32> to vector<8x1xf32>
    %923 = vector.broadcast %922 : vector<8x1xf32> to vector<8x8xf32>
    %924 = arith.subf %920, %923 : vector<8x8xf32>
    %925 = math.exp %924 : vector<8x8xf32>
    %cst_180 = arith.constant dense<0.000000e+00> : vector<8xf32>
    %926 = vector.multi_reduction <add>, %925, %cst_180 [1] : vector<8x8xf32> to vector<8xf32>
    %927 = vector.shape_cast %926 : vector<8xf32> to vector<8x1xf32>
    %928 = tpu.reciprocal %927 {approx = true} : vector<8x1xf32> -> vector<8x1xf32>
    %929 = arith.mulf %2, %928 : vector<8x1xf32>
    %930 = vector.broadcast %929 : vector<8x1xf32> to vector<8x8xf32>
    %931 = arith.mulf %925, %930 : vector<8x8xf32>
    %cst_181 = arith.constant dense<0.000000e+00> : vector<8xf32>
    %932 = vector.multi_reduction <add>, %931, %cst_181 [0] : vector<8x8xf32> to vector<8xf32>
    %933 = vector.shape_cast %932 : vector<8xf32> to vector<1x8xf32>
    %cst_182 = arith.constant dense<0.000000e+00> : vector<1x16xf32>
    %934 = tpu.matmul %933, %812, %cst_182 {dimension_numbers = #tpu.dot_dimension_numbers<[1], [0], [0], [1], [0, 0, 1, 1], [], []>} : vector<1x8xf32>, vector<8x16xf32>, vector<1x16xf32> -> vector<1x16xf32>
    %935 = arith.addf %809, %934 : vector<1x16xf32>
    %936 = vector.extract_strided_slice %556 {offsets = [0, 192], sizes = [8, 16], strides = [1, 1]} : vector<8x256xf32> to vector<8x16xf32>
    %937 = vector.extract_strided_slice %556 {offsets = [0, 208], sizes = [8, 16], strides = [1, 1]} : vector<8x256xf32> to vector<8x16xf32>
    %938 = vector.extract_strided_slice %556 {offsets = [0, 224], sizes = [8, 16], strides = [1, 1]} : vector<8x256xf32> to vector<8x16xf32>
    %939 = vector.extract_strided_slice %556 {offsets = [0, 240], sizes = [8, 16], strides = [1, 1]} : vector<8x256xf32> to vector<8x16xf32>
    %940 = tpu.transpose %937, [1, 0] : vector<8x16xf32> -> vector<16x8xf32>
    %cst_183 = arith.constant dense<0.000000e+00> : vector<8x8xf32>
    %941 = tpu.matmul %936, %940, %cst_183 {dimension_numbers = #tpu.dot_dimension_numbers<[1], [0], [0], [1], [0, 0, 1, 1], [], []>} : vector<8x16xf32>, vector<16x8xf32>, vector<8x8xf32> -> vector<8x8xf32>
    %cst_184 = arith.constant dense<0.000000e+00> : vector<8x17xf32>
    %942 = tpu.matmul %939, %1, %cst_184 {dimension_numbers = #tpu.dot_dimension_numbers<[1], [0], [0], [1], [0, 0, 1, 1], [], []>} : vector<8x16xf32>, vector<16x17xf32>, vector<8x17xf32> -> vector<8x17xf32>
    %cst_185 = arith.constant 0.000000e+00 : f32
    %943 = vector.broadcast %cst_185 : f32 to vector<8x8xf32>
    %944 = vector.extract_strided_slice %942 {offsets = [0, 0], sizes = [8, 1], strides = [1, 1]} : vector<8x17xf32> to vector<8x1xf32>
    %cst_186 = arith.constant 0.000000e+00 : f32
    %945 = vector.shape_cast %944 : vector<8x1xf32> to vector<8x1xf32>
    %946 = vector.broadcast %945 : vector<8x1xf32> to vector<8x8xf32>
    %947 = vector.broadcast %cst_186 : f32 to vector<8x8xf32>
    %948 = arith.select %13, %946, %947 : vector<8x8xi1>, vector<8x8xf32>
    %949 = arith.addf %943, %948 : vector<8x8xf32>
    %950 = vector.extract_strided_slice %942 {offsets = [0, 1], sizes = [8, 1], strides = [1, 1]} : vector<8x17xf32> to vector<8x1xf32>
    %cst_187 = arith.constant 0.000000e+00 : f32
    %951 = vector.shape_cast %950 : vector<8x1xf32> to vector<8x1xf32>
    %952 = vector.broadcast %951 : vector<8x1xf32> to vector<8x8xf32>
    %953 = vector.broadcast %cst_187 : f32 to vector<8x8xf32>
    %954 = arith.select %15, %952, %953 : vector<8x8xi1>, vector<8x8xf32>
    %955 = arith.addf %949, %954 : vector<8x8xf32>
    %956 = vector.extract_strided_slice %942 {offsets = [0, 2], sizes = [8, 1], strides = [1, 1]} : vector<8x17xf32> to vector<8x1xf32>
    %cst_188 = arith.constant 0.000000e+00 : f32
    %957 = vector.shape_cast %956 : vector<8x1xf32> to vector<8x1xf32>
    %958 = vector.broadcast %957 : vector<8x1xf32> to vector<8x8xf32>
    %959 = vector.broadcast %cst_188 : f32 to vector<8x8xf32>
    %960 = arith.select %17, %958, %959 : vector<8x8xi1>, vector<8x8xf32>
    %961 = arith.addf %955, %960 : vector<8x8xf32>
    %962 = vector.extract_strided_slice %942 {offsets = [0, 3], sizes = [8, 1], strides = [1, 1]} : vector<8x17xf32> to vector<8x1xf32>
    %cst_189 = arith.constant 0.000000e+00 : f32
    %963 = vector.shape_cast %962 : vector<8x1xf32> to vector<8x1xf32>
    %964 = vector.broadcast %963 : vector<8x1xf32> to vector<8x8xf32>
    %965 = vector.broadcast %cst_189 : f32 to vector<8x8xf32>
    %966 = arith.select %19, %964, %965 : vector<8x8xi1>, vector<8x8xf32>
    %967 = arith.addf %961, %966 : vector<8x8xf32>
    %968 = vector.extract_strided_slice %942 {offsets = [0, 4], sizes = [8, 1], strides = [1, 1]} : vector<8x17xf32> to vector<8x1xf32>
    %cst_190 = arith.constant 0.000000e+00 : f32
    %969 = vector.shape_cast %968 : vector<8x1xf32> to vector<8x1xf32>
    %970 = vector.broadcast %969 : vector<8x1xf32> to vector<8x8xf32>
    %971 = vector.broadcast %cst_190 : f32 to vector<8x8xf32>
    %972 = arith.select %21, %970, %971 : vector<8x8xi1>, vector<8x8xf32>
    %973 = arith.addf %967, %972 : vector<8x8xf32>
    %974 = vector.extract_strided_slice %942 {offsets = [0, 5], sizes = [8, 1], strides = [1, 1]} : vector<8x17xf32> to vector<8x1xf32>
    %cst_191 = arith.constant 0.000000e+00 : f32
    %975 = vector.shape_cast %974 : vector<8x1xf32> to vector<8x1xf32>
    %976 = vector.broadcast %975 : vector<8x1xf32> to vector<8x8xf32>
    %977 = vector.broadcast %cst_191 : f32 to vector<8x8xf32>
    %978 = arith.select %23, %976, %977 : vector<8x8xi1>, vector<8x8xf32>
    %979 = arith.addf %973, %978 : vector<8x8xf32>
    %980 = vector.extract_strided_slice %942 {offsets = [0, 6], sizes = [8, 1], strides = [1, 1]} : vector<8x17xf32> to vector<8x1xf32>
    %cst_192 = arith.constant 0.000000e+00 : f32
    %981 = vector.shape_cast %980 : vector<8x1xf32> to vector<8x1xf32>
    %982 = vector.broadcast %981 : vector<8x1xf32> to vector<8x8xf32>
    %983 = vector.broadcast %cst_192 : f32 to vector<8x8xf32>
    %984 = arith.select %25, %982, %983 : vector<8x8xi1>, vector<8x8xf32>
    %985 = arith.addf %979, %984 : vector<8x8xf32>
    %986 = vector.extract_strided_slice %942 {offsets = [0, 7], sizes = [8, 1], strides = [1, 1]} : vector<8x17xf32> to vector<8x1xf32>
    %cst_193 = arith.constant 0.000000e+00 : f32
    %987 = vector.shape_cast %986 : vector<8x1xf32> to vector<8x1xf32>
    %988 = vector.broadcast %987 : vector<8x1xf32> to vector<8x8xf32>
    %989 = vector.broadcast %cst_193 : f32 to vector<8x8xf32>
    %990 = arith.select %27, %988, %989 : vector<8x8xi1>, vector<8x8xf32>
    %991 = arith.addf %985, %990 : vector<8x8xf32>
    %992 = vector.extract_strided_slice %942 {offsets = [0, 8], sizes = [8, 1], strides = [1, 1]} : vector<8x17xf32> to vector<8x1xf32>
    %cst_194 = arith.constant 0.000000e+00 : f32
    %993 = vector.shape_cast %992 : vector<8x1xf32> to vector<8x1xf32>
    %994 = vector.broadcast %993 : vector<8x1xf32> to vector<8x8xf32>
    %995 = vector.broadcast %cst_194 : f32 to vector<8x8xf32>
    %996 = arith.select %29, %994, %995 : vector<8x8xi1>, vector<8x8xf32>
    %997 = arith.addf %991, %996 : vector<8x8xf32>
    %998 = vector.extract_strided_slice %942 {offsets = [0, 9], sizes = [8, 1], strides = [1, 1]} : vector<8x17xf32> to vector<8x1xf32>
    %cst_195 = arith.constant 0.000000e+00 : f32
    %999 = vector.shape_cast %998 : vector<8x1xf32> to vector<8x1xf32>
    %1000 = vector.broadcast %999 : vector<8x1xf32> to vector<8x8xf32>
    %1001 = vector.broadcast %cst_195 : f32 to vector<8x8xf32>
    %1002 = arith.select %31, %1000, %1001 : vector<8x8xi1>, vector<8x8xf32>
    %1003 = arith.addf %997, %1002 : vector<8x8xf32>
    %1004 = vector.extract_strided_slice %942 {offsets = [0, 10], sizes = [8, 1], strides = [1, 1]} : vector<8x17xf32> to vector<8x1xf32>
    %cst_196 = arith.constant 0.000000e+00 : f32
    %1005 = vector.shape_cast %1004 : vector<8x1xf32> to vector<8x1xf32>
    %1006 = vector.broadcast %1005 : vector<8x1xf32> to vector<8x8xf32>
    %1007 = vector.broadcast %cst_196 : f32 to vector<8x8xf32>
    %1008 = arith.select %33, %1006, %1007 : vector<8x8xi1>, vector<8x8xf32>
    %1009 = arith.addf %1003, %1008 : vector<8x8xf32>
    %1010 = vector.extract_strided_slice %942 {offsets = [0, 11], sizes = [8, 1], strides = [1, 1]} : vector<8x17xf32> to vector<8x1xf32>
    %cst_197 = arith.constant 0.000000e+00 : f32
    %1011 = vector.shape_cast %1010 : vector<8x1xf32> to vector<8x1xf32>
    %1012 = vector.broadcast %1011 : vector<8x1xf32> to vector<8x8xf32>
    %1013 = vector.broadcast %cst_197 : f32 to vector<8x8xf32>
    %1014 = arith.select %35, %1012, %1013 : vector<8x8xi1>, vector<8x8xf32>
    %1015 = arith.addf %1009, %1014 : vector<8x8xf32>
    %1016 = vector.extract_strided_slice %942 {offsets = [0, 12], sizes = [8, 1], strides = [1, 1]} : vector<8x17xf32> to vector<8x1xf32>
    %cst_198 = arith.constant 0.000000e+00 : f32
    %1017 = vector.shape_cast %1016 : vector<8x1xf32> to vector<8x1xf32>
    %1018 = vector.broadcast %1017 : vector<8x1xf32> to vector<8x8xf32>
    %1019 = vector.broadcast %cst_198 : f32 to vector<8x8xf32>
    %1020 = arith.select %37, %1018, %1019 : vector<8x8xi1>, vector<8x8xf32>
    %1021 = arith.addf %1015, %1020 : vector<8x8xf32>
    %1022 = vector.extract_strided_slice %942 {offsets = [0, 13], sizes = [8, 1], strides = [1, 1]} : vector<8x17xf32> to vector<8x1xf32>
    %cst_199 = arith.constant 0.000000e+00 : f32
    %1023 = vector.shape_cast %1022 : vector<8x1xf32> to vector<8x1xf32>
    %1024 = vector.broadcast %1023 : vector<8x1xf32> to vector<8x8xf32>
    %1025 = vector.broadcast %cst_199 : f32 to vector<8x8xf32>
    %1026 = arith.select %39, %1024, %1025 : vector<8x8xi1>, vector<8x8xf32>
    %1027 = arith.addf %1021, %1026 : vector<8x8xf32>
    %1028 = vector.extract_strided_slice %942 {offsets = [0, 14], sizes = [8, 1], strides = [1, 1]} : vector<8x17xf32> to vector<8x1xf32>
    %cst_200 = arith.constant 0.000000e+00 : f32
    %1029 = vector.shape_cast %1028 : vector<8x1xf32> to vector<8x1xf32>
    %1030 = vector.broadcast %1029 : vector<8x1xf32> to vector<8x8xf32>
    %1031 = vector.broadcast %cst_200 : f32 to vector<8x8xf32>
    %1032 = arith.select %41, %1030, %1031 : vector<8x8xi1>, vector<8x8xf32>
    %1033 = arith.addf %1027, %1032 : vector<8x8xf32>
    %1034 = vector.extract_strided_slice %942 {offsets = [0, 15], sizes = [8, 1], strides = [1, 1]} : vector<8x17xf32> to vector<8x1xf32>
    %cst_201 = arith.constant 0.000000e+00 : f32
    %1035 = vector.shape_cast %1034 : vector<8x1xf32> to vector<8x1xf32>
    %1036 = vector.broadcast %1035 : vector<8x1xf32> to vector<8x8xf32>
    %1037 = vector.broadcast %cst_201 : f32 to vector<8x8xf32>
    %1038 = arith.select %43, %1036, %1037 : vector<8x8xi1>, vector<8x8xf32>
    %1039 = arith.addf %1033, %1038 : vector<8x8xf32>
    %1040 = vector.extract_strided_slice %942 {offsets = [0, 16], sizes = [8, 1], strides = [1, 1]} : vector<8x17xf32> to vector<8x1xf32>
    %cst_202 = arith.constant 0.000000e+00 : f32
    %1041 = vector.shape_cast %1040 : vector<8x1xf32> to vector<8x1xf32>
    %1042 = vector.broadcast %1041 : vector<8x1xf32> to vector<8x8xf32>
    %1043 = vector.broadcast %cst_202 : f32 to vector<8x8xf32>
    %1044 = arith.select %45, %1042, %1043 : vector<8x8xi1>, vector<8x8xf32>
    %1045 = arith.addf %1039, %1044 : vector<8x8xf32>
    %1046 = arith.addf %941, %1045 : vector<8x8xf32>
    %cst_203 = arith.constant dense<0xFF800000> : vector<8xf32>
    %1047 = vector.multi_reduction <maximumf>, %1046, %cst_203 [1] : vector<8x8xf32> to vector<8xf32>
    %1048 = vector.shape_cast %1047 : vector<8xf32> to vector<8x1xf32>
    %1049 = vector.broadcast %1048 : vector<8x1xf32> to vector<8x8xf32>
    %1050 = arith.subf %1046, %1049 : vector<8x8xf32>
    %1051 = math.exp %1050 : vector<8x8xf32>
    %cst_204 = arith.constant dense<0.000000e+00> : vector<8xf32>
    %1052 = vector.multi_reduction <add>, %1051, %cst_204 [1] : vector<8x8xf32> to vector<8xf32>
    %1053 = vector.shape_cast %1052 : vector<8xf32> to vector<8x1xf32>
    %1054 = tpu.reciprocal %1053 {approx = true} : vector<8x1xf32> -> vector<8x1xf32>
    %1055 = arith.mulf %2, %1054 : vector<8x1xf32>
    %1056 = vector.broadcast %1055 : vector<8x1xf32> to vector<8x8xf32>
    %1057 = arith.mulf %1051, %1056 : vector<8x8xf32>
    %cst_205 = arith.constant dense<0.000000e+00> : vector<8xf32>
    %1058 = vector.multi_reduction <add>, %1057, %cst_205 [0] : vector<8x8xf32> to vector<8xf32>
    %1059 = vector.shape_cast %1058 : vector<8xf32> to vector<1x8xf32>
    %cst_206 = arith.constant dense<0.000000e+00> : vector<1x16xf32>
    %1060 = tpu.matmul %1059, %938, %cst_206 {dimension_numbers = #tpu.dot_dimension_numbers<[1], [0], [0], [1], [0, 0, 1, 1], [], []>} : vector<1x8xf32>, vector<8x16xf32>, vector<1x16xf32> -> vector<1x16xf32>
    %1061 = arith.addf %935, %1060 : vector<1x16xf32>
    %1062 = tpu.concatenate %553, %1061 in 0 : vector<1x16xf32>, vector<1x16xf32> -> vector<2x16xf32>
    %c0_207 = arith.constant 0 : index
    %c0_208 = arith.constant 0 : index
    %1063 = vector.load %arg5[%c0_207, %c0_208] : memref<2x16xf32, #tpu.memory_space<vmem>>, vector<2x16xf32>
    tpu.vector_store %arg5[%c0_207, %c0_208], %1062 {strides = array<i32>} : memref<2x16xf32, #tpu.memory_space<vmem>>, vector<2x16xf32>,
    return
  }
  func.func @transform_0(%arg0: i32) -> (i32, i32, i32) {
    %c0_i32 = arith.constant 0 : i32
    %c0_i32_0 = arith.constant 0 : i32
    %c0_i32_1 = arith.constant 0 : i32
    return %arg0, %c0_i32, %c0_i32_0 : i32, i32, i32
  }
  func.func @transform_1(%arg0: i32) -> (i32, i32) {
    %c0_i32 = arith.constant 0 : i32
    %c0_i32_0 = arith.constant 0 : i32
    %c0_i32_1 = arith.constant 0 : i32
    return %c0_i32, %c0_i32_0 : i32, i32
  }
  func.func @transform_2(%arg0: i32) -> (i32, i32) {
    %c0_i32 = arith.constant 0 : i32
    %c0_i32_0 = arith.constant 0 : i32
    %c0_i32_1 = arith.constant 0 : i32
    return %c0_i32, %c0_i32_0 : i32, i32
  }
  func.func @transform_3(%arg0: i32) -> (i32, i32) {
    %c0_i32 = arith.constant 0 : i32
    %c0_i32_0 = arith.constant 0 : i32
    %c0_i32_1 = arith.constant 0 : i32
    return %c0_i32, %c0_i32_0 : i32, i32
  }
  func.func @transform_4(%arg0: i32) -> (i32, i32) {
    %c0_i32 = arith.constant 0 : i32
    %c0_i32_0 = arith.constant 0 : i32
    return %arg0, %c0_i32 : i32, i32
  }
}

</mosaic_0001>

<bundles_post_ra>
// kernel: tpu_custom_call.1
= control target key start
LH: loop header
LB: loop body
LE: loop exit
PB: predicated region body
PF: predicated region fallthrough
CT: control target
= control target key end

     0   :  { %9 = vsyncpa [#allocation3], 0  ;;  %s4503_s0 = inlined_call_operand.hbm [shape: f32[2,8,32], index: 0, kind: input, shape index: {}]   ;;  %s4504_s1 = inlined_call_operand.hbm [shape: f32[32,256], index: 1, kind: input, shape index: {}]   ;;  %s4505_s2 = inlined_call_operand.hbm [shape: f32[16,17], index: 2, kind: input, shape index: {}]   ;;  %s4506_s3 = inlined_call_operand.vmem [shape: f32[8,1], index: 3, kind: input, shape index: {}]   ;;  %s4507_s4 = inlined_call_operand.hbm [shape: f32[2,16], index: 4, kind: output, shape index: {}]  }
   0x1   :  { %10 = vsyncpa [#allocation6], 0 }
   0x2   :  { %11 = vsyncpa [#allocation4], 0  ;;  %s3633_s15 = smov [#allocation5]  }
   0x3   :  { %s29_s16 = sshll.u32 %s3633_s15, 4  ;;  %s30_s16 = int_to_ptr.vmem [resolvable:$true] %s29_s16 }
   0x4   :  { %s3555_s17 = scalar_lea.vmem %s30_s16, 1024  ;;  %p3560_p1 = scmp.lt.s32.totalorder %s30_s16, %s30_s16 }
   0x5   :  { %p3556_p0 = scmp.ne.s32.totalorder %s30_s16, %s3555_s17  ;;  %p3561_p2 = scmp.lt.s32.totalorder %s3555_s17, %s3555_s17 }
   0x7   :  { %p3562_p3 = por %p3561_p2, %p3560_p1 }
   0x9   :  { %p3563_p4 = pnand %p3562_p3, %p3556_p0 }
   0xb   :  { %3566 = shalt.err (!%p3563_p4)
}
   0xc   :  { %s3634_s18 = smov 256   ;;  %s3635_s19 = smov 16  }
   0xd   :  { %35 = dma.hbm_to_vmem [thread:$0]  %s4504_s1, 1024, %s30_s16, [#allocation6], %s3634_s18, %s3634_s18, %s3635_s19  }
   0xe   :  { %s3636_s22 = smov [#allocation2]  }
   0xf   :  { %s17_s23 = sshll.u32 %s3636_s22, 4  ;;  %s18_s23 = int_to_ptr.vmem [resolvable:$true] %s17_s23 }
  0x10   :  { %s3575_s24 = scalar_lea.vmem %s18_s23, 256  ;;  %p3580_p6 = scmp.lt.s32.totalorder %s18_s23, %s18_s23 }
  0x11   :  { %p3576_p5 = scmp.ne.s32.totalorder %s18_s23, %s3575_s24  ;;  %p3581_p7 = scmp.lt.s32.totalorder %s3575_s24, %s3575_s24 }
  0x13   :  { %p3582_p8 = por %p3581_p7, %p3580_p6 }
  0x15   :  { %p3583_p9 = pnand %p3582_p8, %p3576_p5 }
  0x17   :  { %3586 = shalt.err (!%p3583_p9)
}
  0x18   :  { %s3637_s25 = smov 128   ;;  %s3638_s26 = smov 8  }
  0x19   :  { %23 = dma.hbm_to_vmem [thread:$0]  %s4503_s0, 256, %s18_s23, [#allocation3], %s3637_s25, %s3637_s25, %s3638_s26  }
  0x1a   :  { %s3639_s29 = smov [#allocation7]  }
  0x1b   :  { %s41_s30 = sshll.u32 %s3639_s29, 4  ;;  %s42_s30 = int_to_ptr.vmem [resolvable:$true] %s41_s30 }
  0x1c   :  { %s3595_s1 = scalar_lea.vmem %s42_s30, 256  ;;  %p3600_p11 = scmp.lt.s32.totalorder %s42_s30, %s42_s30 }
  0x1d   :  { %p3596_p10 = scmp.ne.s32.totalorder %s42_s30, %s3595_s1  ;;  %p3601_p12 = scmp.lt.s32.totalorder %s3595_s1, %s3595_s1 }
  0x1f   :  { %p3602_p13 = por %p3601_p12, %p3600_p11 }
  0x21   :  { %p3603_p0 = pnand %p3602_p13, %p3596_p10 }
  0x23   :  { %3606 = shalt.err (!%p3603_p0)
}
  0x24   :  { %47 = dma.hbm_to_vmem [thread:$0]  %s4505_s2, 256, %s42_s30, [#allocation6], %s3637_s25, %s3637_s25, %s3638_s26  }
  0x25   :  { %3627 = dma.done.wait [#allocation3], 256  }
  0x26   :  { %3628 = vsyncadd [#allocation3], 4294967040 }
  0x27   :  { %3629 = dma.done.wait [#allocation6], 1280  }
  0x28   :  { %3630 = vsyncadd [#allocation6], 4294966016  ;;  %v3640_v0 = vmov 0.0   ;;  %v3703_v1 = vld [vmem:[#allocation5 + $0x38] sm:$0xff]  ;;  %v3705_v2 = vld [vmem:[#allocation5 + $0x30] sm:$0xff]  ;;  %vm4508_vm0 = vcmask 261120   ;;  %v70_v44 = vlaneseq }
  0x29   :  { %166 = vmatprep.mubr.f32.mxu0 %v3640_v0  ;;  %3204 = vmatprep.subr.mxu1 %v3640_v0  ;;  %v3707_v3 = vld [vmem:[#allocation5 + $0x28] sm:$0xff]  ;;  %v3710_v4 = vld [vmem:[#allocation5 + $0x20] sm:$0xff]  ;;  %v3713_v5 = vld [vmem:[#allocation5 + $0x18] sm:$0xff]  ;;  %vm4510_vm1 = vmmov 0   ;;  %s3642_s0 = smov 112   ;;  %v3643_v13 = vmov 1  }
  0x2a   :  { %126 = vmatprep.subr.mxu0 %v3703_v1  ;;  %v3716_v6 = vld [vmem:[#allocation5 + $0x10] sm:$0xff]  ;;  %v3719_v7 = vld [vmem:[#allocation5 + $0x8] sm:$0xff]  ;;  %v3722_v8 = vld [vmem:[#allocation5] sm:$0xff]  ;;  %3208 = vmatprep.mubr.msk.f32.mxu1 %vm4510_vm1, %v3640_v0  ;;  %v3644_v14 = vmov 0   ;;  %s3645_s2 = smov 48   ;;  %s3646_s7 = smov 80  }
  0x2b   :  { %127 = vmatpush1.msra.mxu0 %v3705_v2  ;;  %v97_v9 = vld [vmem:[#allocation2] sm:$0xff]  ;;  %v3729_v10 = vld [vmem:[#allocation7 + $0x8] sm:$0xff]  ;;  %v3731_v11 = vld [vmem:[#allocation7] sm:$0xff]  ;;  %3374 = vset.pattern.permute.xlu0 %v3643_v13  ;;  %s3647_s8 = smov 64   ;;  %vm4509_vm2 = vcmask 130048   ;;  %v3648_v24 = vmov 4  }
  0x2c   :  { %128 = vmatprep.subr.mxu0 %v3707_v3  ;;  %3205 = vmatpush3.msra.mxu1 %v3729_v10  ;;  %v3649_v25 = vmov 2   ;;  %v3650_v29 = vmov 7   ;;  %v3651_v30 = vmov 3   ;;  %v3652_v33 = vmov 10   ;;  %s3663_s11 = smov 32   ;;  %s3664_s12 = smov 96  }
  0x2d   :  { %129 = vmatpush1.msra.mxu0 %v3710_v4  ;;  %3206 = vmatprep.subr.mxu1 %v3640_v0  ;;  %v3653_v34 = vmov 5   ;;  %v3654_v35 = vmov 13   ;;  %v3655_v36 = vmov 6   ;;  %v3656_v37 = vmov 16  }
  0x2e   :  { %130 = vmatprep.subr.mxu0 %v3713_v5  ;;  %3207 = vmatpush3.msra.mxu1 %v3731_v11  ;;  %v3657_v38 = vmov 8   ;;  %v3658_v39 = vmov 9   ;;  %v3659_v40 = vmov 11   ;;  %v3660_v41 = vmov 12  }
  0x2f   :  { %131 = vmatpush1.msra.mxu0 %v3716_v6  ;;  %3211 = vmatprep.subr.mxu1 %v3640_v0  ;;  %v3661_v42 = vmov 14   ;;  %v3662_v43 = vmov 15   ;;  %v71_v45 = vshrl.u32 %v70_v44, 7  ;;  %v73_v46 = vand.u32 127, %v70_v44 }
  0x30   :  { %132 = vmatprep.subr.mxu0 %v3719_v7  ;;  %3373 = vset.pattern.permute.xlu1 %v3644_v14 }
  0x31   :  { %133 = vmatpush1.msra.mxu0 %v3722_v8  ;;  %v74_v47 = vsub.s32 %v73_v46, %v71_v45 }
  0x32   :  { %3114 = vmatmul.mubr.msk.f32.vlgmr.msra.gmra.mxu0 %vm4508_vm0, %v97_v9  ;;  %3216 = vmatprep.subr.mxu0 %v3640_v0 }
  0x33   :  { %3217 = vmatpush3.msra.mxu0 %v3729_v10  ;;  %3220 = vmatprep.mubr.msk.f32.mxu0 %vm4510_vm1, %v3640_v0  ;;  %vm77_vm3 = vcmp.lt.s32.totalorder %v74_v47, 8 }
  0x34   :  { %3218 = vmatprep.subr.mxu0 %v3640_v0  ;;  %v78_v48 = vsel %vm77_vm3, %v74_v47, 8 }
  0x35   :  { %3219 = vmatpush3.msra.mxu0 %v3731_v11  ;;  %v3852_v49 = vadd.s32 8, %v78_v48 }
  0x36   :  { %3228 = vmatprep.subr.mxu0 %v3640_v0 }
  0x37   :  { %vm81_vm4 = vcmp.eq.s32.totalorder %v3852_v49, 1  ;;  %vm80_vm5 = vcmp.eq.s32.totalorder %v3852_v49, 0  ;;  %vm82_vm6 = vcmp.eq.s32.totalorder %v3852_v49, 2  ;;  %vm83_vm7 = vcmp.eq.s32.totalorder %v3852_v49, 3 }
  0x38   :  { %vm84_vm8 = vcmp.eq.s32.totalorder %v3852_v49, 4  ;;  %vm85_vm9 = vcmp.eq.s32.totalorder %v3852_v49, 5  ;;  %vm4514_vm10 = vcmp.eq.s32.totalorder %v3852_v49, 6  ;;  %vm87_vm11 = vcmp.eq.s32.totalorder %v3852_v49, 7 }
  0x39   :  { %vm4515_vm12 = vcmp.eq.s32.totalorder %v3852_v49, 8  ;;  %vm89_vm13 = vcmp.eq.s32.totalorder %v3852_v49, 9  ;;  %vm90_vm14 = vcmp.eq.s32.totalorder %v3852_v49, 10  ;;  %vm4512_vm15 = vcmp.eq.s32.totalorder %v3852_v49, 11 }
  0x3a   :  { %vm92_vm3 = vcmp.eq.s32.totalorder %v3852_v49, 12  ;;  %vm4513_vm0 = vcmp.eq.s32.totalorder %v3852_v49, 13 }
  0xf2   :  { %v3745_v12 = vpop.f32.mrf.mxu0 }
  0xf3   :  { %352 = vrot.lane.b32.xlu1 %v3745_v12, %s3642_s0  ;;  %453 = vrot.lane.b32.xlu0 %v3745_v12, %s3635_s19 }
  0xf4   :  { %v3776_v20 = vpop.f32.mrf.mxu0 }
  0xf7   :  { %632 = vrot.lane.b32.xlu1 %v3745_v12, %s3645_s2  ;;  %174 = vrot.lane.b32.xlu0 %v3745_v12, %s3646_s7 }
  0xfb   :  { %630 = vrot.lane.b32.xlu0 %v3745_v12, %s3647_s8 }
 0x165   :  { %v454_v15 = vpop.permute.xlu0 %453  ;;  %v353_v16 = vpop.permute.xlu1 %352 }
 0x166   :  { %3221 = vmatmul.mubr.msk.f32.vlgmr.msra.gmra.mxu0 %vm4509_vm2, %v454_v15 }
 0x167   :  { %3230 = vmatprep.mubr.msk.f32.mxu0 %vm4510_vm1, %v3640_v0 }
 0x169   :  { %v175_v17 = vpop.permute.xlu0 %174  ;;  %v633_v18 = vpop.permute.xlu1 %632 }
 0x16a   :  { %3209 = vmatmul.mubr.msk.f32.vlgmr.msra.gmra.mxu1 %vm4509_vm2, %v175_v17 }
 0x16b   :  { %3212 = vmatpush3.xpose.msk.msra.mxu1 %vm4509_vm2, %v353_v16  ;;  %3213 = vmatprep.mubr.msk.f32.mxu1 %vm4510_vm1, %v3640_v0 }
 0x16c   :  { %3223 = vmatprep.subr.mxu1 %v3640_v0 }
 0x16d   :  { %v631_v19 = vpop.permute.xlu0 %630 }
 0x16e   :  { %3214 = vmatmul.mubr.msk.f32.vlgmr.msra.gmra.mxu1 %vm4509_vm2, %v3745_v12 }
 0x16f   :  { %3224 = vmatpush3.xpose.msk.msra.mxu1 %vm4509_vm2, %v633_v18  ;;  %3225 = vmatprep.mubr.msk.f32.mxu1 %vm4510_vm1, %v3640_v0 }
 0x170   :  { %3233 = vmatprep.subr.mxu1 %v3640_v0 }
 0x172   :  { %3226 = vmatmul.mubr.msk.f32.vlgmr.msra.gmra.mxu1 %vm4509_vm2, %v631_v19  ;;  %vm94_vm2 = vcmp.eq.s32.totalorder %v3852_v49, 14 }
 0x173   :  { %3235 = vmatprep.mubr.msk.f32.mxu1 %vm4510_vm1, %v3640_v0  ;;  %vm4518_vm1 = vcmp.eq.s32.totalorder %v3852_v49, 15 }
 0x226   :  { %v3778_v21 = vpop.f32.mrf.mxu0 }
 0x227   :  { %535 = vperm.xlu0 %3374, %v3778_v21   ;;  %529 = vperm.xlu1 %3373, %v3778_v21  }
 0x228   :  { %v3222_v22 = vpop.f32.mrf.mxu0 }
 0x22a   :  { %v3782_v23 = vpop.f32.mrf.mxu1 }
 0x22b   :  { %3377 = vset.pattern.permute.xlu0 %v3648_v24  ;;  %3375 = vset.pattern.permute.xlu1 %v3649_v25 }
 0x22c   :  { %v3210_v26 = vpop.f32.mrf.mxu1  ;;  %553 = vperm.xlu0 %3377, %v3778_v21   ;;  %541 = vperm.xlu1 %3375, %v3778_v21  }
 0x22e   :  { %v3788_v27 = vpop.f32.mrf.mxu1 }
 0x230   :  { %v3215_v28 = vpop.f32.mrf.mxu1  ;;  %3380 = vset.pattern.permute.xlu0 %v3650_v29  ;;  %3376 = vset.pattern.permute.xlu1 %v3651_v30 }
 0x231   :  { %571 = vperm.xlu0 %3380, %v3778_v21   ;;  %547 = vperm.xlu1 %3376, %v3778_v21  }
 0x232   :  { %v3794_v31 = vpop.f32.mrf.mxu1 }
 0x234   :  { %v3227_v32 = vpop.f32.mrf.mxu1 }
 0x235   :  { %3383 = vset.pattern.permute.xlu0 %v3652_v33  ;;  %3378 = vset.pattern.permute.xlu1 %v3653_v34 }
 0x236   :  { %589 = vperm.xlu0 %3383, %v3778_v21   ;;  %559 = vperm.xlu1 %3378, %v3778_v21  }
 0x23a   :  { %3386 = vset.pattern.permute.xlu0 %v3654_v35  ;;  %3379 = vset.pattern.permute.xlu1 %v3655_v36 }
 0x23b   :  { %607 = vperm.xlu0 %3386, %v3778_v21   ;;  %565 = vperm.xlu1 %3379, %v3778_v21  }
 0x23f   :  { %3389 = vset.pattern.permute.xlu0 %v3656_v37  ;;  %3381 = vset.pattern.permute.xlu1 %v3657_v38 }
 0x240   :  { %625 = vperm.xlu0 %3389, %v3778_v21   ;;  %577 = vperm.xlu1 %3381, %v3778_v21  }
 0x244   :  { %3392 = vset.pattern.permute.xlu0 %v3649_v25  ;;  %3382 = vset.pattern.permute.xlu1 %v3658_v39 }
 0x245   :  { %263 = vperm.xlu0 %3392, %v3782_v23   ;;  %583 = vperm.xlu1 %3382, %v3778_v21  }
 0x249   :  { %3393 = vset.pattern.permute.xlu0 %v3651_v30  ;;  %3384 = vset.pattern.permute.xlu1 %v3659_v40 }
 0x24a   :  { %269 = vperm.xlu0 %3393, %v3782_v23   ;;  %595 = vperm.xlu1 %3384, %v3778_v21  }
 0x24e   :  { %3394 = vset.pattern.permute.xlu0 %v3648_v24  ;;  %3385 = vset.pattern.permute.xlu1 %v3660_v41 }
 0x24f   :  { %275 = vperm.xlu0 %3394, %v3782_v23   ;;  %601 = vperm.xlu1 %3385, %v3778_v21  }
 0x253   :  { %3395 = vset.pattern.permute.xlu0 %v3653_v34  ;;  %3387 = vset.pattern.permute.xlu1 %v3661_v42 }
 0x254   :  { %281 = vperm.xlu0 %3395, %v3782_v23   ;;  %613 = vperm.xlu1 %3387, %v3778_v21  }
 0x258   :  { %3396 = vset.pattern.permute.xlu0 %v3655_v36  ;;  %3388 = vset.pattern.permute.xlu1 %v3662_v43 }
 0x259   :  { %287 = vperm.xlu0 %3396, %v3782_v23   ;;  %619 = vperm.xlu1 %3388, %v3778_v21  }
 0x25d   :  { %3398 = vset.pattern.permute.xlu0 %v3657_v38  ;;  %3390 = vset.pattern.permute.xlu1 %v3644_v14 }
 0x25e   :  { %299 = vperm.xlu0 %3398, %v3782_v23   ;;  %251 = vperm.xlu1 %3390, %v3782_v23  }
 0x262   :  { %3399 = vset.pattern.permute.xlu0 %v3658_v39  ;;  %3391 = vset.pattern.permute.xlu1 %v3643_v13 }
 0x263   :  { %305 = vperm.xlu0 %3399, %v3782_v23   ;;  %257 = vperm.xlu1 %3391, %v3782_v23  }
 0x267   :  { %3401 = vset.pattern.permute.xlu0 %v3659_v40  ;;  %3397 = vset.pattern.permute.xlu1 %v3650_v29 }
 0x268   :  { %317 = vperm.xlu0 %3401, %v3782_v23   ;;  %293 = vperm.xlu1 %3397, %v3782_v23  }
 0x26c   :  { %3404 = vset.pattern.permute.xlu0 %v3661_v42  ;;  %3400 = vset.pattern.permute.xlu1 %v3652_v33 }
 0x26d   :  { %335 = vperm.xlu0 %3404, %v3782_v23   ;;  %311 = vperm.xlu1 %3400, %v3782_v23  }
 0x271   :  { %3402 = vset.pattern.permute.xlu1 %v3660_v41  ;;  %3407 = vset.pattern.permute.xlu0 %v3644_v14 }
 0x272   :  { %323 = vperm.xlu1 %3402, %v3782_v23  }
 0x276   :  { %3403 = vset.pattern.permute.xlu1 %v3654_v35 }
 0x277   :  { %329 = vperm.xlu1 %3403, %v3782_v23  }
 0x27b   :  { %3405 = vset.pattern.permute.xlu1 %v3662_v43 }
 0x27c   :  { %341 = vperm.xlu1 %3405, %v3782_v23  }
 0x280   :  { %3406 = vset.pattern.permute.xlu1 %v3656_v37 }
 0x2a2   :  { %v530_v50 = vpop.permute.xlu1 %529  ;;  %v536_v51 = vpop.permute.xlu0 %535 }
 0x2a3   :  { %v538_v52 = vsel %vm81_vm4, %v536_v51, 0.0  ;;  %v532_v53 = vsel %vm80_vm5, %v530_v50, 0.0 }
 0x2a4   :  { %v539_v56 = vadd.f32 %v538_v52, %v532_v53 }
 0x2a7   :  { %v542_v54 = vpop.permute.xlu1 %541  ;;  %v554_v60 = vpop.permute.xlu0 %553 }
 0x2a8   :  { %v544_v55 = vsel %vm82_vm6, %v542_v54, 0.0  ;;  %v556_v62 = vsel %vm84_vm8, %v554_v60, 0.0 }
 0x2a9   :  { %v545_v57 = vadd.f32 %v544_v55, %v539_v56 }
 0x2ac   :  { %v548_v58 = vpop.permute.xlu1 %547  ;;  %v572_v19 = vpop.permute.xlu0 %571 }
 0x2ad   :  { %v550_v59 = vsel %vm83_vm7, %v548_v58, 0.0  ;;  %v574_v22 = vsel %vm87_vm11, %v572_v19, 0.0 }
 0x2ae   :  { %v551_v61 = vadd.f32 %v550_v59, %v545_v57 }
 0x2b0   :  { %v557_v9 = vadd.f32 %v556_v62, %v551_v61 }
 0x2b1   :  { %v560_v63 = vpop.permute.xlu1 %559  ;;  %v590_v47 = vpop.permute.xlu0 %589 }
 0x2b2   :  { %v562_v15 = vsel %vm85_vm9, %v560_v63, 0.0  ;;  %v592_v50 = vsel %vm90_vm14, %v590_v47, 0.0 }
 0x2b3   :  { %v563_v16 = vadd.f32 %v562_v15, %v557_v9 }
 0x2b6   :  { %v566_v17 = vpop.permute.xlu1 %565  ;;  %v608_v57 = vpop.permute.xlu0 %607 }
 0x2b7   :  { %v568_v18 = vsel %vm4514_vm10, %v566_v17, 0.0  ;;  %v610_v59 = vsel %vm4513_vm0, %v608_v57, 0.0  ;;  %vm4517_vm0 = vcmask 64512  }
 0x2b8   :  { %v569_v21 = vadd.f32 %v568_v18, %v563_v16 }
 0x2ba   :  { %v575_v28 = vadd.f32 %v574_v22, %v569_v21 }
 0x2bb   :  { %v578_v26 = vpop.permute.xlu1 %577  ;;  %v626_v63 = vpop.permute.xlu0 %625 }
 0x2bc   :  { %v580_v32 = vsel %vm4515_vm12, %v578_v26, 0.0 }
 0x2bd   :  { %v581_v44 = vadd.f32 %v580_v32, %v575_v28 }
 0x2c0   :  { %v584_v45 = vpop.permute.xlu1 %583  ;;  %v264_v28 = vpop.permute.xlu0 %263 }
 0x2c1   :  { %v586_v46 = vsel %vm89_vm13, %v584_v45, 0.0 }
 0x2c2   :  { %v587_v48 = vadd.f32 %v586_v46, %v581_v44 }
 0x2c4   :  { %v593_v52 = vadd.f32 %v592_v50, %v587_v48 }
 0x2c5   :  { %v596_v51 = vpop.permute.xlu1 %595  ;;  %v270_v45 = vpop.permute.xlu0 %269 }
 0x2c6   :  { %v598_v53 = vsel %vm4512_vm15, %v596_v51, 0.0  ;;  %vm4516_vm15 = vcmp.eq.s32.totalorder %v3852_v49, 16 }
 0x2c7   :  { %v599_v54 = vadd.f32 %v598_v53, %v593_v52  ;;  %v628_v18 = vsel %vm4516_vm15, %v626_v63, 0.0 }
 0x2ca   :  { %v602_v55 = vpop.permute.xlu1 %601  ;;  %v276_v48 = vpop.permute.xlu0 %275 }
 0x2cb   :  { %v604_v56 = vsel %vm92_vm3, %v602_v55, 0.0  ;;  %v278_v53 = vsel %vm84_vm8, %v276_v48, 0.0 }
 0x2cc   :  { %v605_v58 = vadd.f32 %v604_v56, %v599_v54 }
 0x2ce   :  { %v611_v61 = vadd.f32 %v610_v59, %v605_v58 }
 0x2cf   :  { %v614_v60 = vpop.permute.xlu1 %613  ;;  %v282_v52 = vpop.permute.xlu0 %281 }
 0x2d0   :  { %v616_v62 = vsel %vm94_vm2, %v614_v60, 0.0  ;;  %v284_v55 = vsel %vm85_vm9, %v282_v52, 0.0 }
 0x2d1   :  { %v617_v9 = vadd.f32 %v616_v62, %v611_v61 }
 0x2d4   :  { %v620_v15 = vpop.permute.xlu1 %619  ;;  %v288_v56 = vpop.permute.xlu0 %287 }
 0x2d5   :  { %v622_v16 = vsel %vm4518_vm1, %v620_v15, 0.0  ;;  %v290_v58 = vsel %vm4514_vm10, %v288_v56, 0.0  ;;  %vm4519_vm10 = vcmp.eq.s32.totalorder %v3852_v49, 11 }
 0x2d6   :  { %v623_v17 = vadd.f32 %v622_v16, %v617_v9 }
 0x2d8   :  { %v629_v19 = vadd.f32 %v628_v18, %v623_v17 }
 0x2d9   :  { %v252_v26 = vpop.permute.xlu1 %251  ;;  %v300_v61 = vpop.permute.xlu0 %299 }
 0x2da   :  { %v705_v21 = vadd.f32 %v3794_v31, %v629_v19  ;;  %v254_v46 = vsel %vm80_vm5, %v252_v26, 0.0  ;;  %v266_v31 = vsel %vm82_vm6, %v264_v28, 0.0  ;;  %v302_v9 = vsel %vm4515_vm12, %v300_v61, 0.0 }
 0x2db   :  { %vm4520_vm12 = vcmp.eq.s32.totalorder %v3852_v49, 13 }
 0x2dc   :  { %v708_v22 = vsel %vm4517_vm0, %v705_v21, -inf }
 0x2dd   :  { %709 = vmax.xlane.f32.xlu1 %v708_v22 }
 0x2de   :  { %v258_v32 = vpop.permute.xlu1 %257  ;;  %v306_v15 = vpop.permute.xlu0 %305 }
 0x2df   :  { %v260_v44 = vsel %vm81_vm4, %v258_v32, 0.0  ;;  %v308_v18 = vsel %vm89_vm13, %v306_v15, 0.0 }
 0x2e0   :  { %v261_v47 = vadd.f32 %v260_v44, %v254_v46 }
 0x2e2   :  { %v267_v50 = vadd.f32 %v266_v31, %v261_v47 }
 0x2e3   :  { %v294_v60 = vpop.permute.xlu1 %293  ;;  %v318_v26 = vpop.permute.xlu0 %317 }
 0x2e4   :  { %v296_v62 = vsel %vm87_vm11, %v294_v60, 0.0  ;;  %v320_v44 = vsel %vm4519_vm10, %v318_v26, 0.0  ;;  %vm4521_vm10 = vmmov 0  }
 0x2e8   :  { %v312_v17 = vpop.permute.xlu1 %311 }
 0x2e9   :  { %v314_v22 = vsel %vm90_vm14, %v312_v17, 0.0 }
 0x2ed   :  { %v324_v32 = vpop.permute.xlu1 %323 }
 0x2ee   :  { %347 = vperm.xlu1 %3406, %v3782_v23   ;;  %v272_v23 = vsel %vm83_vm7, %v270_v45, 0.0  ;;  %v326_v47 = vsel %vm92_vm3, %v324_v32, 0.0 }
 0x2ef   :  { %v273_v51 = vadd.f32 %v272_v23, %v267_v50  ;;  %v336_v50 = vpop.permute.xlu0 %335 }
 0x2f0   :  { %v338_v52 = vsel %vm94_vm2, %v336_v50, 0.0 }
 0x2f1   :  { %v279_v54 = vadd.f32 %v278_v53, %v273_v51 }
 0x2f2   :  { %3408 = vset.pattern.permute.xlu1 %v3644_v14  ;;  %v330_v46 = vpop.permute.xlu1 %329 }
 0x2f3   :  { %v285_v57 = vadd.f32 %v284_v55, %v279_v54  ;;  %v332_v48 = vsel %vm4520_vm12, %v330_v46, 0.0  ;;  %vm4522_vm12 = vcmask 130048  }
 0x2f5   :  { %v291_v59 = vadd.f32 %v290_v58, %v285_v57 }
 0x2f7   :  { %v297_v63 = vadd.f32 %v296_v62, %v291_v59  ;;  %v342_v51 = vpop.permute.xlu1 %341 }
 0x2f8   :  { %v344_v56 = vsel %vm4518_vm1, %v342_v51, 0.0 }
 0x2f9   :  { %v303_v16 = vadd.f32 %v302_v9, %v297_v63 }
 0x2fb   :  { %v309_v19 = vadd.f32 %v308_v18, %v303_v16 }
 0x2fd   :  { %v315_v28 = vadd.f32 %v314_v22, %v309_v19 }
 0x2ff   :  { %v321_v45 = vadd.f32 %v320_v44, %v315_v28 }
 0x301   :  { %v327_v31 = vadd.f32 %v326_v47, %v321_v45 }
 0x303   :  { %v333_v23 = vadd.f32 %v332_v48, %v327_v31 }
 0x305   :  { %v339_v53 = vadd.f32 %v338_v52, %v333_v23 }
 0x307   :  { %v345_v58 = vadd.f32 %v344_v56, %v339_v53 }
 0x366   :  { %v710_v54 = vpop.xlane.xlu1 %709 }
 0x367   :  { %v711_v55 = vsub.f32 %v705_v21, %v710_v54 }
 0x369   :  { %v712_v57 = vmul.f32 1.442695, %v711_v55 }
 0x36a   :  { %v348_v59 = vpop.permute.xlu1 %347 }
 0x36b   :  { %3512 = vpow2.f32 %v712_v57  ;;  %v350_v60 = vsel %vm4516_vm15, %v348_v59, 0.0  ;;  %vm4523_vm15 = vmmov %vm4522_vm12 }
 0x36c   :  { %v351_v61 = vadd.f32 %v350_v60, %v345_v58 }
 0x36e   :  { %v425_v62 = vadd.f32 %v3788_v27, %v351_v61  ;;  %v3950_v27 = vld [vmem:[%s4506_s3] sm:$0xff] }
 0x370   :  { %v429_v63 = vsel %vm4517_vm0, %v425_v62, -inf }
 0x371   :  { %430 = vmax.xlane.f32.xlu1 %v429_v63 }
 0x378   :  { %v3513_v9 = vpop.eup %3512 }
 0x379   :  { %v714_v15 = vsel %vm4517_vm0, %v3513_v9, 0.0 }
 0x37a   :  { %715 = vadd.xlane.f32.xlu0 %v714_v15 }
 0x3fa   :  { %v431_v21 = vpop.xlane.xlu1 %430 }
 0x3fb   :  { %v432_v16 = vsub.f32 %v425_v62, %v431_v21 }
 0x3fd   :  { %v433_v17 = vmul.f32 1.442695, %v432_v16 }
 0x3ff   :  { %3514 = vpow2.f32 %v433_v17 }
 0x403   :  { %v716_v18 = vpop.xlane.xlu0 %715 }
 0x404   :  { %3516 = vrcp.f32 %v716_v18 }
 0x40c   :  { %v3515_v19 = vpop.eup %3514 }
 0x40d   :  { %v435_v22 = vsel %vm4517_vm0, %v3515_v19, 0.0 }
 0x40e   :  { %436 = vadd.xlane.f32.xlu1 %v435_v22 }
 0x411   :  { %v3517_v26 = vpop.eup %3516 }
 0x412   :  { %v718_v28 = vmul.f32 %v3517_v26, %v3950_v27 }
 0x414   :  { %721 = vperm.xlu0 %3407, %v718_v28  }
 0x418   :  { %3409 = vset.pattern.permute.xlu0 %v3643_v13 }
 0x41f   :  { %732 = vrot.lane.b32.xlu1 %v3745_v12, %s3663_s11 }
 0x423   :  { %885 = vrot.lane.b32.xlu1 %v3776_v20, %s3646_s7 }
 0x48f   :  { %v722_v32 = vpop.permute.xlu0 %721 }
 0x490   :  { %v724_v44 = vmul.f32 %v3513_v9, %v722_v32 }
 0x492   :  { %v725_v45 = vsel %vm4517_vm0, %v724_v44, 0.0 }
 0x493   :  { %v726_v46 = vrot.slane %v725_v45, 4 }
 0x495   :  { %v727_v47 = vadd.f32 %v726_v46, %v725_v45 }
 0x497   :  { %v728_v31 = vrot.slane %v727_v47, 2  ;;  %v437_v48 = vpop.xlane.xlu1 %436 }
 0x498   :  { %3518 = vrcp.f32 %v437_v48 }
 0x499   :  { %v729_v50 = vadd.f32 %v728_v31, %v727_v47 }
 0x49b   :  { %v730_v23 = vrot.slane %v729_v50, 1  ;;  %v733_v51 = vpop.permute.xlu1 %732 }
 0x49c   :  { %3229 = vmatpush3.msra.mxu0 %v733_v51 }
 0x49d   :  { %v731_v52 = vadd.f32 %v730_v23, %v729_v50  ;;  %3238 = vmatprep.subr.mxu0 %v3640_v0 }
 0x49f   :  { %3231 = vmatmul.mubr.msk.f32.vlgmr.msra.gmra.mxu0 %vm4517_vm0, %v731_v52  ;;  %v886_v53 = vpop.permute.xlu1 %885 }
 0x4a0   :  { %3239 = vmatpush3.msra.mxu0 %v3729_v10  ;;  %3242 = vmatprep.mubr.msk.f32.mxu0 %vm4521_vm10, %v3640_v0 }
 0x4a1   :  { %3240 = vmatprep.subr.mxu0 %v3640_v0 }
 0x4a2   :  { %3241 = vmatpush3.msra.mxu0 %v3731_v11 }
 0x4a3   :  { %3243 = vmatmul.mubr.msk.f32.vlgmr.msra.gmra.mxu0 %vm4522_vm12, %v886_v53  ;;  %3250 = vmatprep.subr.mxu0 %v3640_v0 }
 0x4a4   :  { %3252 = vmatprep.mubr.msk.f32.mxu0 %vm4521_vm10, %v3640_v0 }
 0x4a5   :  { %v3519_v54 = vpop.eup %3518 }
 0x4a6   :  { %v439_v55 = vmul.f32 %v3519_v54, %v3950_v27 }
 0x4a8   :  { %442 = vperm.xlu1 %3408, %v439_v55  }
 0x4ac   :  { %808 = vrot.lane.b32.xlu1 %v3745_v12, %s3664_s12 }
 0x4b0   :  { %1062 = vrot.lane.b32.xlu1 %v3776_v20, %s3642_s0 }
 0x523   :  { %v443_v56 = vpop.permute.xlu1 %442 }
 0x524   :  { %v445_v57 = vmul.f32 %v3515_v19, %v443_v56 }
 0x526   :  { %v446_v58 = vsel %vm4517_vm0, %v445_v57, 0.0 }
 0x527   :  { %v447_v59 = vrot.slane %v446_v58, 4  ;;  %v809_v60 = vpop.permute.xlu1 %808 }
 0x528   :  { %3234 = vmatpush3.msra.mxu1 %v809_v60 }
 0x529   :  { %v448_v61 = vadd.f32 %v447_v59, %v446_v58  ;;  %3245 = vmatprep.subr.mxu1 %v3640_v0 }
 0x52b   :  { %v449_v62 = vrot.slane %v448_v61, 2  ;;  %v1063_v21 = vpop.permute.xlu1 %1062 }
 0x52d   :  { %v450_v63 = vadd.f32 %v449_v62, %v448_v61 }
 0x52f   :  { %v451_v9 = vrot.slane %v450_v63, 1 }
 0x531   :  { %v452_v15 = vadd.f32 %v451_v9, %v450_v63 }
 0x533   :  { %3236 = vmatmul.mubr.msk.f32.vlgmr.msra.gmra.mxu1 %vm4517_vm0, %v452_v15 }
 0x534   :  { %3246 = vmatpush3.xpose.msk.msra.mxu1 %vm4522_vm12, %v1063_v21  ;;  %3247 = vmatprep.mubr.msk.f32.mxu1 %vm4521_vm10, %v3640_v0  ;;  %vm4525_vm12 = vcmp.eq.s32.totalorder %v3852_v49, 8 }
 0x535   :  { %3255 = vmatprep.subr.mxu1 %v3640_v0 }
 0x537   :  { %3248 = vmatmul.mubr.msk.f32.vlgmr.msra.gmra.mxu1 %vm4523_vm15, %v3776_v20  ;;  %vm4524_vm15 = vcmp.eq.s32.totalorder %v3852_v49, 6 }
 0x538   :  { %3256 = vmatpush3.msra.mxu1 %v3729_v10  ;;  %3259 = vmatprep.mubr.msk.f32.mxu1 %vm4521_vm10, %v3640_v0 }
 0x539   :  { %3257 = vmatprep.subr.mxu1 %v3640_v0 }
 0x53a   :  { %3258 = vmatpush3.msra.mxu1 %v3731_v11 }
 0x53b   :  { %3267 = vmatprep.subr.mxu1 %v3640_v0 }
 0x55f   :  { %v3990_v12 = vpop.f32.mrf.mxu0 }
 0x561   :  { %v3232_v16 = vpop.f32.mrf.mxu0 }
 0x563   :  { %v955_v17 = vpop.f32.mrf.mxu0 }
 0x564   :  { %967 = vperm.xlu0 %3409, %v955_v17   ;;  %961 = vperm.xlu1 %3408, %v955_v17  }
 0x565   :  { %v3244_v18 = vpop.f32.mrf.mxu0 }
 0x568   :  { %3412 = vset.pattern.permute.xlu0 %v3648_v24  ;;  %3410 = vset.pattern.permute.xlu1 %v3649_v25 }
 0x569   :  { %985 = vperm.xlu0 %3412, %v955_v17   ;;  %973 = vperm.xlu1 %3410, %v955_v17  }
 0x56d   :  { %3415 = vset.pattern.permute.xlu0 %v3650_v29  ;;  %3411 = vset.pattern.permute.xlu1 %v3651_v30 }
 0x56e   :  { %1003 = vperm.xlu0 %3415, %v955_v17   ;;  %979 = vperm.xlu1 %3411, %v955_v17  }
 0x572   :  { %3418 = vset.pattern.permute.xlu0 %v3652_v33  ;;  %3413 = vset.pattern.permute.xlu1 %v3653_v34 }
 0x573   :  { %1021 = vperm.xlu0 %3418, %v955_v17   ;;  %991 = vperm.xlu1 %3413, %v955_v17  }
 0x577   :  { %3421 = vset.pattern.permute.xlu0 %v3654_v35  ;;  %3414 = vset.pattern.permute.xlu1 %v3655_v36 }
 0x578   :  { %1039 = vperm.xlu0 %3421, %v955_v17   ;;  %997 = vperm.xlu1 %3414, %v955_v17  }
 0x57c   :  { %3424 = vset.pattern.permute.xlu0 %v3656_v37  ;;  %3416 = vset.pattern.permute.xlu1 %v3657_v38 }
 0x57d   :  { %1057 = vperm.xlu0 %3424, %v955_v17   ;;  %1009 = vperm.xlu1 %3416, %v955_v17  }
 0x581   :  { %3417 = vset.pattern.permute.xlu1 %v3658_v39  ;;  %3426 = vset.pattern.permute.xlu0 %v3643_v13 }
 0x582   :  { %1015 = vperm.xlu1 %3417, %v955_v17  }
 0x586   :  { %3419 = vset.pattern.permute.xlu1 %v3659_v40 }
 0x587   :  { %1027 = vperm.xlu1 %3419, %v955_v17  }
 0x58b   :  { %3420 = vset.pattern.permute.xlu1 %v3660_v41 }
 0x58c   :  { %1033 = vperm.xlu1 %3420, %v955_v17  }
 0x590   :  { %3422 = vset.pattern.permute.xlu1 %v3661_v42 }
 0x591   :  { %1045 = vperm.xlu1 %3422, %v955_v17  }
 0x595   :  { %3423 = vset.pattern.permute.xlu1 %v3662_v43 }
 0x596   :  { %1051 = vperm.xlu1 %3423, %v955_v17  }
 0x59a   :  { %3425 = vset.pattern.permute.xlu1 %v3644_v14 }
 0x5df   :  { %v962_v10 = vpop.permute.xlu1 %961  ;;  %v968_v11 = vpop.permute.xlu0 %967 }
 0x5e0   :  { %v970_v22 = vsel %vm81_vm4, %v968_v11, 0.0  ;;  %v964_v26 = vsel %vm80_vm5, %v962_v10, 0.0 }
 0x5e1   :  { %v971_v32 = vadd.f32 %v970_v22, %v964_v26 }
 0x5e4   :  { %v974_v19 = vpop.permute.xlu1 %973  ;;  %v986_v47 = vpop.permute.xlu0 %985 }
 0x5e5   :  { %v976_v28 = vsel %vm82_vm6, %v974_v19, 0.0  ;;  %v988_v50 = vsel %vm84_vm8, %v986_v47, 0.0 }
 0x5e6   :  { %v977_v45 = vadd.f32 %v976_v28, %v971_v32 }
 0x5e9   :  { %v980_v44 = vpop.permute.xlu1 %979  ;;  %v1004_v55 = vpop.permute.xlu0 %1003 }
 0x5ea   :  { %v982_v46 = vsel %vm83_vm7, %v980_v44, 0.0  ;;  %v1006_v60 = vsel %vm87_vm11, %v1004_v55, 0.0 }
 0x5eb   :  { %v983_v31 = vadd.f32 %v982_v46, %v977_v45 }
 0x5ed   :  { %v989_v23 = vadd.f32 %v988_v50, %v983_v31 }
 0x5ee   :  { %v992_v48 = vpop.permute.xlu1 %991  ;;  %v1022_v17 = vpop.permute.xlu0 %1021 }
 0x5ef   :  { %v994_v51 = vsel %vm85_vm9, %v992_v48, 0.0  ;;  %v1024_v10 = vsel %vm90_vm14, %v1022_v17, 0.0 }
 0x5f0   :  { %v995_v53 = vadd.f32 %v994_v51, %v989_v23 }
 0x5f3   :  { %v4021_v52 = vpop.f32.mrf.mxu1  ;;  %v998_v54 = vpop.permute.xlu1 %997 }
 0x5f4   :  { %v1000_v56 = vsel %vm4524_vm15, %v998_v54, 0.0  ;;  %vm4526_vm15 = vcmp.eq.s32.totalorder %v3852_v49, 11  ;;  %v1040_v44 = vpop.permute.xlu0 %1039 }
 0x5f5   :  { %v3237_v57 = vpop.f32.mrf.mxu1  ;;  %v1001_v58 = vadd.f32 %v1000_v56, %v995_v53 }
 0x5f7   :  { %v1134_v59 = vpop.f32.mrf.mxu1  ;;  %v1007_v62 = vadd.f32 %v1006_v60, %v1001_v58 }
 0x5f8   :  { %v1010_v61 = vpop.permute.xlu1 %1009  ;;  %v1058_v50 = vpop.permute.xlu0 %1057 }
 0x5f9   :  { %v3249_v63 = vpop.f32.mrf.mxu1  ;;  %v1012_v9 = vsel %vm4525_vm12, %v1010_v61, 0.0  ;;  %vm4527_vm12 = vcmp.eq.s32.totalorder %v3852_v49, 13 }
 0x5fa   :  { %v1013_v15 = vadd.f32 %v1012_v9, %v1007_v62  ;;  %v1042_v46 = vsel %vm4527_vm12, %v1040_v44, 0.0  ;;  %vm4529_vm12 = vcmask 130048  }
 0x5fd   :  { %v1016_v21 = vpop.permute.xlu1 %1015 }
 0x5fe   :  { %v1018_v16 = vsel %vm89_vm13, %v1016_v21, 0.0 }
 0x5ff   :  { %v1019_v18 = vadd.f32 %v1018_v16, %v1013_v15 }
 0x601   :  { %v1025_v19 = vadd.f32 %v1024_v10, %v1019_v18 }
 0x602   :  { %v1028_v11 = vpop.permute.xlu1 %1027 }
 0x603   :  { %v1030_v22 = vsel %vm4526_vm15, %v1028_v11, 0.0  ;;  %vm4528_vm15 = vcmp.eq.s32.totalorder %v3852_v49, 16 }
 0x604   :  { %v1031_v26 = vadd.f32 %v1030_v22, %v1025_v19  ;;  %v1060_v55 = vsel %vm4528_vm15, %v1058_v50, 0.0  ;;  %vm4530_vm15 = vmmov %vm4529_vm12 }
 0x607   :  { %v1034_v28 = vpop.permute.xlu1 %1033 }
 0x608   :  { %v1036_v32 = vsel %vm92_vm3, %v1034_v28, 0.0 }
 0x609   :  { %v1037_v45 = vadd.f32 %v1036_v32, %v1031_v26 }
 0x60b   :  { %v1043_v31 = vadd.f32 %v1042_v46, %v1037_v45 }
 0x60c   :  { %v1046_v47 = vpop.permute.xlu1 %1045 }
 0x60d   :  { %v1048_v48 = vsel %vm94_vm2, %v1046_v47, 0.0 }
 0x60e   :  { %v1049_v23 = vadd.f32 %v1048_v48, %v1043_v31 }
 0x611   :  { %v1052_v51 = vpop.permute.xlu1 %1051 }
 0x612   :  { %v1054_v53 = vsel %vm4518_vm1, %v1052_v51, 0.0 }
 0x613   :  { %v1055_v54 = vadd.f32 %v1054_v53, %v1049_v23 }
 0x615   :  { %v1061_v56 = vadd.f32 %v1060_v55, %v1055_v54 }
 0x617   :  { %v1135_v57 = vadd.f32 %v1134_v59, %v1061_v56 }
 0x619   :  { %v1138_v58 = vsel %vm4517_vm0, %v1135_v57, -inf }
 0x61a   :  { %1139 = vmax.xlane.f32.xlu1 %v1138_v58 }
 0x6a3   :  { %v1140_v60 = vpop.xlane.xlu1 %1139 }
 0x6a4   :  { %v1141_v61 = vsub.f32 %v1135_v57, %v1140_v60 }
 0x6a6   :  { %v1142_v62 = vmul.f32 1.442695, %v1141_v61 }
 0x6a8   :  { %3520 = vpow2.f32 %v1142_v62 }
 0x6b5   :  { %v3521_v63 = vpop.eup %3520 }
 0x6b6   :  { %v1144_v9 = vsel %vm4517_vm0, %v3521_v63, 0.0 }
 0x6b7   :  { %1145 = vadd.xlane.f32.xlu0 %v1144_v9 }
 0x6cd   :  { %1239 = vrot.lane.b32.xlu0 %v3776_v20, %s3635_s19 }
 0x6d1   :  { %1416 = vrot.lane.b32.xlu0 %v3776_v20, %s3647_s8 }
 0x740   :  { %v1146_v15 = vpop.xlane.xlu0 %1145 }
 0x741   :  { %3522 = vrcp.f32 %v1146_v15 }
 0x744   :  { %v1240_v59 = vpop.permute.xlu0 %1239 }
 0x745   :  { %3260 = vmatmul.mubr.msk.f32.vlgmr.msra.gmra.mxu1 %vm4529_vm12, %v1240_v59 }
 0x746   :  { %3269 = vmatprep.mubr.msk.f32.mxu1 %vm4521_vm10, %v3640_v0 }
 0x748   :  { %v1417_v46 = vpop.permute.xlu0 %1416 }
 0x74e   :  { %v3523_v21 = vpop.eup %3522 }
 0x74f   :  { %v1148_v16 = vmul.f32 %v3523_v21, %v3950_v27 }
 0x751   :  { %1151 = vperm.xlu1 %3425, %v1148_v16   ;;  %v881_v16 = vadd.f32 %v4021_v52, %v3990_v12 }
 0x755   :  { %1162 = vrot.lane.b32.xlu1 %v3776_v20, %s3664_s12 }
 0x759   :  { %1418 = vrot.lane.b32.xlu1 %v3776_v20, %s3645_s2 }
 0x7cc   :  { %v1152_v17 = vpop.permute.xlu1 %1151 }
 0x7cd   :  { %v1154_v18 = vmul.f32 %v3521_v63, %v1152_v17 }
 0x7cf   :  { %v1155_v10 = vsel %vm4517_vm0, %v1154_v18, 0.0 }
 0x7d0   :  { %v1156_v11 = vrot.slane %v1155_v10, 4  ;;  %v1163_v19 = vpop.permute.xlu1 %1162 }
 0x7d1   :  { %3251 = vmatpush3.msra.mxu0 %v1163_v19 }
 0x7d2   :  { %v1157_v22 = vadd.f32 %v1156_v11, %v1155_v10  ;;  %3262 = vmatprep.subr.mxu0 %v3640_v0 }
 0x7d4   :  { %v1158_v26 = vrot.slane %v1157_v22, 2  ;;  %v1419_v45 = vpop.permute.xlu1 %1418 }
 0x7d6   :  { %v1159_v28 = vadd.f32 %v1158_v26, %v1157_v22 }
 0x7d8   :  { %v1160_v32 = vrot.slane %v1159_v28, 1 }
 0x7da   :  { %v1161_v44 = vadd.f32 %v1160_v32, %v1159_v28 }
 0x7dc   :  { %3253 = vmatmul.mubr.msk.f32.vlgmr.msra.gmra.mxu0 %vm4517_vm0, %v1161_v44 }
 0x7dd   :  { %3263 = vmatpush3.xpose.msk.msra.mxu0 %vm4530_vm15, %v1419_v45  ;;  %3264 = vmatprep.mubr.msk.f32.mxu0 %vm4521_vm10, %v3640_v0  ;;  %vm4531_vm15 = vcmask 261120  }
 0x7de   :  { %1624 = vmatprep.subr.mxu0 %v3703_v1 }
 0x7e0   :  { %3265 = vmatmul.mubr.msk.f32.vlgmr.msra.gmra.mxu0 %vm4529_vm12, %v1417_v46  ;;  %vm4532_vm12 = vcmp.eq.s32.totalorder %v3852_v49, 6 }
 0x7e1   :  { %1625 = vmatpush1.msra.mxu0 %v3705_v2  ;;  %1664 = vmatprep.mubr.f32.mxu0 %v3640_v0 }
 0x7e2   :  { %1626 = vmatprep.subr.mxu0 %v3707_v3  ;;  %v1596_v3 = vld [vmem:[#allocation2 + $0x8] sm:$0xff] }
 0x7e3   :  { %1627 = vmatpush1.msra.mxu0 %v3710_v4  ;;  %v4092_v4 = vld [vmem:[#allocation7 + $0x8] sm:$0xff] }
 0x7e4   :  { %1628 = vmatprep.subr.mxu0 %v3713_v5  ;;  %v4099_v5 = vld [vmem:[#allocation7] sm:$0xff] }
 0x7e5   :  { %1629 = vmatpush1.msra.mxu0 %v3716_v6 }
 0x7e6   :  { %1630 = vmatprep.subr.mxu0 %v3719_v7 }
 0x7e7   :  { %1631 = vmatpush1.msra.mxu0 %v3722_v8 }
 0x7e8   :  { %3284 = vmatprep.subr.mxu0 %v3640_v0  ;;  %3131 = vmatmul.mubr.msk.f32.vlgmr.msra.gmra.mxu0 %vm4531_vm15, %v1596_v3  ;;  %vm4533_vm15 = vcmp.eq.s32.totalorder %v3852_v49, 8 }
 0x7e9   :  { %3285 = vmatpush3.msra.mxu0 %v4092_v4  ;;  %3288 = vmatprep.mubr.msk.f32.mxu0 %vm4521_vm10, %v3640_v0 }
 0x7ea   :  { %3286 = vmatprep.subr.mxu0 %v3640_v0 }
 0x7eb   :  { %3287 = vmatpush3.msra.mxu0 %v4099_v5 }
 0x7ec   :  { %3296 = vmatprep.subr.mxu0 %v3640_v0 }
 0x805   :  { %v1309_v1 = vpop.f32.mrf.mxu1 }
 0x806   :  { %1321 = vperm.xlu0 %3426, %v1309_v1   ;;  %1315 = vperm.xlu1 %3425, %v1309_v1  }
 0x807   :  { %v3261_v2 = vpop.f32.mrf.mxu1 }
 0x80a   :  { %3429 = vset.pattern.permute.xlu0 %v3648_v24  ;;  %3427 = vset.pattern.permute.xlu1 %v3649_v25 }
 0x80b   :  { %1339 = vperm.xlu0 %3429, %v1309_v1   ;;  %1327 = vperm.xlu1 %3427, %v1309_v1  }
 0x80f   :  { %3432 = vset.pattern.permute.xlu0 %v3650_v29  ;;  %3428 = vset.pattern.permute.xlu1 %v3651_v30 }
 0x810   :  { %1357 = vperm.xlu0 %3432, %v1309_v1   ;;  %1333 = vperm.xlu1 %3428, %v1309_v1  }
 0x814   :  { %3435 = vset.pattern.permute.xlu0 %v3652_v33  ;;  %3430 = vset.pattern.permute.xlu1 %v3653_v34 }
 0x815   :  { %1375 = vperm.xlu0 %3435, %v1309_v1   ;;  %1345 = vperm.xlu1 %3430, %v1309_v1  }
 0x819   :  { %3438 = vset.pattern.permute.xlu0 %v3654_v35  ;;  %3431 = vset.pattern.permute.xlu1 %v3655_v36 }
 0x81a   :  { %1393 = vperm.xlu0 %3438, %v1309_v1   ;;  %1351 = vperm.xlu1 %3431, %v1309_v1  }
 0x81e   :  { %3441 = vset.pattern.permute.xlu0 %v3656_v37  ;;  %3433 = vset.pattern.permute.xlu1 %v3657_v38 }
 0x81f   :  { %1411 = vperm.xlu0 %3441, %v1309_v1   ;;  %1363 = vperm.xlu1 %3433, %v1309_v1  }
 0x823   :  { %3434 = vset.pattern.permute.xlu1 %v3658_v39  ;;  %3443 = vset.pattern.permute.xlu0 %v3643_v13 }
 0x824   :  { %1369 = vperm.xlu1 %3434, %v1309_v1  }
 0x828   :  { %3436 = vset.pattern.permute.xlu1 %v3659_v40 }
 0x829   :  { %1381 = vperm.xlu1 %3436, %v1309_v1  }
 0x82d   :  { %3437 = vset.pattern.permute.xlu1 %v3660_v41 }
 0x82e   :  { %1387 = vperm.xlu1 %3437, %v1309_v1  }
 0x832   :  { %3439 = vset.pattern.permute.xlu1 %v3661_v42 }
 0x833   :  { %1399 = vperm.xlu1 %3439, %v1309_v1  }
 0x837   :  { %3440 = vset.pattern.permute.xlu1 %v3662_v43 }
 0x838   :  { %1405 = vperm.xlu1 %3440, %v1309_v1  }
 0x83c   :  { %3442 = vset.pattern.permute.xlu1 %v3644_v14 }
 0x881   :  { %v1316_v6 = vpop.permute.xlu1 %1315  ;;  %v1322_v7 = vpop.permute.xlu0 %1321 }
 0x882   :  { %v1318_v8 = vsel %vm80_vm5, %v1316_v6, 0.0  ;;  %v1324_v47 = vsel %vm81_vm4, %v1322_v7, 0.0 }
 0x883   :  { %v1325_v50 = vadd.f32 %v1324_v47, %v1318_v8 }
 0x886   :  { %v1328_v31 = vpop.permute.xlu1 %1327  ;;  %v1340_v54 = vpop.permute.xlu0 %1339 }
 0x887   :  { %v1330_v48 = vsel %vm82_vm6, %v1328_v31, 0.0  ;;  %v1342_v56 = vsel %vm84_vm8, %v1340_v54, 0.0 }
 0x888   :  { %v1331_v23 = vadd.f32 %v1330_v48, %v1325_v50 }
 0x88b   :  { %v1334_v51 = vpop.permute.xlu1 %1333  ;;  %v1358_v9 = vpop.permute.xlu0 %1357 }
 0x88c   :  { %v1336_v53 = vsel %vm83_vm7, %v1334_v51, 0.0  ;;  %v1360_v59 = vsel %vm87_vm11, %v1358_v9, 0.0 }
 0x88d   :  { %v1337_v55 = vadd.f32 %v1336_v53, %v1331_v23 }
 0x88f   :  { %v1343_v58 = vadd.f32 %v1342_v56, %v1337_v55 }
 0x890   :  { %v1346_v57 = vpop.permute.xlu1 %1345  ;;  %v1376_v44 = vpop.permute.xlu0 %1375 }
 0x891   :  { %v1348_v60 = vsel %vm85_vm9, %v1346_v57, 0.0  ;;  %v1378_v12 = vsel %vm90_vm14, %v1376_v44, 0.0 }
 0x892   :  { %v1349_v61 = vadd.f32 %v1348_v60, %v1343_v58 }
 0x895   :  { %v1352_v62 = vpop.permute.xlu1 %1351  ;;  %v1394_v8 = vpop.permute.xlu0 %1393 }
 0x896   :  { %v1354_v63 = vsel %vm4532_vm12, %v1352_v62, 0.0  ;;  %vm4534_vm12 = vcmp.eq.s32.totalorder %v3852_v49, 11 }
 0x897   :  { %v1355_v15 = vadd.f32 %v1354_v63, %v1349_v61 }
 0x899   :  { %v1361_v17 = vadd.f32 %v1360_v59, %v1355_v15 }
 0x89a   :  { %v1364_v21 = vpop.permute.xlu1 %1363  ;;  %v1412_v51 = vpop.permute.xlu0 %1411 }
 0x89b   :  { %v1366_v18 = vsel %vm4533_vm15, %v1364_v21, 0.0  ;;  %vm4535_vm15 = vcmp.eq.s32.totalorder %v3852_v49, 13 }
 0x89c   :  { %v1234_v10 = vpop.f32.mrf.mxu0  ;;  %v1367_v22 = vadd.f32 %v1366_v18, %v1361_v17  ;;  %v1396_v31 = vsel %vm4535_vm15, %v1394_v8, 0.0  ;;  %vm4537_vm15 = vcmask 130048  }
 0x89d   :  { %v4124_v11 = vadd.f32 %v1234_v10, %v881_v16 }
 0x89e   :  { %v3254_v19 = vpop.f32.mrf.mxu0 }
 0x89f   :  { %v1370_v26 = vpop.permute.xlu1 %1369 }
 0x8a0   :  { %v1372_v28 = vsel %vm89_vm13, %v1370_v26, 0.0  ;;  %v1490_v32 = vpop.f32.mrf.mxu0 }
 0x8a1   :  { %v1373_v45 = vadd.f32 %v1372_v28, %v1367_v22 }
 0x8a2   :  { %v3266_v46 = vpop.f32.mrf.mxu0 }
 0x8a3   :  { %v1379_v1 = vadd.f32 %v1378_v12, %v1373_v45 }
 0x8a4   :  { %v1382_v52 = vpop.permute.xlu1 %1381 }
 0x8a5   :  { %v1384_v2 = vsel %vm4534_vm12, %v1382_v52, 0.0  ;;  %vm4536_vm12 = vcmp.eq.s32.totalorder %v3852_v49, 16 }
 0x8a6   :  { %v1385_v3 = vadd.f32 %v1384_v2, %v1379_v1  ;;  %v1414_v57 = vsel %vm4536_vm12, %v1412_v51, 0.0  ;;  %vm4538_vm12 = vmmov %vm4537_vm15 }
 0x8a8   :  { %v4144_v21 = vpop.f32.mrf.mxu0 }
 0x8a9   :  { %v1388_v6 = vpop.permute.xlu1 %1387 }
 0x8aa   :  { %v1390_v7 = vsel %vm92_vm3, %v1388_v6, 0.0 }
 0x8ab   :  { %v1391_v47 = vadd.f32 %v1390_v7, %v1385_v3  ;;  %v4185_v3 = vpop.f32.mrf.mxu0 }
 0x8ad   :  { %v1397_v50 = vadd.f32 %v1396_v31, %v1391_v47 }
 0x8ae   :  { %v1400_v48 = vpop.permute.xlu1 %1399 }
 0x8af   :  { %v1402_v23 = vsel %vm94_vm2, %v1400_v48, 0.0 }
 0x8b0   :  { %v1403_v53 = vadd.f32 %v1402_v23, %v1397_v50 }
 0x8b3   :  { %v1406_v54 = vpop.permute.xlu1 %1405 }
 0x8b4   :  { %v1408_v55 = vsel %vm4518_vm1, %v1406_v54, 0.0 }
 0x8b5   :  { %v1409_v56 = vadd.f32 %v1408_v55, %v1403_v53 }
 0x8b7   :  { %v1415_v58 = vadd.f32 %v1414_v57, %v1409_v56 }
 0x8b9   :  { %v1491_v60 = vadd.f32 %v1490_v32, %v1415_v58 }
 0x8bb   :  { %v1494_v61 = vsel %vm4517_vm0, %v1491_v60, -inf }
 0x8bc   :  { %1495 = vmax.xlane.f32.xlu1 %v1494_v61 }
 0x945   :  { %v1496_v62 = vpop.xlane.xlu1 %1495 }
 0x946   :  { %v1497_v63 = vsub.f32 %v1491_v60, %v1496_v62 }
 0x948   :  { %v1498_v9 = vmul.f32 1.442695, %v1497_v63 }
 0x94a   :  { %3524 = vpow2.f32 %v1498_v9 }
 0x957   :  { %v3525_v15 = vpop.eup %3524 }
 0x958   :  { %v1500_v59 = vsel %vm4517_vm0, %v3525_v15, 0.0 }
 0x959   :  { %1501 = vadd.xlane.f32.xlu0 %v1500_v59 }
 0x96f   :  { %1949 = vrot.lane.b32.xlu0 %v4144_v21, %s3635_s19 }
 0x973   :  { %1849 = vrot.lane.b32.xlu0 %v4144_v21, %s3642_s0 }
 0x977   :  { %2126 = vrot.lane.b32.xlu0 %v4144_v21, %s3647_s8 }
 0x9e2   :  { %v1502_v16 = vpop.xlane.xlu0 %1501 }
 0x9e3   :  { %3526 = vrcp.f32 %v1502_v16 }
 0x9e6   :  { %v1950_v17 = vpop.permute.xlu0 %1949 }
 0x9e7   :  { %3289 = vmatmul.mubr.msk.f32.vlgmr.msra.gmra.mxu0 %vm4537_vm15, %v1950_v17  ;;  %vm4539_vm15 = vmmov %vm4538_vm12 }
 0x9e8   :  { %3298 = vmatprep.mubr.msk.f32.mxu0 %vm4521_vm10, %v3640_v0 }
 0x9ea   :  { %v1850_v52 = vpop.permute.xlu0 %1849 }
 0x9ee   :  { %v2127_v2 = vpop.permute.xlu0 %2126 }
 0x9f0   :  { %v3527_v18 = vpop.eup %3526 }
 0x9f1   :  { %v1504_v10 = vmul.f32 %v3527_v18, %v3950_v27 }
 0x9f3   :  { %1507 = vperm.xlu1 %3442, %v1504_v10  }
 0x9f7   :  { %1518 = vrot.lane.b32.xlu1 %v3776_v20, %s3663_s11 }
 0x9fb   :  { %1672 = vrot.lane.b32.xlu1 %v4144_v21, %s3646_s7 }
 0x9ff   :  { %2128 = vrot.lane.b32.xlu1 %v4144_v21, %s3645_s2 }
 0xa6e   :  { %v1508_v19 = vpop.permute.xlu1 %1507 }
 0xa6f   :  { %v1510_v22 = vmul.f32 %v3525_v15, %v1508_v19 }
 0xa71   :  { %v1511_v26 = vsel %vm4517_vm0, %v1510_v22, 0.0 }
 0xa72   :  { %v1512_v28 = vrot.slane %v1511_v26, 4  ;;  %v1519_v32 = vpop.permute.xlu1 %1518 }
 0xa73   :  { %3268 = vmatpush3.msra.mxu1 %v1519_v32 }
 0xa74   :  { %v1513_v44 = vadd.f32 %v1512_v28, %v1511_v26  ;;  %3272 = vmatprep.subr.mxu1 %v3640_v0 }
 0xa76   :  { %v1514_v27 = vrot.slane %v1513_v44, 2  ;;  %v1673_v12 = vpop.permute.xlu1 %1672 }
 0xa78   :  { %v1515_v45 = vadd.f32 %v1514_v27, %v1513_v44 }
 0xa7a   :  { %v1516_v46 = vrot.slane %v1515_v45, 1  ;;  %v2129_v1 = vpop.permute.xlu1 %2128 }
 0xa7c   :  { %v1517_v20 = vadd.f32 %v1516_v46, %v1515_v45 }
 0xa7e   :  { %3270 = vmatmul.mubr.msk.f32.vlgmr.msra.gmra.mxu1 %vm4517_vm0, %v1517_v20  ;;  %vm4540_vm0 = vmmov %vm4538_vm12 }
 0xa7f   :  { %3273 = vmatpush3.msra.mxu1 %v4092_v4  ;;  %3276 = vmatprep.mubr.msk.f32.mxu1 %vm4521_vm10, %v3640_v0  ;;  %vm4541_vm1 = vmmov %vm4540_vm0 }
 0xa80   :  { %3274 = vmatprep.subr.mxu1 %v3640_v0 }
 0xa81   :  { %3275 = vmatpush3.msra.mxu1 %v4099_v5 }
 0xa82   :  { %3279 = vmatprep.subr.mxu1 %v3640_v0  ;;  %3277 = vmatmul.mubr.msk.f32.vlgmr.msra.gmra.mxu1 %vm4538_vm12, %v1673_v12  ;;  %vm4542_vm12 = vmmov %vm4540_vm0 }
 0xa83   :  { %3280 = vmatpush3.xpose.msk.msra.mxu1 %vm4539_vm15, %v1850_v52  ;;  %3281 = vmatprep.mubr.msk.f32.mxu1 %vm4521_vm10, %v3640_v0  ;;  %vm4545_vm15 = vcmp.eq.s32.totalorder %v3852_v49, 11 }
 0xa84   :  { %3291 = vmatprep.subr.mxu1 %v3640_v0 }
 0xa86   :  { %3282 = vmatmul.mubr.msk.f32.vlgmr.msra.gmra.mxu1 %vm4540_vm0, %v4144_v21  ;;  %vm4543_vm0 = vcmp.eq.s32.totalorder %v3852_v49, 6 }
 0xa87   :  { %3292 = vmatpush3.xpose.msk.msra.mxu1 %vm4541_vm1, %v2129_v1  ;;  %3293 = vmatprep.mubr.msk.f32.mxu1 %vm4521_vm10, %v3640_v0  ;;  %vm4544_vm1 = vcmp.eq.s32.totalorder %v3852_v49, 8 }
 0xa88   :  { %3301 = vmatprep.subr.mxu1 %v3640_v0 }
 0xa8a   :  { %3294 = vmatmul.mubr.msk.f32.vlgmr.msra.gmra.mxu1 %vm4542_vm12, %v2127_v2  ;;  %vm4546_vm12 = vcmp.eq.s32.totalorder %v3852_v49, 13 }
 0xa8b   :  { %3303 = vmatprep.mubr.msk.f32.mxu1 %vm4521_vm10, %v3640_v0 }
 0xaa7   :  { %v2019_v6 = vpop.f32.mrf.mxu0 }
 0xaa8   :  { %2031 = vperm.xlu0 %3443, %v2019_v6   ;;  %2025 = vperm.xlu1 %3442, %v2019_v6  }
 0xaa9   :  { %v3290_v7 = vpop.f32.mrf.mxu0 }
 0xaac   :  { %3444 = vset.pattern.permute.xlu1 %v3649_v25  ;;  %3446 = vset.pattern.permute.xlu0 %v3648_v24 }
 0xaad   :  { %2037 = vperm.xlu1 %3444, %v2019_v6   ;;  %2049 = vperm.xlu0 %3446, %v2019_v6  }
 0xab1   :  { %3445 = vset.pattern.permute.xlu1 %v3651_v30  ;;  %3449 = vset.pattern.permute.xlu0 %v3650_v29 }
 0xab2   :  { %2043 = vperm.xlu1 %3445, %v2019_v6   ;;  %2067 = vperm.xlu0 %3449, %v2019_v6  }
 0xab6   :  { %3447 = vset.pattern.permute.xlu1 %v3653_v34  ;;  %3452 = vset.pattern.permute.xlu0 %v3652_v33 }
 0xab7   :  { %2055 = vperm.xlu1 %3447, %v2019_v6   ;;  %2085 = vperm.xlu0 %3452, %v2019_v6  }
 0xabb   :  { %3448 = vset.pattern.permute.xlu1 %v3655_v36  ;;  %3455 = vset.pattern.permute.xlu0 %v3654_v35 }
 0xabc   :  { %2061 = vperm.xlu1 %3448, %v2019_v6   ;;  %2103 = vperm.xlu0 %3455, %v2019_v6  }
 0xac0   :  { %3450 = vset.pattern.permute.xlu1 %v3657_v38  ;;  %3458 = vset.pattern.permute.xlu0 %v3656_v37 }
 0xac1   :  { %2073 = vperm.xlu1 %3450, %v2019_v6   ;;  %2121 = vperm.xlu0 %3458, %v2019_v6  }
 0xac5   :  { %3451 = vset.pattern.permute.xlu1 %v3658_v39  ;;  %3461 = vset.pattern.permute.xlu0 %v3649_v25 }
 0xac6   :  { %2079 = vperm.xlu1 %3451, %v2019_v6  }
 0xaca   :  { %3453 = vset.pattern.permute.xlu1 %v3659_v40 }
 0xacb   :  { %2091 = vperm.xlu1 %3453, %v2019_v6  }
 0xacf   :  { %3454 = vset.pattern.permute.xlu1 %v3660_v41 }
 0xad0   :  { %2097 = vperm.xlu1 %3454, %v2019_v6  }
 0xad4   :  { %3456 = vset.pattern.permute.xlu1 %v3661_v42 }
 0xad5   :  { %2109 = vperm.xlu1 %3456, %v2019_v6  }
 0xad9   :  { %3457 = vset.pattern.permute.xlu1 %v3662_v43 }
 0xada   :  { %2115 = vperm.xlu1 %3457, %v2019_v6  }
 0xade   :  { %3459 = vset.pattern.permute.xlu1 %v3644_v14 }
 0xb23   :  { %v2026_v8 = vpop.permute.xlu1 %2025  ;;  %v2032_v51 = vpop.permute.xlu0 %2031 }
 0xb24   :  { %v2034_v55 = vsel %vm81_vm4, %v2032_v51, 0.0  ;;  %v2028_v56 = vsel %vm80_vm5, %v2026_v8, 0.0 }
 0xb25   :  { %v2035_v60 = vadd.f32 %v2034_v55, %v2028_v56 }
 0xb28   :  { %v2038_v47 = vpop.permute.xlu1 %2037  ;;  %v2050_v9 = vpop.permute.xlu0 %2049 }
 0xb29   :  { %v2052_v17 = vsel %vm84_vm8, %v2050_v9, 0.0 }
 0xb2d   :  { %v2044_v31 = vpop.permute.xlu1 %2043  ;;  %v2068_v32 = vpop.permute.xlu0 %2067 }
 0xb2e   :  { %v2046_v61 = vsel %vm83_vm7, %v2044_v31, 0.0  ;;  %v2070_v45 = vsel %vm87_vm11, %v2068_v32, 0.0 }
 0xb32   :  { %v2056_v54 = vpop.permute.xlu1 %2055  ;;  %v2086_v2 = vpop.permute.xlu0 %2085 }
 0xb33   :  { %v2058_v22 = vsel %vm85_vm9, %v2056_v54, 0.0  ;;  %v2088_v7 = vsel %vm90_vm14, %v2086_v2, 0.0 }
 0xb37   :  { %v2062_v15 = vpop.permute.xlu1 %2061  ;;  %v2104_v55 = vpop.permute.xlu0 %2103 }
 0xb38   :  { %v2064_v26 = vsel %vm4543_vm0, %v2062_v15, 0.0  ;;  %v2106_v56 = vsel %vm4546_vm12, %v2104_v55, 0.0  ;;  %vm4547_vm0 = vcmp.eq.s32.totalorder %v3852_v49, 15  ;;  %vm4550_vm12 = vcmp.eq.s32.totalorder %v3852_v49, 6 }
 0xb3c   :  { %v2074_v19 = vpop.permute.xlu1 %2073 }
 0xb3d   :  { %v2076_v20 = vsel %vm4544_vm1, %v2074_v19, 0.0  ;;  %vm4548_vm1 = vcmp.eq.s32.totalorder %v3852_v49, 16 }
 0xb3e   :  { %v1590_v48 = vpop.f32.mrf.mxu1 }
 0xb3f   :  { %v4205_v50 = vadd.f32 %v1590_v48, %v4124_v11  ;;  %v2040_v11 = vsel %vm82_vm6, %v2038_v47, 0.0 }
 0xb40   :  { %v3271_v23 = vpop.f32.mrf.mxu1  ;;  %v2041_v63 = vadd.f32 %v2040_v11, %v2035_v60 }
 0xb41   :  { %v2080_v27 = vpop.permute.xlu1 %2079 }
 0xb42   :  { %v4207_v53 = vpop.f32.mrf.mxu1  ;;  %v2047_v16 = vadd.f32 %v2046_v61, %v2041_v63  ;;  %v2082_v52 = vsel %vm89_vm13, %v2080_v27, 0.0  ;;  %v2122_v63 = vpop.permute.xlu0 %2121 }
 0xb43   :  { %1760 = vperm.xlu0 %3461, %v4207_v53   ;;  %1748 = vperm.xlu1 %3459, %v4207_v53   ;;  %v2124_v15 = vsel %vm4548_vm1, %v2122_v63, 0.0  ;;  %vm4552_vm1 = vcmp.eq.s32.totalorder %v3852_v49, 11 }
 0xb44   :  { %v3278_v57 = vpop.f32.mrf.mxu1  ;;  %v2053_v10 = vadd.f32 %v2052_v17, %v2047_v16 }
 0xb46   :  { %v4217_v58 = vpop.f32.mrf.mxu1  ;;  %v2059_v28 = vadd.f32 %v2058_v22, %v2053_v10  ;;  %v2092_v12 = vpop.permute.xlu1 %2091 }
 0xb47   :  { %3462 = vset.pattern.permute.xlu0 %v3651_v30  ;;  %3460 = vset.pattern.permute.xlu1 %v3643_v13  ;;  %v2094_v31 = vsel %vm4545_vm15, %v2092_v12, 0.0  ;;  %vm4549_vm15 = vcmask 64512  }
 0xb48   :  { %v3283_v62 = vpop.f32.mrf.mxu1  ;;  %1766 = vperm.xlu0 %3462, %v4207_v53   ;;  %1754 = vperm.xlu1 %3460, %v4207_v53   ;;  %v2065_v44 = vadd.f32 %v2064_v26, %v2059_v28 }
 0xb4a   :  { %v4225_v59 = vpop.f32.mrf.mxu1  ;;  %v2071_v46 = vadd.f32 %v2070_v45, %v2065_v44 }
 0xb4b   :  { %v2098_v8 = vpop.permute.xlu1 %2097 }
 0xb4c   :  { %v3295_v18 = vpop.f32.mrf.mxu1  ;;  %3463 = vset.pattern.permute.xlu0 %v3648_v24  ;;  %3466 = vset.pattern.permute.xlu1 %v3650_v29  ;;  %v2077_v1 = vadd.f32 %v2076_v20, %v2071_v46  ;;  %v2100_v48 = vsel %vm92_vm3, %v2098_v8, 0.0 }
 0xb4d   :  { %1772 = vperm.xlu0 %3463, %v4207_v53   ;;  %1790 = vperm.xlu1 %3466, %v4207_v53  }
 0xb4e   :  { %v2083_v6 = vadd.f32 %v2082_v52, %v2077_v1 }
 0xb50   :  { %v2089_v47 = vadd.f32 %v2088_v7, %v2083_v6  ;;  %v2110_v51 = vpop.permute.xlu1 %2109 }
 0xb51   :  { %3464 = vset.pattern.permute.xlu0 %v3653_v34  ;;  %3470 = vset.pattern.permute.xlu1 %v3659_v40  ;;  %v2112_v60 = vsel %vm94_vm2, %v2110_v51, 0.0 }
 0xb52   :  { %1778 = vperm.xlu0 %3464, %v4207_v53   ;;  %1814 = vperm.xlu1 %3470, %v4207_v53   ;;  %v2095_v23 = vadd.f32 %v2094_v31, %v2089_v47 }
 0xb54   :  { %v2101_v54 = vadd.f32 %v2100_v48, %v2095_v23 }
 0xb55   :  { %v2116_v11 = vpop.permute.xlu1 %2115 }
 0xb56   :  { %3465 = vset.pattern.permute.xlu0 %v3655_v36  ;;  %3471 = vset.pattern.permute.xlu1 %v3660_v41  ;;  %v2107_v57 = vadd.f32 %v2106_v56, %v2101_v54  ;;  %v2118_v61 = vsel %vm4547_vm0, %v2116_v11, 0.0  ;;  %vm4551_vm0 = vcmp.eq.s32.totalorder %v3852_v49, 8 }
 0xb57   :  { %1784 = vperm.xlu0 %3465, %v4207_v53   ;;  %1820 = vperm.xlu1 %3471, %v4207_v53  }
 0xb58   :  { %v2113_v62 = vadd.f32 %v2112_v60, %v2107_v57 }
 0xb5a   :  { %v2119_v9 = vadd.f32 %v2118_v61, %v2113_v62 }
 0xb5b   :  { %3467 = vset.pattern.permute.xlu0 %v3657_v38  ;;  %3473 = vset.pattern.permute.xlu1 %v3661_v42 }
 0xb5c   :  { %1796 = vperm.xlu0 %3467, %v4207_v53   ;;  %1832 = vperm.xlu1 %3473, %v4207_v53   ;;  %v2125_v16 = vadd.f32 %v2124_v15, %v2119_v9 }
 0xb5e   :  { %v2201_v17 = vadd.f32 %v4225_v59, %v2125_v16 }
 0xb60   :  { %3468 = vset.pattern.permute.xlu0 %v3658_v39  ;;  %3474 = vset.pattern.permute.xlu1 %v3662_v43  ;;  %v2204_v18 = vsel %vm4549_vm15, %v2201_v17, -inf  ;;  %vm4553_vm15 = vcmp.eq.s32.totalorder %v3852_v49, 13 }
 0xb61   :  { %1802 = vperm.xlu0 %3468, %v4207_v53  }
 0xb65   :  { %3469 = vset.pattern.permute.xlu0 %v3652_v33 }
 0xb66   :  { %1808 = vperm.xlu0 %3469, %v4207_v53  }
 0xb6a   :  { %3472 = vset.pattern.permute.xlu0 %v3654_v35 }
 0xb6b   :  { %1826 = vperm.xlu0 %3472, %v4207_v53  }
 0xb6f   :  { %3475 = vset.pattern.permute.xlu0 %v3656_v37 }
 0xb70   :  { %1844 = vperm.xlu0 %3475, %v4207_v53  }
 0xb74   :  { %3477 = vset.pattern.permute.xlu0 %v3643_v13 }
 0xb80   :  { %2205 = vmax.xlane.f32.xlu1 %v2204_v18 }
 0xb91   :  { %1838 = vperm.xlu1 %3474, %v4207_v53  }
 0xb95   :  { %3476 = vset.pattern.permute.xlu1 %v3644_v14 }
 0xbbe   :  { %v1761_v10 = vpop.permute.xlu0 %1760  ;;  %v1749_v22 = vpop.permute.xlu1 %1748 }
 0xbbf   :  { %v1751_v27 = vsel %vm80_vm5, %v1749_v22, 0.0  ;;  %v1763_v45 = vsel %vm82_vm6, %v1761_v10, 0.0 }
 0xbc3   :  { %v1767_v19 = vpop.permute.xlu0 %1766  ;;  %v1755_v28 = vpop.permute.xlu1 %1754 }
 0xbc4   :  { %v1757_v32 = vsel %vm81_vm4, %v1755_v28, 0.0  ;;  %v1769_v20 = vsel %vm83_vm7, %v1767_v19, 0.0 }
 0xbc5   :  { %v1758_v59 = vadd.f32 %v1757_v32, %v1751_v27 }
 0xbc7   :  { %v1764_v46 = vadd.f32 %v1763_v45, %v1758_v59 }
 0xbc8   :  { %v1773_v26 = vpop.permute.xlu0 %1772  ;;  %v1791_v47 = vpop.permute.xlu1 %1790 }
 0xbc9   :  { %v1770_v12 = vadd.f32 %v1769_v20, %v1764_v46  ;;  %v1775_v52 = vsel %vm84_vm8, %v1773_v26, 0.0  ;;  %v1793_v23 = vsel %vm87_vm11, %v1791_v47, 0.0 }
 0xbcb   :  { %v1776_v6 = vadd.f32 %v1775_v52, %v1770_v12 }
 0xbcd   :  { %v1779_v44 = vpop.permute.xlu0 %1778  ;;  %v1815_v57 = vpop.permute.xlu1 %1814 }
 0xbce   :  { %v1781_v2 = vsel %vm85_vm9, %v1779_v44, 0.0  ;;  %v1817_v9 = vsel %vm4552_vm1, %v1815_v57, 0.0  ;;  %vm4556_vm1 = vcmask 64512  }
 0xbcf   :  { %v1782_v8 = vadd.f32 %v1781_v2, %v1776_v6 }
 0xbd2   :  { %v1785_v53 = vpop.permute.xlu0 %1784  ;;  %v1821_v63 = vpop.permute.xlu1 %1820 }
 0xbd3   :  { %v1787_v7 = vsel %vm4550_vm12, %v1785_v53, 0.0  ;;  %v1823_v18 = vsel %vm92_vm3, %v1821_v63, 0.0  ;;  %vm4554_vm12 = vcmp.eq.s32.totalorder %v3852_v49, 15 }
 0xbd4   :  { %v1788_v31 = vadd.f32 %v1787_v7, %v1782_v8 }
 0xbd6   :  { %v1794_v51 = vadd.f32 %v1793_v23, %v1788_v31 }
 0xbd7   :  { %v1797_v1 = vpop.permute.xlu0 %1796  ;;  %v1833_v10 = vpop.permute.xlu1 %1832 }
 0xbd8   :  { %v1799_v54 = vsel %vm4551_vm0, %v1797_v1, 0.0  ;;  %v1835_v44 = vsel %vm94_vm2, %v1833_v10, 0.0  ;;  %vm4555_vm0 = vcmp.eq.s32.totalorder %v3852_v49, 16 }
 0xbd9   :  { %v1800_v11 = vadd.f32 %v1799_v54, %v1794_v51 }
 0xbdc   :  { %v1803_v48 = vpop.permute.xlu0 %1802 }
 0xbdd   :  { %v1805_v56 = vsel %vm89_vm13, %v1803_v48, 0.0 }
 0xbde   :  { %v1806_v61 = vadd.f32 %v1805_v56, %v1800_v11 }
 0xbe1   :  { %v1809_v55 = vpop.permute.xlu0 %1808 }
 0xbe2   :  { %v1811_v60 = vsel %vm90_vm14, %v1809_v55, 0.0 }
 0xbe3   :  { %v1812_v62 = vadd.f32 %v1811_v60, %v1806_v61 }
 0xbe5   :  { %v1818_v15 = vadd.f32 %v1817_v9, %v1812_v62 }
 0xbe6   :  { %v1827_v16 = vpop.permute.xlu0 %1826 }
 0xbe7   :  { %v1824_v19 = vadd.f32 %v1823_v18, %v1818_v15  ;;  %v1829_v22 = vsel %vm4553_vm15, %v1827_v16, 0.0  ;;  %vm4557_vm15 = vmmov %vm4556_vm1 }
 0xbe9   :  { %v1830_v26 = vadd.f32 %v1829_v22, %v1824_v19 }
 0xbeb   :  { %v1845_v59 = vpop.permute.xlu0 %1844  ;;  %v1836_v45 = vadd.f32 %v1835_v44, %v1830_v26 }
 0xbec   :  { %v1847_v12 = vsel %vm4555_vm0, %v1845_v59, 0.0  ;;  %vm4559_vm0 = vmmov %vm4556_vm1 }
 0xc09   :  { %v2206_v28 = vpop.xlane.xlu1 %2205 }
 0xc0a   :  { %v2207_v32 = vsub.f32 %v2201_v17, %v2206_v28 }
 0xc0c   :  { %v2208_v27 = vmul.f32 1.442695, %v2207_v32 }
 0xc0d   :  { %v1839_v46 = vpop.permute.xlu1 %1838 }
 0xc0e   :  { %3528 = vpow2.f32 %v2208_v27  ;;  %v1841_v53 = vsel %vm4554_vm12, %v1839_v46, 0.0  ;;  %vm4558_vm12 = vmmov %vm4556_vm1 }
 0xc0f   :  { %v1842_v20 = vadd.f32 %v1841_v53, %v1836_v45 }
 0xc11   :  { %v1848_v52 = vadd.f32 %v1847_v12, %v1842_v20 }
 0xc13   :  { %v1922_v1 = vadd.f32 %v4217_v58, %v1848_v52  ;;  %v4324_v58 = vld [vmem:[%s4506_s3] sm:$0xff]  ;;  %s3665_s3 = smov [#allocation8]  }
 0xc14   :  { %s3104_s15 = sshll.u32 %s3665_s3, 4  ;;  %s3105_s15 = int_to_ptr.vmem [resolvable:$true] %s3104_s15 }
 0xc15   :  { %v1925_v17 = vsel %vm4556_vm1, %v1922_v1, -inf  ;;  %vm4560_vm1 = vmmov %vm4559_vm0  ;;  %s3607_s16 = scalar_lea.vmem %s3105_s15, 32  ;;  %p3612_p2 = scmp.lt.s32.totalorder %s3105_s15, %s3105_s15 }
 0xc16   :  { %1926 = vmax.xlane.f32.xlu0 %v1925_v17  ;;  %p3608_p1 = scmp.ne.s32.totalorder %s3105_s15, %s3607_s16  ;;  %p3613_p3 = scmp.lt.s32.totalorder %s3607_s16, %s3607_s16 }
 0xc18   :  { %p3614_p4 = por %p3613_p3, %p3612_p2 }
 0xc1a   :  { %p3615_p5 = pnand %p3614_p4, %p3608_p1 }
 0xc1b   :  { %v3529_v2 = vpop.eup %3528 }
 0xc1c   :  { %v2210_v6 = vsel %vm4557_vm15, %v3529_v2, 0.0  ;;  %vm4561_vm15 = vcmask 130048  }
 0xc1d   :  { %2211 = vadd.xlane.f32.xlu1 %v2210_v6 }
 0xc9f   :  { %v1927_v7 = vpop.xlane.xlu0 %1926 }
 0xca0   :  { %v1928_v8 = vsub.f32 %v1922_v1, %v1927_v7 }
 0xca2   :  { %v1929_v47 = vmul.f32 1.442695, %v1928_v8 }
 0xca4   :  { %3530 = vpow2.f32 %v1929_v47 }
 0xca6   :  { %v2212_v31 = vpop.xlane.xlu1 %2211 }
 0xca7   :  { %3532 = vrcp.f32 %v2212_v31 }
 0xcb1   :  { %v3531_v48 = vpop.eup %3530 }
 0xcb2   :  { %v1931_v23 = vsel %vm4558_vm12, %v3531_v48, 0.0  ;;  %vm4562_vm12 = vmmov %vm4559_vm0 }
 0xcb3   :  { %1932 = vadd.xlane.f32.xlu0 %v1931_v23 }
 0xcb4   :  { %v3533_v51 = vpop.eup %3532 }
 0xcb5   :  { %v2214_v54 = vmul.f32 %v4324_v58, %v3533_v51 }
 0xcb7   :  { %2217 = vperm.xlu1 %3476, %v2214_v54  }
 0xcbb   :  { %2381 = vrot.lane.b32.xlu1 %v4185_v3, %s3646_s7 }
 0xcc9   :  { %2228 = vrot.lane.b32.xlu0 %v4144_v21, %s3663_s11 }
 0xccd   :  { %2558 = vrot.lane.b32.xlu0 %v4185_v3, %s3642_s0 }
 0xd32   :  { %v2218_v55 = vpop.permute.xlu1 %2217 }
 0xd33   :  { %v2220_v56 = vmul.f32 %v3529_v2, %v2218_v55 }
 0xd35   :  { %v2221_v57 = vsel %vm4559_vm0, %v2220_v56, 0.0 }
 0xd36   :  { %v2222_v11 = vrot.slane %v2221_v57, 4  ;;  %v2382_v18 = vpop.permute.xlu1 %2381 }
 0xd38   :  { %v2223_v60 = vadd.f32 %v2222_v11, %v2221_v57 }
 0xd3a   :  { %v2224_v61 = vrot.slane %v2223_v60, 2 }
 0xd3c   :  { %v2225_v62 = vadd.f32 %v2224_v61, %v2223_v60  ;;  %v1933_v63 = vpop.xlane.xlu0 %1932 }
 0xd3d   :  { %3534 = vrcp.f32 %v1933_v63 }
 0xd3e   :  { %v2226_v9 = vrot.slane %v2225_v62, 1 }
 0xd40   :  { %v2227_v15 = vadd.f32 %v2226_v9, %v2225_v62  ;;  %v2229_v16 = vpop.permute.xlu0 %2228 }
 0xd41   :  { %3297 = vmatpush3.msra.mxu0 %v2229_v16 }
 0xd42   :  { %3299 = vmatmul.mubr.msk.f32.vlgmr.msra.gmra.mxu0 %vm4560_vm1, %v2227_v15  ;;  %3306 = vmatprep.subr.mxu0 %v3640_v0  ;;  %vm4563_vm1 = vmmov %vm4561_vm15 }
 0xd43   :  { %3307 = vmatpush3.msra.mxu0 %v4092_v4  ;;  %3310 = vmatprep.mubr.msk.f32.mxu0 %vm4521_vm10, %v3640_v0 }
 0xd44   :  { %3308 = vmatprep.subr.mxu0 %v3640_v0  ;;  %v2559_v20 = vpop.permute.xlu0 %2558 }
 0xd45   :  { %3309 = vmatpush3.msra.mxu0 %v4099_v5 }
 0xd46   :  { %3311 = vmatmul.mubr.msk.f32.vlgmr.msra.gmra.mxu0 %vm4561_vm15, %v2382_v18  ;;  %3318 = vmatprep.subr.mxu0 %v3640_v0  ;;  %vm4564_vm15 = vmmov %vm4563_vm1 }
 0xd47   :  { %3320 = vmatprep.mubr.msk.f32.mxu0 %vm4521_vm10, %v3640_v0 }
 0xd4a   :  { %v3535_v10 = vpop.eup %3534 }
 0xd4b   :  { %v1935_v19 = vmul.f32 %v4324_v58, %v3535_v10 }
 0xd4d   :  { %1938 = vperm.xlu1 %3476, %v1935_v19  }
 0xd51   :  { %2304 = vrot.lane.b32.xlu1 %v4144_v21, %s3664_s12 }
 0xdc8   :  { %v1939_v22 = vpop.permute.xlu1 %1938 }
 0xdc9   :  { %v1941_v26 = vmul.f32 %v3531_v48, %v1939_v22 }
 0xdcb   :  { %v1942_v28 = vsel %vm4562_vm12, %v1941_v26, 0.0  ;;  %vm4565_vm12 = vcmp.eq.s32.totalorder %v3852_v49, 6 }
 0xdcc   :  { %v1943_v32 = vrot.slane %v1942_v28, 4  ;;  %v2305_v44 = vpop.permute.xlu1 %2304 }
 0xdcd   :  { %3302 = vmatpush3.msra.mxu1 %v2305_v44 }
 0xdce   :  { %v1944_v27 = vadd.f32 %v1943_v32, %v1942_v28  ;;  %3313 = vmatprep.subr.mxu1 %v3640_v0 }
 0xdd0   :  { %v1945_v59 = vrot.slane %v1944_v27, 2 }
 0xdd2   :  { %v1946_v45 = vadd.f32 %v1945_v59, %v1944_v27 }
 0xdd4   :  { %v1947_v46 = vrot.slane %v1946_v45, 1 }
 0xdd6   :  { %v1948_v53 = vadd.f32 %v1947_v46, %v1946_v45 }
 0xdd8   :  { %3304 = vmatmul.mubr.msk.f32.vlgmr.msra.gmra.mxu1 %vm4559_vm0, %v1948_v53  ;;  %vm4566_vm0 = vcmp.eq.s32.totalorder %v3852_v49, 8 }
 0xdd9   :  { %3314 = vmatpush3.xpose.msk.msra.mxu1 %vm4563_vm1, %v2559_v20  ;;  %3315 = vmatprep.mubr.msk.f32.mxu1 %vm4521_vm10, %v3640_v0  ;;  %vm4567_vm1 = vcmp.eq.s32.totalorder %v3852_v49, 11 }
 0xdda   :  { %3323 = vmatprep.subr.mxu1 %v3640_v0 }
 0xddc   :  { %3316 = vmatmul.mubr.msk.f32.vlgmr.msra.gmra.mxu1 %vm4564_vm15, %v4185_v3  ;;  %vm4568_vm15 = vcmp.eq.s32.totalorder %v3852_v49, 13 }
 0xddd   :  { %3324 = vmatpush3.msra.mxu1 %v4092_v4  ;;  %3327 = vmatprep.mubr.msk.f32.mxu1 %vm4521_vm10, %v3640_v0 }
 0xdde   :  { %3325 = vmatprep.subr.mxu1 %v3640_v0 }
 0xddf   :  { %3326 = vmatpush3.msra.mxu1 %v4099_v5 }
 0xde0   :  { %3335 = vmatprep.subr.mxu1 %v3640_v0 }
 0xe02   :  { %v4363_v21 = vpop.f32.mrf.mxu0 }
 0xe04   :  { %v3300_v12 = vpop.f32.mrf.mxu0 }
 0xe06   :  { %v2451_v52 = vpop.f32.mrf.mxu0 }
 0xe07   :  { %2463 = vperm.xlu0 %3477, %v2451_v52   ;;  %2457 = vperm.xlu1 %3476, %v2451_v52  }
 0xe08   :  { %v3312_v1 = vpop.f32.mrf.mxu0 }
 0xe0b   :  { %3480 = vset.pattern.permute.xlu0 %v3648_v24  ;;  %3478 = vset.pattern.permute.xlu1 %v3649_v25 }
 0xe0c   :  { %2481 = vperm.xlu0 %3480, %v2451_v52   ;;  %2469 = vperm.xlu1 %3478, %v2451_v52  }
 0xe10   :  { %3483 = vset.pattern.permute.xlu0 %v3650_v29  ;;  %3479 = vset.pattern.permute.xlu1 %v3651_v30 }
 0xe11   :  { %2499 = vperm.xlu0 %3483, %v2451_v52   ;;  %2475 = vperm.xlu1 %3479, %v2451_v52  }
 0xe15   :  { %3486 = vset.pattern.permute.xlu0 %v3652_v33  ;;  %3481 = vset.pattern.permute.xlu1 %v3653_v34 }
 0xe16   :  { %2517 = vperm.xlu0 %3486, %v2451_v52   ;;  %2487 = vperm.xlu1 %3481, %v2451_v52  }
 0xe1a   :  { %3489 = vset.pattern.permute.xlu0 %v3654_v35  ;;  %3482 = vset.pattern.permute.xlu1 %v3655_v36 }
 0xe1b   :  { %2535 = vperm.xlu0 %3489, %v2451_v52   ;;  %2493 = vperm.xlu1 %3482, %v2451_v52  }
 0xe1f   :  { %3492 = vset.pattern.permute.xlu0 %v3656_v37  ;;  %3484 = vset.pattern.permute.xlu1 %v3657_v38 }
 0xe20   :  { %2553 = vperm.xlu0 %3492, %v2451_v52   ;;  %2505 = vperm.xlu1 %3484, %v2451_v52  }
 0xe24   :  { %3485 = vset.pattern.permute.xlu1 %v3658_v39  ;;  %3493 = vset.pattern.permute.xlu0 %v3644_v14 }
 0xe25   :  { %2511 = vperm.xlu1 %3485, %v2451_v52  }
 0xe29   :  { %3487 = vset.pattern.permute.xlu1 %v3659_v40 }
 0xe2a   :  { %2523 = vperm.xlu1 %3487, %v2451_v52  }
 0xe2e   :  { %3488 = vset.pattern.permute.xlu1 %v3660_v41 }
 0xe2f   :  { %2529 = vperm.xlu1 %3488, %v2451_v52  }
 0xe33   :  { %3490 = vset.pattern.permute.xlu1 %v3661_v42 }
 0xe34   :  { %2541 = vperm.xlu1 %3490, %v2451_v52  }
 0xe38   :  { %3491 = vset.pattern.permute.xlu1 %v3662_v43 }
 0xe39   :  { %2547 = vperm.xlu1 %3491, %v2451_v52  }
 0xe3d   :  { %3494 = vset.pattern.permute.xlu1 %v3644_v14 }
 0xe82   :  { %v2458_v4 = vpop.permute.xlu1 %2457  ;;  %v2464_v5 = vpop.permute.xlu0 %2463 }
 0xe83   :  { %v2466_v17 = vsel %vm81_vm4, %v2464_v5, 0.0  ;;  %v2460_v2 = vsel %vm80_vm5, %v2458_v4, 0.0 }
 0xe84   :  { %v2467_v8 = vadd.f32 %v2466_v17, %v2460_v2 }
 0xe87   :  { %v2470_v6 = vpop.permute.xlu1 %2469  ;;  %v2482_v23 = vpop.permute.xlu0 %2481 }
 0xe88   :  { %v2472_v7 = vsel %vm82_vm6, %v2470_v6, 0.0  ;;  %v2484_v54 = vsel %vm84_vm8, %v2482_v23, 0.0 }
 0xe89   :  { %v2473_v47 = vadd.f32 %v2472_v7, %v2467_v8 }
 0xe8c   :  { %v2476_v31 = vpop.permute.xlu1 %2475  ;;  %v2500_v62 = vpop.permute.xlu0 %2499 }
 0xe8d   :  { %v2478_v48 = vsel %vm83_vm7, %v2476_v31, 0.0  ;;  %v2502_v16 = vsel %vm87_vm11, %v2500_v62, 0.0 }
 0xe8e   :  { %v2479_v51 = vadd.f32 %v2478_v48, %v2473_v47 }
 0xe90   :  { %v2485_v56 = vadd.f32 %v2484_v54, %v2479_v51 }
 0xe91   :  { %v2488_v55 = vpop.permute.xlu1 %2487  ;;  %v2518_v27 = vpop.permute.xlu0 %2517 }
 0xe92   :  { %v2490_v57 = vsel %vm85_vm9, %v2488_v55, 0.0  ;;  %v2520_v45 = vsel %vm90_vm14, %v2518_v27, 0.0 }
 0xe93   :  { %v2491_v11 = vadd.f32 %v2490_v57, %v2485_v56 }
 0xe96   :  { %v2494_v60 = vpop.permute.xlu1 %2493  ;;  %v2536_v4 = vpop.permute.xlu0 %2535 }
 0xe97   :  { %v2496_v61 = vsel %vm4565_vm12, %v2494_v60, 0.0  ;;  %v2538_v17 = vsel %vm4568_vm15, %v2536_v4, 0.0  ;;  %vm4569_vm12 = vcmp.eq.s32.totalorder %v3852_v49, 15  ;;  %vm4572_vm15 = vcmask 130048  }
 0xe98   :  { %v2497_v63 = vadd.f32 %v2496_v61, %v2491_v11  ;;  %v4396_v9 = vpop.f32.mrf.mxu1 }
 0xe9a   :  { %v3305_v15 = vpop.f32.mrf.mxu1  ;;  %v2503_v10 = vadd.f32 %v2502_v16, %v2497_v63 }
 0xe9b   :  { %v2506_v18 = vpop.permute.xlu1 %2505  ;;  %v2554_v8 = vpop.permute.xlu0 %2553 }
 0xe9c   :  { %v2630_v19 = vpop.f32.mrf.mxu1  ;;  %v2508_v22 = vsel %vm4566_vm0, %v2506_v18, 0.0  ;;  %vm4570_vm0 = vcmp.eq.s32.totalorder %v3852_v49, 16 }
 0xe9d   :  { %v2509_v28 = vadd.f32 %v2508_v22, %v2503_v10  ;;  %v2556_v51 = vsel %vm4570_vm0, %v2554_v8, 0.0 }
 0xe9e   :  { %v3317_v26 = vpop.f32.mrf.mxu1 }
 0xea0   :  { %v2512_v32 = vpop.permute.xlu1 %2511 }
 0xea1   :  { %v2514_v44 = vsel %vm89_vm13, %v2512_v32, 0.0 }
 0xea2   :  { %v2515_v59 = vadd.f32 %v2514_v44, %v2509_v28 }
 0xea4   :  { %v2521_v53 = vadd.f32 %v2520_v45, %v2515_v59 }
 0xea5   :  { %v2524_v46 = vpop.permute.xlu1 %2523 }
 0xea6   :  { %v2526_v20 = vsel %vm4567_vm1, %v2524_v46, 0.0  ;;  %vm4571_vm1 = vcmask 64512  }
 0xea7   :  { %v2527_v12 = vadd.f32 %v2526_v20, %v2521_v53  ;;  %vm4574_vm0 = vmmov %vm4571_vm1 }
 0xeaa   :  { %v2530_v52 = vpop.permute.xlu1 %2529 }
 0xeab   :  { %v2532_v1 = vsel %vm92_vm3, %v2530_v52, 0.0 }
 0xeac   :  { %v2533_v5 = vadd.f32 %v2532_v1, %v2527_v12 }
 0xeae   :  { %v2539_v6 = vadd.f32 %v2538_v17, %v2533_v5 }
 0xeaf   :  { %v2542_v2 = vpop.permute.xlu1 %2541 }
 0xeb0   :  { %v2544_v7 = vsel %vm94_vm2, %v2542_v2, 0.0 }
 0xeb1   :  { %v2545_v47 = vadd.f32 %v2544_v7, %v2539_v6 }
 0xeb4   :  { %v2548_v31 = vpop.permute.xlu1 %2547 }
 0xeb5   :  { %v2550_v48 = vsel %vm4569_vm12, %v2548_v31, 0.0  ;;  %vm4573_vm12 = vmmov %vm4571_vm1 }
 0xeb6   :  { %v2551_v23 = vadd.f32 %v2550_v48, %v2545_v47 }
 0xeb8   :  { %v2557_v54 = vadd.f32 %v2556_v51, %v2551_v23 }
 0xeba   :  { %v2631_v55 = vadd.f32 %v2630_v19, %v2557_v54 }
 0xebc   :  { %v2634_v56 = vsel %vm4571_vm1, %v2631_v55, -inf  ;;  %vm4575_vm1 = vmmov %vm4574_vm0 }
 0xebd   :  { %2635 = vmax.xlane.f32.xlu1 %v2634_v56 }
 0xece   :  { %2735 = vrot.lane.b32.xlu1 %v4185_v3, %s3635_s19 }
 0xed2   :  { %2658 = vrot.lane.b32.xlu1 %v4185_v3, %s3664_s12 }
 0xed6   :  { %2914 = vrot.lane.b32.xlu1 %v4185_v3, %s3645_s2 }
 0xeda   :  { %2912 = vrot.lane.b32.xlu1 %v4185_v3, %s3647_s8 }
 0xf46   :  { %v2636_v57 = vpop.xlane.xlu1 %2635 }
 0xf47   :  { %v2637_v11 = vsub.f32 %v2631_v55, %v2636_v57 }
 0xf49   :  { %v2638_v60 = vmul.f32 1.442695, %v2637_v11 }
 0xf4a   :  { %v2736_v61 = vpop.permute.xlu1 %2735 }
 0xf4b   :  { %3536 = vpow2.f32 %v2638_v60  ;;  %3328 = vmatmul.mubr.msk.f32.vlgmr.msra.gmra.mxu1 %vm4572_vm15, %v2736_v61 }
 0xf4c   :  { %3337 = vmatprep.mubr.msk.f32.mxu1 %vm4521_vm10, %v3640_v0 }
 0xf4e   :  { %v2659_v62 = vpop.permute.xlu1 %2658 }
 0xf4f   :  { %3319 = vmatpush3.msra.mxu0 %v2659_v62 }
 0xf50   :  { %3330 = vmatprep.subr.mxu0 %v3640_v0 }
 0xf58   :  { %v3537_v63 = vpop.eup %3536 }
 0xf59   :  { %v2640_v15 = vsel %vm4573_vm12, %v3537_v63, 0.0  ;;  %vm4576_vm12 = vmmov %vm4572_vm15 }
 0xf5a   :  { %2641 = vadd.xlane.f32.xlu0 %v2640_v15 }
 0xfe3   :  { %v2642_v16 = vpop.xlane.xlu0 %2641 }
 0xfe4   :  { %3538 = vrcp.f32 %v2642_v16 }
 0xff1   :  { %v3539_v18 = vpop.eup %3538 }
 0xff2   :  { %v2644_v10 = vmul.f32 %v4324_v58, %v3539_v18 }
 0xff4   :  { %2647 = vperm.xlu0 %3493, %v2644_v10  }
 0xff8   :  { %3499 = vset.pattern.permute.xlu0 %v3653_v34 }
0x100b   :  { %v2805_v19 = vpop.f32.mrf.mxu1 }
0x100c   :  { %2841 = vperm.xlu0 %3499, %v2805_v19   ;;  %2811 = vperm.xlu1 %3494, %v2805_v19  }
0x100d   :  { %v3329_v22 = vpop.f32.mrf.mxu1 }
0x1010   :  { %3502 = vset.pattern.permute.xlu0 %v3657_v38  ;;  %3495 = vset.pattern.permute.xlu1 %v3643_v13 }
0x1011   :  { %2859 = vperm.xlu0 %3502, %v2805_v19   ;;  %2817 = vperm.xlu1 %3495, %v2805_v19  }
0x1015   :  { %3505 = vset.pattern.permute.xlu0 %v3659_v40  ;;  %3496 = vset.pattern.permute.xlu1 %v3649_v25 }
0x1016   :  { %2877 = vperm.xlu0 %3505, %v2805_v19   ;;  %2823 = vperm.xlu1 %3496, %v2805_v19  }
0x101a   :  { %3508 = vset.pattern.permute.xlu0 %v3661_v42  ;;  %3497 = vset.pattern.permute.xlu1 %v3651_v30 }
0x101b   :  { %2895 = vperm.xlu0 %3508, %v2805_v19   ;;  %2829 = vperm.xlu1 %3497, %v2805_v19  }
0x101f   :  { %3498 = vset.pattern.permute.xlu1 %v3648_v24  ;;  %3511 = vset.pattern.permute.xlu0 %v3644_v14 }
0x1020   :  { %2835 = vperm.xlu1 %3498, %v2805_v19  }
0x1024   :  { %3500 = vset.pattern.permute.xlu1 %v3655_v36  ;;  %v2915_v36 = vpop.permute.xlu1 %2914 }
0x1025   :  { %2847 = vperm.xlu1 %3500, %v2805_v19  }
0x1029   :  { %3501 = vset.pattern.permute.xlu1 %v3650_v29 }
0x102a   :  { %2853 = vperm.xlu1 %3501, %v2805_v19  }
0x102e   :  { %3503 = vset.pattern.permute.xlu1 %v3658_v39 }
0x102f   :  { %2865 = vperm.xlu1 %3503, %v2805_v19  }
0x1033   :  { %3504 = vset.pattern.permute.xlu1 %v3652_v33 }
0x1034   :  { %2871 = vperm.xlu1 %3504, %v2805_v19  }
0x1038   :  { %3506 = vset.pattern.permute.xlu1 %v3660_v41 }
0x1039   :  { %2883 = vperm.xlu1 %3506, %v2805_v19  }
0x103d   :  { %3507 = vset.pattern.permute.xlu1 %v3654_v35  ;;  %v2913_v35 = vpop.permute.xlu1 %2912 }
0x103e   :  { %2889 = vperm.xlu1 %3507, %v2805_v19  }
0x1042   :  { %3509 = vset.pattern.permute.xlu1 %v3662_v43 }
0x1043   :  { %2901 = vperm.xlu1 %3509, %v2805_v19  }
0x1047   :  { %3510 = vset.pattern.permute.xlu1 %v3656_v37 }
0x1048   :  { %2907 = vperm.xlu1 %3510, %v2805_v19  }
0x106f   :  { %v2648_v13 = vpop.permute.xlu0 %2647 }
0x1070   :  { %v2650_v14 = vmul.f32 %v3537_v63, %v2648_v13  ;;  %v2377_v13 = vadd.f32 %v4396_v9, %v4363_v21 }
0x1072   :  { %v2651_v24 = vsel %vm4574_vm0, %v2650_v14, 0.0 }
0x1073   :  { %v2652_v25 = vrot.slane %v2651_v24, 4 }
0x1075   :  { %v2653_v29 = vadd.f32 %v2652_v25, %v2651_v24 }
0x1077   :  { %v2654_v30 = vrot.slane %v2653_v29, 2 }
0x1079   :  { %v2655_v33 = vadd.f32 %v2654_v30, %v2653_v29 }
0x107b   :  { %v2656_v34 = vrot.slane %v2655_v33, 1 }
0x107d   :  { %v2657_v38 = vadd.f32 %v2656_v34, %v2655_v33 }
0x107f   :  { %3321 = vmatmul.mubr.msk.f32.vlgmr.msra.gmra.mxu0 %vm4575_vm1, %v2657_v38 }
0x1080   :  { %3331 = vmatpush3.xpose.msk.msra.mxu0 %vm4572_vm15, %v2915_v36  ;;  %3332 = vmatprep.mubr.msk.f32.mxu0 %vm4521_vm10, %v3640_v0  ;;  %vm3096_vm10 = vcmask 123904  }
0x1083   :  { %3333 = vmatmul.mubr.msk.f32.vlgmr.msra.gmra.mxu0 %vm4576_vm12, %v2913_v35 }
0x1087   :  { %v2812_v37 = vpop.permute.xlu1 %2811  ;;  %v2842_v53 = vpop.permute.xlu0 %2841 }
0x1088   :  { %v2814_v28 = vsel %vm80_vm5, %v2812_v37, 0.0  ;;  %v2844_v12 = vsel %vm85_vm9, %v2842_v53, 0.0  ;;  %vm4578_vm5 = vcmp.eq.s32.totalorder %v3852_v49, 8  ;;  %vm4582_vm9 = vcmp.eq.s32.totalorder %v3852_v49, 16 }
0x108c   :  { %v2818_v39 = vpop.permute.xlu1 %2817  ;;  %v2860_v2 = vpop.permute.xlu0 %2859 }
0x108d   :  { %v2820_v43 = vsel %vm81_vm4, %v2818_v39, 0.0  ;;  %vm4577_vm4 = vcmp.eq.s32.totalorder %v3852_v49, 6  ;;  %v2862_v8 = vsel %vm4578_vm5, %v2860_v2, 0.0 }
0x108e   :  { %v2821_v44 = vadd.f32 %v2820_v43, %v2814_v28 }
0x1091   :  { %v2824_v40 = vpop.permute.xlu1 %2823  ;;  %v2878_v54 = vpop.permute.xlu0 %2877 }
0x1092   :  { %v2826_v32 = vsel %vm82_vm6, %v2824_v40, 0.0  ;;  %vm4579_vm6 = vcmp.eq.s32.totalorder %v3852_v49, 11 }
0x1093   :  { %v2827_v27 = vadd.f32 %v2826_v32, %v2821_v44  ;;  %v2880_v57 = vsel %vm4579_vm6, %v2878_v54, 0.0 }
0x1096   :  { %v2830_v41 = vpop.permute.xlu1 %2829  ;;  %v2896_v15 = vpop.permute.xlu0 %2895 }
0x1097   :  { %v2832_v0 = vsel %vm83_vm7, %v2830_v41, 0.0  ;;  %vm4580_vm7 = vcmp.eq.s32.totalorder %v3852_v49, 13  ;;  %v2898_v18 = vsel %vm94_vm2, %v2896_v15, 0.0  ;;  %vm4583_vm2 = vmmov %vm4574_vm0 }
0x1098   :  { %v2833_v45 = vadd.f32 %v2832_v0, %v2827_v27 }
0x109b   :  { %v2836_v42 = vpop.permute.xlu1 %2835 }
0x109c   :  { %v2838_v59 = vsel %vm84_vm8, %v2836_v42, 0.0  ;;  %vm4581_vm8 = vcmp.eq.s32.totalorder %v3852_v49, 15 }
0x109d   :  { %v2839_v20 = vadd.f32 %v2838_v59, %v2833_v45 }
0x109f   :  { %v2845_v52 = vadd.f32 %v2844_v12, %v2839_v20 }
0x10a0   :  { %v2848_v26 = vpop.permute.xlu1 %2847 }
0x10a1   :  { %v2850_v4 = vsel %vm4577_vm4, %v2848_v26, 0.0 }
0x10a2   :  { %v2851_v17 = vadd.f32 %v2850_v4, %v2845_v52 }
0x10a5   :  { %v2854_v46 = vpop.permute.xlu1 %2853 }
0x10a6   :  { %v2856_v5 = vsel %vm87_vm11, %v2854_v46, 0.0  ;;  %vm4584_vm11 = vmmov %vm4574_vm0 }
0x10a7   :  { %v2857_v6 = vadd.f32 %v2856_v5, %v2851_v17 }
0x10a9   :  { %v2863_v47 = vadd.f32 %v2862_v8, %v2857_v6 }
0x10aa   :  { %v2866_v1 = vpop.permute.xlu1 %2865 }
0x10ab   :  { %v2868_v31 = vsel %vm89_vm13, %v2866_v1, 0.0  ;;  %vm4585_vm13 = vmmov %vm4574_vm0 }
0x10ac   :  { %v2869_v51 = vadd.f32 %v2868_v31, %v2863_v47 }
0x10af   :  { %v2872_v7 = vpop.permute.xlu1 %2871 }
0x10b0   :  { %v2874_v23 = vsel %vm90_vm14, %v2872_v7, 0.0  ;;  %vm4586_vm14 = vmmov %vm4574_vm0 }
0x10b1   :  { %v2875_v55 = vadd.f32 %v2874_v23, %v2869_v51 }
0x10b3   :  { %v2881_v11 = vadd.f32 %v2880_v57, %v2875_v55 }
0x10b4   :  { %v2884_v48 = vpop.permute.xlu1 %2883 }
0x10b5   :  { %v2886_v60 = vsel %vm92_vm3, %v2884_v48, 0.0  ;;  %vm3094_vm3 = vcmask 1040384  }
0x10b6   :  { %v2887_v62 = vadd.f32 %v2886_v60, %v2881_v11 }
0x10b9   :  { %v2890_v56 = vpop.permute.xlu1 %2889 }
0x10ba   :  { %v2892_v61 = vsel %vm4580_vm7, %v2890_v56, 0.0 }
0x10bb   :  { %v2893_v16 = vadd.f32 %v2892_v61, %v2887_v62 }
0x10bd   :  { %v2899_v10 = vadd.f32 %v2898_v18, %v2893_v16 }
0x10be   :  { %v2902_v63 = vpop.permute.xlu1 %2901 }
0x10bf   :  { %v2904_v22 = vsel %vm4581_vm8, %v2902_v63, 0.0 }
0x10c0   :  { %v2905_v25 = vadd.f32 %v2904_v22, %v2899_v10 }
0x10c3   :  { %v2908_v19 = vpop.permute.xlu1 %2907 }
0x10c4   :  { %v2910_v14 = vsel %vm4582_vm9, %v2908_v19, 0.0 }
0x10c5   :  { %v2911_v33 = vadd.f32 %v2910_v14, %v2905_v25 }
0x113f   :  { %v2730_v24 = vpop.f32.mrf.mxu0 }
0x1140   :  { %v2734_v29 = vadd.f32 %v2730_v24, %v2377_v13 }
0x1141   :  { %v3322_v30 = vpop.f32.mrf.mxu0 }
0x1143   :  { %v2986_v34 = vpop.f32.mrf.mxu0 }
0x1144   :  { %v2987_v36 = vadd.f32 %v2986_v34, %v2911_v33 }
0x1145   :  { %v3334_v38 = vpop.f32.mrf.mxu0 }
0x1146   :  { %v2990_v35 = vsel %vm4583_vm2, %v2987_v36, -inf }
0x1147   :  { %2991 = vmax.xlane.f32.xlu0 %v2990_v35 }
0x11d0   :  { %v2992_v37 = vpop.xlane.xlu0 %2991 }
0x11d1   :  { %v2993_v39 = vsub.f32 %v2987_v36, %v2992_v37 }
0x11d3   :  { %v2994_v40 = vmul.f32 1.442695, %v2993_v39 }
0x11d5   :  { %3540 = vpow2.f32 %v2994_v40 }
0x11e2   :  { %v3541_v41 = vpop.eup %3540 }
0x11e3   :  { %v2996_v21 = vsel %vm4584_vm11, %v3541_v41, 0.0 }
0x11e4   :  { %2997 = vadd.xlane.f32.xlu1 %v2996_v21 }
0x11f5   :  { %3014 = vrot.lane.b32.xlu1 %v4185_v3, %s3663_s11 }
0x126d   :  { %v2998_v49 = vpop.xlane.xlu1 %2997 }
0x126e   :  { %3542 = vrcp.f32 %v2998_v49 }
0x1271   :  { %v3015_v9 = vpop.permute.xlu1 %3014 }
0x1272   :  { %3336 = vmatpush3.msra.mxu1 %v3015_v9 }
0x127b   :  { %v3543_v42 = vpop.eup %3542 }
0x127c   :  { %v3000_v43 = vmul.f32 %v4324_v58, %v3543_v42 }
0x127e   :  { %3003 = vperm.xlu0 %3511, %v3000_v43  }
0x12f9   :  { %v3004_v26 = vpop.permute.xlu0 %3003 }
0x12fa   :  { %v3006_v28 = vmul.f32 %v3541_v41, %v3004_v26 }
0x12fc   :  { %v3007_v32 = vsel %vm4585_vm13, %v3006_v28, 0.0 }
0x12fd   :  { %v3008_v44 = vrot.slane %v3007_v32, 4 }
0x12ff   :  { %v3009_v0 = vadd.f32 %v3008_v44, %v3007_v32 }
0x1301   :  { %v3010_v27 = vrot.slane %v3009_v0, 2 }
0x1303   :  { %v3011_v59 = vadd.f32 %v3010_v27, %v3009_v0 }
0x1305   :  { %v3012_v45 = vrot.slane %v3011_v59, 1 }
0x1307   :  { %v3013_v46 = vadd.f32 %v3012_v45, %v3011_v59 }
0x1309   :  { %3338 = vmatmul.mubr.msk.f32.vlgmr.msra.gmra.mxu1 %vm4586_vm14, %v3013_v46 }
0x13c9   :  { %v3086_v3 = vpop.f32.mrf.mxu1 }
0x13ca   :  { %v3090_v53 = vadd.f32 %v3086_v3, %v2734_v29 }
0x13cb   :  { %v3339_v20 = vpop.f32.mrf.mxu1 }
0x13cc   :  { %v3092_v58 = vrot.slane %v3090_v53, 7 }
0x13ce   :  { %v3095_v12 = vsel %vm3094_vm3, %v4205_v50, %v3092_v58 }
0x13cf   :  { %3097 = vst.msk [vmem:[#allocation8] sm:$0x3] %vm3096_vm10, %v3095_v12 }
0x13d0   :  { %3618 = shalt.err (!%p3615_p5)
}
0x13d1   :  { %3107 = dma.vmem_to_hbm [thread:$0]  %s3105_s15, 32, %s4507_s4, [#allocation4]  }
0x13d2   :  { %3631 = dma.done.wait [#allocation4], 32  }
0x13d3   :  { %3632 = vsyncadd [#allocation4], 4294967264 }
0x13d4   :  { %3111 = vsyncpa [#allocation3], 1 }
0x13d5   :  { %3112 = vsyncpa [#allocation6], 1 }
0x13d6   :  { %3113 = vsyncpa [#allocation4], 1 }

</bundles_post_ra>
